<compile_context>
chip_gen: v6e
topology: v6e:2x2x1
jax: 0.10.0
libtpu: 0.0.40
codegen_flags: <defaults>
</compile_context>

<pallas_src>
import functools

import jax
import jax.numpy as jnp
from jax.experimental import pallas as pl
from jax.experimental.pallas import tpu as pltpu


def _round_up(x, m):
    return (x + m - 1) // m * m


# ------------------------------- fused kernel ------------------------------ #

def _fused_cnn_kernel(p_ref, w1_ref, shift_ref, wfc_ref, bfc_ref, o_ref):
    """Conv2d+BN+ReLU+MaxPool(3,3)+Linear for a TB-sized batch tile, in VMEM.

    p_ref    : (9, 25*TB, C*16) bf16  im2col patches; axis0 = position inside
               the 3x3 pool window (dr*3+dc), axis1 rows ordered (pooled
               spatial r major, batch-in-tile minor), axis2 = (c, ki, kj).
    w1_ref   : (C*16, 32)  bf16  conv weight with the BN scale folded in.
    shift_ref: (1, 32)     f32   conv bias + BN shift folded together.
    wfc_ref  : (800, NCP)  bf16  FC weight, rows ordered (r, c); cols 0-padded
               to a multiple of 128 lanes.
    bfc_ref  : (1, NCP)    f32
    o_ref    : (TB, NCP)   f32
    """
    nk = p_ref.shape[0]           # 9 pool-window positions
    co = w1_ref.shape[1]          # 32 conv output channels
    tb = o_ref.shape[0]           # batch tile
    nw = p_ref.shape[1] // tb     # 25 pooled spatial positions

    # Conv2d(stride 2) with the BN scale folded into the weight; max-reduce
    # over the 9 pool-window positions on the fly.  One (25*TB, C*16) x
    # (C*16, 32) MXU matmul per position; compare/accumulate in f32.
    pooled = None
    for k in range(nk):
        ck = jnp.dot(p_ref[k], w1_ref[...], preferred_element_type=jnp.float32)
        pooled = ck if pooled is None else jnp.maximum(pooled, ck)

    # The additive (bias + BN) shift commutes with max and ReLU is monotone,
    # so both are applied once after the pool reduction.    (25*TB, 32) f32
    pooled = jnp.maximum(pooled + shift_ref[...], 0.0)

    # Dropout(p=0.2) is the identity in eval mode.

    # Linear(800, num_classes): 25 (TB,32)x(32,NCP) MXU matmuls over
    # statically aligned contiguous row blocks, accumulated in f32.
    pooled = pooled.astype(wfc_ref.dtype)
    acc = jnp.dot(pooled[0:tb], wfc_ref[0:co],
                  preferred_element_type=jnp.float32)
    for r in range(1, nw):
        acc = acc + jnp.dot(pooled[r * tb:(r + 1) * tb],
                            wfc_ref[r * co:(r + 1) * co],
                            preferred_element_type=jnp.float32)
    o_ref[...] = acc + bfc_ref[...]


# --------------------------------- wrapper ---------------------------------- #

def _im2col_pooled_layout(x, tb, kh=4, kw=4, stride=2, pool=3):
    """NCHW -> (pool*pool, nb*ph*pw*tb, C*kh*kw) conv patches.

    axis 0: position inside the pool window (dr*pool + dc)
    axis 1: (batch block, pooled spatial r = pi*pw+pj, batch within block)
    axis 2: (c, ki, kj) features, matching w_conv.reshape(32, C*kh*kw).
    """
    B, C, H, W = x.shape
    assert B % tb == 0
    nb = B // tb
    oh = (H - kh) // stride + 1
    ow = (W - kw) // stride + 1
    ph, pw = oh // pool, ow // pool
    cols = []
    for ki in range(kh):
        for kj in range(kw):
            cols.append(x[:, :,
                          ki:ki + stride * (oh - 1) + 1:stride,
                          kj:kj + stride * (ow - 1) + 1:stride])   # (B,C,oh,ow)
    p = jnp.stack(cols, axis=2).reshape(B, C, kh, kw, oh, ow)
    p = p[..., :ph * pool, :pw * pool]       # drop rows/cols past the last pool window
    p = p.reshape(nb, tb, C, kh, kw, ph, pool, pw, pool)
    # dims: (nb, b_in, C, ki, kj, pi, dr, pj, dc) -> (dr, dc, nb, pi, pj, b_in, C, ki, kj)
    p = p.transpose(6, 8, 0, 5, 7, 1, 2, 3, 4)
    return p.reshape(pool * pool, nb * ph * pw * tb, C * kh * kw)


def fold_params(params, eps=1e-5, lane=128):
    """One-time folding: conv bias + eval-mode BN into the conv matmul, FC
    weight permuted to (spatial, channel) row order and lane-padded; MXU
    operands cast to bf16."""
    co = params["w_conv"].shape[0]
    scale = params["gamma"] / jnp.sqrt(params["running_var"] + eps)      # (32,)
    shift = params["beta"] - params["running_mean"] * scale              # (32,)
    w1 = params["w_conv"].reshape(co, -1).T * scale[None, :]             # (C*16, 32)
    shift1 = (shift + params["b_conv"] * scale).reshape(1, co)
    nc, nf = params["w_fc"].shape                                        # (nc, 800)
    nw = nf // co
    # wfc[r*32 + c, n] = w_fc[n, c*nw + r]  (r = pooled spatial index pi*pw+pj)
    wfc = params["w_fc"].reshape(nc, co, nw).transpose(2, 1, 0).reshape(nf, nc)
    # Pad the class dim to a 128-lane multiple -> unmasked stores in-kernel.
    ncp = _round_up(nc, lane)
    wfc = jnp.pad(wfc, ((0, 0), (0, ncp - nc)))
    bfc = jnp.pad(params["b_fc"].reshape(1, nc), ((0, 0), (0, ncp - nc)))
    return {
        "w1": w1.astype(jnp.bfloat16),
        "shift1": shift1.astype(jnp.float32),
        "wfc": wfc.astype(jnp.bfloat16),
        "bfc": bfc.astype(jnp.float32),
    }


@functools.partial(jax.jit, static_argnames=("num_classes", "batch_tile"))
def model_forward(folded, x, *, num_classes, batch_tile=128):
    """x: NCHW float32 (B, C, 32, 32) -> logits (B, num_classes).

    batch_tile=128 with bf16 patches fits v7x's 64 MiB VMEM; on v5e/v6e
    (128 MiB) it can be raised to 256.
    """
    B = x.shape[0]
    # Batch tile: multiple of 16 (bf16 sublane packing).
    if B <= batch_tile:
        tb = _round_up(B, 16)
        b_pad = tb
    else:
        tb = batch_tile
        b_pad = _round_up(B, tb)
    if b_pad != B:
        x = jnp.pad(x, ((0, b_pad - B), (0, 0), (0, 0), (0, 0)))

    # bf16 patches halve the wrapper-transpose and HBM->VMEM traffic; the MXU
    # consumes bf16 natively and accumulates in f32.
    patches = _im2col_pooled_layout(x.astype(jnp.bfloat16), tb)
    nk, rows, ckk = patches.shape
    co = folded["w1"].shape[1]
    ncp = folded["wfc"].shape[1]
    nb = b_pad // tb
    assert folded["w1"].shape[0] == ckk
    assert folded["wfc"].shape[0] == (rows // (nb * tb)) * co   # 800 features

    # Scoped VMEM: 2x the streamed (lane-padded bf16) patch block + headroom
    # for weights, output and compiler scratch.  v5e's default limit is 16 MiB.
    patch_block_bytes = nk * (rows // nb) * _round_up(ckk, 128) * 2
    vmem_limit = min(100 * 1024 * 1024,
                     2 * patch_block_bytes + 16 * 1024 * 1024)

    out = pl.pallas_call(
        _fused_cnn_kernel,
        out_shape=jax.ShapeDtypeStruct((b_pad, ncp), jnp.float32),
        grid=(nb,),
        in_specs=[
            pl.BlockSpec((nk, rows // nb, ckk), lambda i: (0, i, 0)),
            pl.BlockSpec((ckk, co), lambda i: (0, 0)),
            pl.BlockSpec((1, co), lambda i: (0, 0)),
            pl.BlockSpec((folded_wfc_rows(folded), ncp), lambda i: (0, 0)),
            pl.BlockSpec((1, ncp), lambda i: (0, 0)),
        ],
        out_specs=pl.BlockSpec((tb, ncp), lambda i: (i, 0)),
        compiler_params=pltpu.CompilerParams(
            dimension_semantics=("parallel",),       # both TCs on v7x when nb >= 2
            vmem_limit_bytes=vmem_limit),
    )(patches, folded["w1"], folded["shift1"], folded["wfc"], folded["bfc"])
    return out[:B, :num_classes]


def folded_wfc_rows(folded):
    return folded["wfc"].shape[0]


# --------------------------- params & reference ----------------------------- #

def init_params(key, num_channels, num_classes):
    ks = jax.random.split(key, 8)
    fan_conv = num_channels * 4 * 4
    fan_fc = 800
    return {
        "w_conv": jax.random.uniform(ks[0], (32, num_channels, 4, 4), jnp.float32,
                                     -1.0, 1.0) / jnp.sqrt(fan_conv),
        "b_conv": jax.random.uniform(ks[1], (32,), jnp.float32,
                                     -1.0, 1.0) / jnp.sqrt(fan_conv),
        # BatchNorm2d params / running stats (eval mode); randomized so the
        # folded scale/shift path is actually exercised by the self-check.
        "gamma": 1.0 + 0.2 * jax.random.normal(ks[2], (32,), jnp.float32),
        "beta": 0.1 * jax.random.normal(ks[3], (32,), jnp.float32),
        "running_mean": 0.1 * jax.random.normal(ks[4], (32,), jnp.float32),
        "running_var": 1.0 + 0.2 * jax.random.uniform(ks[5], (32,), jnp.float32),
        "w_fc": jax.random.uniform(ks[6], (num_classes, fan_fc), jnp.float32,
                                   -1.0, 1.0) / jnp.sqrt(fan_fc),
        "b_fc": jax.random.uniform(ks[7], (num_classes,), jnp.float32,
                                   -1.0, 1.0) / jnp.sqrt(fan_fc),
    }


def reference_forward(params, x, eps=1e-5):
    """Pure-JAX reference (HIGHEST precision) of the PyTorch forward, eval mode."""
    y = jax.lax.conv_general_dilated(
        x, params["w_conv"], window_strides=(2, 2), padding="VALID",
        dimension_numbers=("NCHW", "OIHW", "NCHW"),
        precision=jax.lax.Precision.HIGHEST)
    y = y + params["b_conv"][None, :, None, None]
    scale = params["gamma"] / jnp.sqrt(params["running_var"] + eps)
    shift = params["beta"] - params["running_mean"] * scale
    y = jnp.maximum(y * scale[None, :, None, None] + shift[None, :, None, None], 0.0)
    y = jax.lax.reduce_window(y, -jnp.inf, jax.lax.max,
                              (1, 1, 3, 3), (1, 1, 3, 3), "VALID")
    feat = y.reshape(y.shape[0], -1)
    return jnp.dot(feat, params["w_fc"].T,
                   precision=jax.lax.Precision.HIGHEST) + params["b_fc"]


if __name__ == "__main__":
    num_channels, num_classes, batch = 3, 10, 2
    key = jax.random.PRNGKey(0)
    k_params, k_x = jax.random.split(key)

    params = init_params(k_params, num_channels, num_classes)
    folded = fold_params(params)          # one-time weight folding/permutation
    # fc1 expects 800 = 32*5*5 features -> input spatial must be 32x32.
    x = jax.random.normal(k_x, (batch, num_channels, 32, 32), jnp.float32)

    out = jax.block_until_ready(model_forward(folded, x, num_classes=num_classes))
    assert out.shape == (batch, num_classes), out.shape
    assert out.dtype == jnp.float32

    # Self-check against a pure-JAX f32 reference (bf16 MXU operands in-kernel).
    ref = jax.block_until_ready(reference_forward(params, x))
    err = float(jnp.max(jnp.abs(out - ref)))
    assert err < 3e-2, f"mismatch vs reference: max abs err = {err}"

    print("KERNEL_OK")
</pallas_src>

<mosaic_0001>
module attributes {stable_mosaic.version = 11 : i64} {
  func.func @_fused_cnn_kernel(%arg0: i32, %arg1: memref<9x400x48xbf16, #tpu.memory_space<vmem>>, %arg2: memref<48x32xbf16, #tpu.memory_space<vmem>>, %arg3: memref<1x32xf32, #tpu.memory_space<vmem>>, %arg4: memref<800x128xbf16, #tpu.memory_space<vmem>>, %arg5: memref<1x128xf32, #tpu.memory_space<vmem>>, %arg6: memref<16x128xf32, #tpu.memory_space<vmem>>) attributes {dimension_semantics = [#tpu.dimension_semantics<parallel>], iteration_bounds = array<i64: 1>, scalar_prefetch = 0 : i64, scratch_operands = 0 : i64, tpu.core_type = #tpu.core_type<tc>, window_params = [{transform_indices = @transform_0, window_bounds = array<i64: 9, 400, 48>}, {pipeline_mode = #tpu.pipeline_mode<synchronous>, transform_indices = @transform_1, window_bounds = array<i64: 48, 32>}, {pipeline_mode = #tpu.pipeline_mode<synchronous>, transform_indices = @transform_2, window_bounds = array<i64: 1, 32>}, {pipeline_mode = #tpu.pipeline_mode<synchronous>, transform_indices = @transform_3, window_bounds = array<i64: 800, 128>}, {pipeline_mode = #tpu.pipeline_mode<synchronous>, transform_indices = @transform_4, window_bounds = array<i64: 1, 128>}, {transform_indices = @transform_5, window_bounds = array<i64: 16, 128>}]} {
    %c0 = arith.constant 0 : index
    %c0_0 = arith.constant 0 : index
    %c0_1 = arith.constant 0 : index
    %0 = vector.load %arg1[%c0, %c0_0, %c0_1] : memref<9x400x48xbf16, #tpu.memory_space<vmem>>, vector<1x400x48xbf16>
    %1 = vector.shape_cast %0 : vector<1x400x48xbf16> to vector<400x48xbf16>
    %c0_2 = arith.constant 0 : index
    %c0_3 = arith.constant 0 : index
    %2 = vector.load %arg2[%c0_2, %c0_3] : memref<48x32xbf16, #tpu.memory_space<vmem>>, vector<48x32xbf16>
    %cst = arith.constant dense<0.000000e+00> : vector<400x32xf32>
    %3 = tpu.matmul %1, %2, %cst {dimension_numbers = #tpu.dot_dimension_numbers<[1], [0], [0], [1], [0, 0, 1, 1], [], []>} : vector<400x48xbf16>, vector<48x32xbf16>, vector<400x32xf32> -> vector<400x32xf32>
    %c1 = arith.constant 1 : index
    %c0_4 = arith.constant 0 : index
    %c0_5 = arith.constant 0 : index
    %4 = vector.load %arg1[%c1, %c0_4, %c0_5] : memref<9x400x48xbf16, #tpu.memory_space<vmem>>, vector<1x400x48xbf16>
    %5 = vector.shape_cast %4 : vector<1x400x48xbf16> to vector<400x48xbf16>
    %c0_6 = arith.constant 0 : index
    %c0_7 = arith.constant 0 : index
    %6 = vector.load %arg2[%c0_6, %c0_7] : memref<48x32xbf16, #tpu.memory_space<vmem>>, vector<48x32xbf16>
    %cst_8 = arith.constant dense<0.000000e+00> : vector<400x32xf32>
    %7 = tpu.matmul %5, %6, %cst_8 {dimension_numbers = #tpu.dot_dimension_numbers<[1], [0], [0], [1], [0, 0, 1, 1], [], []>} : vector<400x48xbf16>, vector<48x32xbf16>, vector<400x32xf32> -> vector<400x32xf32>
    %8 = arith.maximumf %3, %7 : vector<400x32xf32>
    %c2 = arith.constant 2 : index
    %c0_9 = arith.constant 0 : index
    %c0_10 = arith.constant 0 : index
    %9 = vector.load %arg1[%c2, %c0_9, %c0_10] : memref<9x400x48xbf16, #tpu.memory_space<vmem>>, vector<1x400x48xbf16>
    %10 = vector.shape_cast %9 : vector<1x400x48xbf16> to vector<400x48xbf16>
    %c0_11 = arith.constant 0 : index
    %c0_12 = arith.constant 0 : index
    %11 = vector.load %arg2[%c0_11, %c0_12] : memref<48x32xbf16, #tpu.memory_space<vmem>>, vector<48x32xbf16>
    %cst_13 = arith.constant dense<0.000000e+00> : vector<400x32xf32>
    %12 = tpu.matmul %10, %11, %cst_13 {dimension_numbers = #tpu.dot_dimension_numbers<[1], [0], [0], [1], [0, 0, 1, 1], [], []>} : vector<400x48xbf16>, vector<48x32xbf16>, vector<400x32xf32> -> vector<400x32xf32>
    %13 = arith.maximumf %8, %12 : vector<400x32xf32>
    %c3 = arith.constant 3 : index
    %c0_14 = arith.constant 0 : index
    %c0_15 = arith.constant 0 : index
    %14 = vector.load %arg1[%c3, %c0_14, %c0_15] : memref<9x400x48xbf16, #tpu.memory_space<vmem>>, vector<1x400x48xbf16>
    %15 = vector.shape_cast %14 : vector<1x400x48xbf16> to vector<400x48xbf16>
    %c0_16 = arith.constant 0 : index
    %c0_17 = arith.constant 0 : index
    %16 = vector.load %arg2[%c0_16, %c0_17] : memref<48x32xbf16, #tpu.memory_space<vmem>>, vector<48x32xbf16>
    %cst_18 = arith.constant dense<0.000000e+00> : vector<400x32xf32>
    %17 = tpu.matmul %15, %16, %cst_18 {dimension_numbers = #tpu.dot_dimension_numbers<[1], [0], [0], [1], [0, 0, 1, 1], [], []>} : vector<400x48xbf16>, vector<48x32xbf16>, vector<400x32xf32> -> vector<400x32xf32>
    %18 = arith.maximumf %13, %17 : vector<400x32xf32>
    %c4 = arith.constant 4 : index
    %c0_19 = arith.constant 0 : index
    %c0_20 = arith.constant 0 : index
    %19 = vector.load %arg1[%c4, %c0_19, %c0_20] : memref<9x400x48xbf16, #tpu.memory_space<vmem>>, vector<1x400x48xbf16>
    %20 = vector.shape_cast %19 : vector<1x400x48xbf16> to vector<400x48xbf16>
    %c0_21 = arith.constant 0 : index
    %c0_22 = arith.constant 0 : index
    %21 = vector.load %arg2[%c0_21, %c0_22] : memref<48x32xbf16, #tpu.memory_space<vmem>>, vector<48x32xbf16>
    %cst_23 = arith.constant dense<0.000000e+00> : vector<400x32xf32>
    %22 = tpu.matmul %20, %21, %cst_23 {dimension_numbers = #tpu.dot_dimension_numbers<[1], [0], [0], [1], [0, 0, 1, 1], [], []>} : vector<400x48xbf16>, vector<48x32xbf16>, vector<400x32xf32> -> vector<400x32xf32>
    %23 = arith.maximumf %18, %22 : vector<400x32xf32>
    %c5 = arith.constant 5 : index
    %c0_24 = arith.constant 0 : index
    %c0_25 = arith.constant 0 : index
    %24 = vector.load %arg1[%c5, %c0_24, %c0_25] : memref<9x400x48xbf16, #tpu.memory_space<vmem>>, vector<1x400x48xbf16>
    %25 = vector.shape_cast %24 : vector<1x400x48xbf16> to vector<400x48xbf16>
    %c0_26 = arith.constant 0 : index
    %c0_27 = arith.constant 0 : index
    %26 = vector.load %arg2[%c0_26, %c0_27] : memref<48x32xbf16, #tpu.memory_space<vmem>>, vector<48x32xbf16>
    %cst_28 = arith.constant dense<0.000000e+00> : vector<400x32xf32>
    %27 = tpu.matmul %25, %26, %cst_28 {dimension_numbers = #tpu.dot_dimension_numbers<[1], [0], [0], [1], [0, 0, 1, 1], [], []>} : vector<400x48xbf16>, vector<48x32xbf16>, vector<400x32xf32> -> vector<400x32xf32>
    %28 = arith.maximumf %23, %27 : vector<400x32xf32>
    %c6 = arith.constant 6 : index
    %c0_29 = arith.constant 0 : index
    %c0_30 = arith.constant 0 : index
    %29 = vector.load %arg1[%c6, %c0_29, %c0_30] : memref<9x400x48xbf16, #tpu.memory_space<vmem>>, vector<1x400x48xbf16>
    %30 = vector.shape_cast %29 : vector<1x400x48xbf16> to vector<400x48xbf16>
    %c0_31 = arith.constant 0 : index
    %c0_32 = arith.constant 0 : index
    %31 = vector.load %arg2[%c0_31, %c0_32] : memref<48x32xbf16, #tpu.memory_space<vmem>>, vector<48x32xbf16>
    %cst_33 = arith.constant dense<0.000000e+00> : vector<400x32xf32>
    %32 = tpu.matmul %30, %31, %cst_33 {dimension_numbers = #tpu.dot_dimension_numbers<[1], [0], [0], [1], [0, 0, 1, 1], [], []>} : vector<400x48xbf16>, vector<48x32xbf16>, vector<400x32xf32> -> vector<400x32xf32>
    %33 = arith.maximumf %28, %32 : vector<400x32xf32>
    %c7 = arith.constant 7 : index
    %c0_34 = arith.constant 0 : index
    %c0_35 = arith.constant 0 : index
    %34 = vector.load %arg1[%c7, %c0_34, %c0_35] : memref<9x400x48xbf16, #tpu.memory_space<vmem>>, vector<1x400x48xbf16>
    %35 = vector.shape_cast %34 : vector<1x400x48xbf16> to vector<400x48xbf16>
    %c0_36 = arith.constant 0 : index
    %c0_37 = arith.constant 0 : index
    %36 = vector.load %arg2[%c0_36, %c0_37] : memref<48x32xbf16, #tpu.memory_space<vmem>>, vector<48x32xbf16>
    %cst_38 = arith.constant dense<0.000000e+00> : vector<400x32xf32>
    %37 = tpu.matmul %35, %36, %cst_38 {dimension_numbers = #tpu.dot_dimension_numbers<[1], [0], [0], [1], [0, 0, 1, 1], [], []>} : vector<400x48xbf16>, vector<48x32xbf16>, vector<400x32xf32> -> vector<400x32xf32>
    %38 = arith.maximumf %33, %37 : vector<400x32xf32>
    %c8 = arith.constant 8 : index
    %c0_39 = arith.constant 0 : index
    %c0_40 = arith.constant 0 : index
    %39 = vector.load %arg1[%c8, %c0_39, %c0_40] : memref<9x400x48xbf16, #tpu.memory_space<vmem>>, vector<1x400x48xbf16>
    %40 = vector.shape_cast %39 : vector<1x400x48xbf16> to vector<400x48xbf16>
    %c0_41 = arith.constant 0 : index
    %c0_42 = arith.constant 0 : index
    %41 = vector.load %arg2[%c0_41, %c0_42] : memref<48x32xbf16, #tpu.memory_space<vmem>>, vector<48x32xbf16>
    %cst_43 = arith.constant dense<0.000000e+00> : vector<400x32xf32>
    %42 = tpu.matmul %40, %41, %cst_43 {dimension_numbers = #tpu.dot_dimension_numbers<[1], [0], [0], [1], [0, 0, 1, 1], [], []>} : vector<400x48xbf16>, vector<48x32xbf16>, vector<400x32xf32> -> vector<400x32xf32>
    %43 = arith.maximumf %38, %42 : vector<400x32xf32>
    %c0_44 = arith.constant 0 : index
    %c0_45 = arith.constant 0 : index
    %44 = vector.load %arg3[%c0_44, %c0_45] : memref<1x32xf32, #tpu.memory_space<vmem>>, vector<1x32xf32>
    %45 = vector.broadcast %44 : vector<1x32xf32> to vector<400x32xf32>
    %46 = arith.addf %43, %45 : vector<400x32xf32>
    %cst_46 = arith.constant 0.000000e+00 : f32
    %47 = vector.broadcast %cst_46 : f32 to vector<400x32xf32>
    %48 = arith.maximumf %46, %47 : vector<400x32xf32>
    %49 = arith.truncf %48 : vector<400x32xf32> to vector<400x32xbf16>
    %50 = vector.extract_strided_slice %49 {offsets = [0, 0], sizes = [16, 32], strides = [1, 1]} : vector<400x32xbf16> to vector<16x32xbf16>
    %c0_47 = arith.constant 0 : index
    %c0_48 = arith.constant 0 : index
    %51 = vector.load %arg4[%c0_47, %c0_48] : memref<800x128xbf16, #tpu.memory_space<vmem>>, vector<32x128xbf16>
    %cst_49 = arith.constant dense<0.000000e+00> : vector<16x128xf32>
    %52 = tpu.matmul %50, %51, %cst_49 {dimension_numbers = #tpu.dot_dimension_numbers<[1], [0], [0], [1], [0, 0, 1, 1], [], []>} : vector<16x32xbf16>, vector<32x128xbf16>, vector<16x128xf32> -> vector<16x128xf32>
    %53 = vector.extract_strided_slice %49 {offsets = [16, 0], sizes = [16, 32], strides = [1, 1]} : vector<400x32xbf16> to vector<16x32xbf16>
    %c32 = arith.constant 32 : index
    %c0_50 = arith.constant 0 : index
    %54 = vector.load %arg4[%c32, %c0_50] : memref<800x128xbf16, #tpu.memory_space<vmem>>, vector<32x128xbf16>
    %cst_51 = arith.constant dense<0.000000e+00> : vector<16x128xf32>
    %55 = tpu.matmul %53, %54, %cst_51 {dimension_numbers = #tpu.dot_dimension_numbers<[1], [0], [0], [1], [0, 0, 1, 1], [], []>} : vector<16x32xbf16>, vector<32x128xbf16>, vector<16x128xf32> -> vector<16x128xf32>
    %56 = arith.addf %52, %55 : vector<16x128xf32>
    %57 = vector.extract_strided_slice %49 {offsets = [32, 0], sizes = [16, 32], strides = [1, 1]} : vector<400x32xbf16> to vector<16x32xbf16>
    %c64 = arith.constant 64 : index
    %c0_52 = arith.constant 0 : index
    %58 = vector.load %arg4[%c64, %c0_52] : memref<800x128xbf16, #tpu.memory_space<vmem>>, vector<32x128xbf16>
    %cst_53 = arith.constant dense<0.000000e+00> : vector<16x128xf32>
    %59 = tpu.matmul %57, %58, %cst_53 {dimension_numbers = #tpu.dot_dimension_numbers<[1], [0], [0], [1], [0, 0, 1, 1], [], []>} : vector<16x32xbf16>, vector<32x128xbf16>, vector<16x128xf32> -> vector<16x128xf32>
    %60 = arith.addf %56, %59 : vector<16x128xf32>
    %61 = vector.extract_strided_slice %49 {offsets = [48, 0], sizes = [16, 32], strides = [1, 1]} : vector<400x32xbf16> to vector<16x32xbf16>
    %c96 = arith.constant 96 : index
    %c0_54 = arith.constant 0 : index
    %62 = vector.load %arg4[%c96, %c0_54] : memref<800x128xbf16, #tpu.memory_space<vmem>>, vector<32x128xbf16>
    %cst_55 = arith.constant dense<0.000000e+00> : vector<16x128xf32>
    %63 = tpu.matmul %61, %62, %cst_55 {dimension_numbers = #tpu.dot_dimension_numbers<[1], [0], [0], [1], [0, 0, 1, 1], [], []>} : vector<16x32xbf16>, vector<32x128xbf16>, vector<16x128xf32> -> vector<16x128xf32>
    %64 = arith.addf %60, %63 : vector<16x128xf32>
    %65 = vector.extract_strided_slice %49 {offsets = [64, 0], sizes = [16, 32], strides = [1, 1]} : vector<400x32xbf16> to vector<16x32xbf16>
    %c128 = arith.constant 128 : index
    %c0_56 = arith.constant 0 : index
    %66 = vector.load %arg4[%c128, %c0_56] : memref<800x128xbf16, #tpu.memory_space<vmem>>, vector<32x128xbf16>
    %cst_57 = arith.constant dense<0.000000e+00> : vector<16x128xf32>
    %67 = tpu.matmul %65, %66, %cst_57 {dimension_numbers = #tpu.dot_dimension_numbers<[1], [0], [0], [1], [0, 0, 1, 1], [], []>} : vector<16x32xbf16>, vector<32x128xbf16>, vector<16x128xf32> -> vector<16x128xf32>
    %68 = arith.addf %64, %67 : vector<16x128xf32>
    %69 = vector.extract_strided_slice %49 {offsets = [80, 0], sizes = [16, 32], strides = [1, 1]} : vector<400x32xbf16> to vector<16x32xbf16>
    %c160 = arith.constant 160 : index
    %c0_58 = arith.constant 0 : index
    %70 = vector.load %arg4[%c160, %c0_58] : memref<800x128xbf16, #tpu.memory_space<vmem>>, vector<32x128xbf16>
    %cst_59 = arith.constant dense<0.000000e+00> : vector<16x128xf32>
    %71 = tpu.matmul %69, %70, %cst_59 {dimension_numbers = #tpu.dot_dimension_numbers<[1], [0], [0], [1], [0, 0, 1, 1], [], []>} : vector<16x32xbf16>, vector<32x128xbf16>, vector<16x128xf32> -> vector<16x128xf32>
    %72 = arith.addf %68, %71 : vector<16x128xf32>
    %73 = vector.extract_strided_slice %49 {offsets = [96, 0], sizes = [16, 32], strides = [1, 1]} : vector<400x32xbf16> to vector<16x32xbf16>
    %c192 = arith.constant 192 : index
    %c0_60 = arith.constant 0 : index
    %74 = vector.load %arg4[%c192, %c0_60] : memref<800x128xbf16, #tpu.memory_space<vmem>>, vector<32x128xbf16>
    %cst_61 = arith.constant dense<0.000000e+00> : vector<16x128xf32>
    %75 = tpu.matmul %73, %74, %cst_61 {dimension_numbers = #tpu.dot_dimension_numbers<[1], [0], [0], [1], [0, 0, 1, 1], [], []>} : vector<16x32xbf16>, vector<32x128xbf16>, vector<16x128xf32> -> vector<16x128xf32>
    %76 = arith.addf %72, %75 : vector<16x128xf32>
    %77 = vector.extract_strided_slice %49 {offsets = [112, 0], sizes = [16, 32], strides = [1, 1]} : vector<400x32xbf16> to vector<16x32xbf16>
    %c224 = arith.constant 224 : index
    %c0_62 = arith.constant 0 : index
    %78 = vector.load %arg4[%c224, %c0_62] : memref<800x128xbf16, #tpu.memory_space<vmem>>, vector<32x128xbf16>
    %cst_63 = arith.constant dense<0.000000e+00> : vector<16x128xf32>
    %79 = tpu.matmul %77, %78, %cst_63 {dimension_numbers = #tpu.dot_dimension_numbers<[1], [0], [0], [1], [0, 0, 1, 1], [], []>} : vector<16x32xbf16>, vector<32x128xbf16>, vector<16x128xf32> -> vector<16x128xf32>
    %80 = arith.addf %76, %79 : vector<16x128xf32>
    %81 = vector.extract_strided_slice %49 {offsets = [128, 0], sizes = [16, 32], strides = [1, 1]} : vector<400x32xbf16> to vector<16x32xbf16>
    %c256 = arith.constant 256 : index
    %c0_64 = arith.constant 0 : index
    %82 = vector.load %arg4[%c256, %c0_64] : memref<800x128xbf16, #tpu.memory_space<vmem>>, vector<32x128xbf16>
    %cst_65 = arith.constant dense<0.000000e+00> : vector<16x128xf32>
    %83 = tpu.matmul %81, %82, %cst_65 {dimension_numbers = #tpu.dot_dimension_numbers<[1], [0], [0], [1], [0, 0, 1, 1], [], []>} : vector<16x32xbf16>, vector<32x128xbf16>, vector<16x128xf32> -> vector<16x128xf32>
    %84 = arith.addf %80, %83 : vector<16x128xf32>
    %85 = vector.extract_strided_slice %49 {offsets = [144, 0], sizes = [16, 32], strides = [1, 1]} : vector<400x32xbf16> to vector<16x32xbf16>
    %c288 = arith.constant 288 : index
    %c0_66 = arith.constant 0 : index
    %86 = vector.load %arg4[%c288, %c0_66] : memref<800x128xbf16, #tpu.memory_space<vmem>>, vector<32x128xbf16>
    %cst_67 = arith.constant dense<0.000000e+00> : vector<16x128xf32>
    %87 = tpu.matmul %85, %86, %cst_67 {dimension_numbers = #tpu.dot_dimension_numbers<[1], [0], [0], [1], [0, 0, 1, 1], [], []>} : vector<16x32xbf16>, vector<32x128xbf16>, vector<16x128xf32> -> vector<16x128xf32>
    %88 = arith.addf %84, %87 : vector<16x128xf32>
    %89 = vector.extract_strided_slice %49 {offsets = [160, 0], sizes = [16, 32], strides = [1, 1]} : vector<400x32xbf16> to vector<16x32xbf16>
    %c320 = arith.constant 320 : index
    %c0_68 = arith.constant 0 : index
    %90 = vector.load %arg4[%c320, %c0_68] : memref<800x128xbf16, #tpu.memory_space<vmem>>, vector<32x128xbf16>
    %cst_69 = arith.constant dense<0.000000e+00> : vector<16x128xf32>
    %91 = tpu.matmul %89, %90, %cst_69 {dimension_numbers = #tpu.dot_dimension_numbers<[1], [0], [0], [1], [0, 0, 1, 1], [], []>} : vector<16x32xbf16>, vector<32x128xbf16>, vector<16x128xf32> -> vector<16x128xf32>
    %92 = arith.addf %88, %91 : vector<16x128xf32>
    %93 = vector.extract_strided_slice %49 {offsets = [176, 0], sizes = [16, 32], strides = [1, 1]} : vector<400x32xbf16> to vector<16x32xbf16>
    %c352 = arith.constant 352 : index
    %c0_70 = arith.constant 0 : index
    %94 = vector.load %arg4[%c352, %c0_70] : memref<800x128xbf16, #tpu.memory_space<vmem>>, vector<32x128xbf16>
    %cst_71 = arith.constant dense<0.000000e+00> : vector<16x128xf32>
    %95 = tpu.matmul %93, %94, %cst_71 {dimension_numbers = #tpu.dot_dimension_numbers<[1], [0], [0], [1], [0, 0, 1, 1], [], []>} : vector<16x32xbf16>, vector<32x128xbf16>, vector<16x128xf32> -> vector<16x128xf32>
    %96 = arith.addf %92, %95 : vector<16x128xf32>
    %97 = vector.extract_strided_slice %49 {offsets = [192, 0], sizes = [16, 32], strides = [1, 1]} : vector<400x32xbf16> to vector<16x32xbf16>
    %c384 = arith.constant 384 : index
    %c0_72 = arith.constant 0 : index
    %98 = vector.load %arg4[%c384, %c0_72] : memref<800x128xbf16, #tpu.memory_space<vmem>>, vector<32x128xbf16>
    %cst_73 = arith.constant dense<0.000000e+00> : vector<16x128xf32>
    %99 = tpu.matmul %97, %98, %cst_73 {dimension_numbers = #tpu.dot_dimension_numbers<[1], [0], [0], [1], [0, 0, 1, 1], [], []>} : vector<16x32xbf16>, vector<32x128xbf16>, vector<16x128xf32> -> vector<16x128xf32>
    %100 = arith.addf %96, %99 : vector<16x128xf32>
    %101 = vector.extract_strided_slice %49 {offsets = [208, 0], sizes = [16, 32], strides = [1, 1]} : vector<400x32xbf16> to vector<16x32xbf16>
    %c416 = arith.constant 416 : index
    %c0_74 = arith.constant 0 : index
    %102 = vector.load %arg4[%c416, %c0_74] : memref<800x128xbf16, #tpu.memory_space<vmem>>, vector<32x128xbf16>
    %cst_75 = arith.constant dense<0.000000e+00> : vector<16x128xf32>
    %103 = tpu.matmul %101, %102, %cst_75 {dimension_numbers = #tpu.dot_dimension_numbers<[1], [0], [0], [1], [0, 0, 1, 1], [], []>} : vector<16x32xbf16>, vector<32x128xbf16>, vector<16x128xf32> -> vector<16x128xf32>
    %104 = arith.addf %100, %103 : vector<16x128xf32>
    %105 = vector.extract_strided_slice %49 {offsets = [224, 0], sizes = [16, 32], strides = [1, 1]} : vector<400x32xbf16> to vector<16x32xbf16>
    %c448 = arith.constant 448 : index
    %c0_76 = arith.constant 0 : index
    %106 = vector.load %arg4[%c448, %c0_76] : memref<800x128xbf16, #tpu.memory_space<vmem>>, vector<32x128xbf16>
    %cst_77 = arith.constant dense<0.000000e+00> : vector<16x128xf32>
    %107 = tpu.matmul %105, %106, %cst_77 {dimension_numbers = #tpu.dot_dimension_numbers<[1], [0], [0], [1], [0, 0, 1, 1], [], []>} : vector<16x32xbf16>, vector<32x128xbf16>, vector<16x128xf32> -> vector<16x128xf32>
    %108 = arith.addf %104, %107 : vector<16x128xf32>
    %109 = vector.extract_strided_slice %49 {offsets = [240, 0], sizes = [16, 32], strides = [1, 1]} : vector<400x32xbf16> to vector<16x32xbf16>
    %c480 = arith.constant 480 : index
    %c0_78 = arith.constant 0 : index
    %110 = vector.load %arg4[%c480, %c0_78] : memref<800x128xbf16, #tpu.memory_space<vmem>>, vector<32x128xbf16>
    %cst_79 = arith.constant dense<0.000000e+00> : vector<16x128xf32>
    %111 = tpu.matmul %109, %110, %cst_79 {dimension_numbers = #tpu.dot_dimension_numbers<[1], [0], [0], [1], [0, 0, 1, 1], [], []>} : vector<16x32xbf16>, vector<32x128xbf16>, vector<16x128xf32> -> vector<16x128xf32>
    %112 = arith.addf %108, %111 : vector<16x128xf32>
    %113 = vector.extract_strided_slice %49 {offsets = [256, 0], sizes = [16, 32], strides = [1, 1]} : vector<400x32xbf16> to vector<16x32xbf16>
    %c512 = arith.constant 512 : index
    %c0_80 = arith.constant 0 : index
    %114 = vector.load %arg4[%c512, %c0_80] : memref<800x128xbf16, #tpu.memory_space<vmem>>, vector<32x128xbf16>
    %cst_81 = arith.constant dense<0.000000e+00> : vector<16x128xf32>
    %115 = tpu.matmul %113, %114, %cst_81 {dimension_numbers = #tpu.dot_dimension_numbers<[1], [0], [0], [1], [0, 0, 1, 1], [], []>} : vector<16x32xbf16>, vector<32x128xbf16>, vector<16x128xf32> -> vector<16x128xf32>
    %116 = arith.addf %112, %115 : vector<16x128xf32>
    %117 = vector.extract_strided_slice %49 {offsets = [272, 0], sizes = [16, 32], strides = [1, 1]} : vector<400x32xbf16> to vector<16x32xbf16>
    %c544 = arith.constant 544 : index
    %c0_82 = arith.constant 0 : index
    %118 = vector.load %arg4[%c544, %c0_82] : memref<800x128xbf16, #tpu.memory_space<vmem>>, vector<32x128xbf16>
    %cst_83 = arith.constant dense<0.000000e+00> : vector<16x128xf32>
    %119 = tpu.matmul %117, %118, %cst_83 {dimension_numbers = #tpu.dot_dimension_numbers<[1], [0], [0], [1], [0, 0, 1, 1], [], []>} : vector<16x32xbf16>, vector<32x128xbf16>, vector<16x128xf32> -> vector<16x128xf32>
    %120 = arith.addf %116, %119 : vector<16x128xf32>
    %121 = vector.extract_strided_slice %49 {offsets = [288, 0], sizes = [16, 32], strides = [1, 1]} : vector<400x32xbf16> to vector<16x32xbf16>
    %c576 = arith.constant 576 : index
    %c0_84 = arith.constant 0 : index
    %122 = vector.load %arg4[%c576, %c0_84] : memref<800x128xbf16, #tpu.memory_space<vmem>>, vector<32x128xbf16>
    %cst_85 = arith.constant dense<0.000000e+00> : vector<16x128xf32>
    %123 = tpu.matmul %121, %122, %cst_85 {dimension_numbers = #tpu.dot_dimension_numbers<[1], [0], [0], [1], [0, 0, 1, 1], [], []>} : vector<16x32xbf16>, vector<32x128xbf16>, vector<16x128xf32> -> vector<16x128xf32>
    %124 = arith.addf %120, %123 : vector<16x128xf32>
    %125 = vector.extract_strided_slice %49 {offsets = [304, 0], sizes = [16, 32], strides = [1, 1]} : vector<400x32xbf16> to vector<16x32xbf16>
    %c608 = arith.constant 608 : index
    %c0_86 = arith.constant 0 : index
    %126 = vector.load %arg4[%c608, %c0_86] : memref<800x128xbf16, #tpu.memory_space<vmem>>, vector<32x128xbf16>
    %cst_87 = arith.constant dense<0.000000e+00> : vector<16x128xf32>
    %127 = tpu.matmul %125, %126, %cst_87 {dimension_numbers = #tpu.dot_dimension_numbers<[1], [0], [0], [1], [0, 0, 1, 1], [], []>} : vector<16x32xbf16>, vector<32x128xbf16>, vector<16x128xf32> -> vector<16x128xf32>
    %128 = arith.addf %124, %127 : vector<16x128xf32>
    %129 = vector.extract_strided_slice %49 {offsets = [320, 0], sizes = [16, 32], strides = [1, 1]} : vector<400x32xbf16> to vector<16x32xbf16>
    %c640 = arith.constant 640 : index
    %c0_88 = arith.constant 0 : index
    %130 = vector.load %arg4[%c640, %c0_88] : memref<800x128xbf16, #tpu.memory_space<vmem>>, vector<32x128xbf16>
    %cst_89 = arith.constant dense<0.000000e+00> : vector<16x128xf32>
    %131 = tpu.matmul %129, %130, %cst_89 {dimension_numbers = #tpu.dot_dimension_numbers<[1], [0], [0], [1], [0, 0, 1, 1], [], []>} : vector<16x32xbf16>, vector<32x128xbf16>, vector<16x128xf32> -> vector<16x128xf32>
    %132 = arith.addf %128, %131 : vector<16x128xf32>
    %133 = vector.extract_strided_slice %49 {offsets = [336, 0], sizes = [16, 32], strides = [1, 1]} : vector<400x32xbf16> to vector<16x32xbf16>
    %c672 = arith.constant 672 : index
    %c0_90 = arith.constant 0 : index
    %134 = vector.load %arg4[%c672, %c0_90] : memref<800x128xbf16, #tpu.memory_space<vmem>>, vector<32x128xbf16>
    %cst_91 = arith.constant dense<0.000000e+00> : vector<16x128xf32>
    %135 = tpu.matmul %133, %134, %cst_91 {dimension_numbers = #tpu.dot_dimension_numbers<[1], [0], [0], [1], [0, 0, 1, 1], [], []>} : vector<16x32xbf16>, vector<32x128xbf16>, vector<16x128xf32> -> vector<16x128xf32>
    %136 = arith.addf %132, %135 : vector<16x128xf32>
    %137 = vector.extract_strided_slice %49 {offsets = [352, 0], sizes = [16, 32], strides = [1, 1]} : vector<400x32xbf16> to vector<16x32xbf16>
    %c704 = arith.constant 704 : index
    %c0_92 = arith.constant 0 : index
    %138 = vector.load %arg4[%c704, %c0_92] : memref<800x128xbf16, #tpu.memory_space<vmem>>, vector<32x128xbf16>
    %cst_93 = arith.constant dense<0.000000e+00> : vector<16x128xf32>
    %139 = tpu.matmul %137, %138, %cst_93 {dimension_numbers = #tpu.dot_dimension_numbers<[1], [0], [0], [1], [0, 0, 1, 1], [], []>} : vector<16x32xbf16>, vector<32x128xbf16>, vector<16x128xf32> -> vector<16x128xf32>
    %140 = arith.addf %136, %139 : vector<16x128xf32>
    %141 = vector.extract_strided_slice %49 {offsets = [368, 0], sizes = [16, 32], strides = [1, 1]} : vector<400x32xbf16> to vector<16x32xbf16>
    %c736 = arith.constant 736 : index
    %c0_94 = arith.constant 0 : index
    %142 = vector.load %arg4[%c736, %c0_94] : memref<800x128xbf16, #tpu.memory_space<vmem>>, vector<32x128xbf16>
    %cst_95 = arith.constant dense<0.000000e+00> : vector<16x128xf32>
    %143 = tpu.matmul %141, %142, %cst_95 {dimension_numbers = #tpu.dot_dimension_numbers<[1], [0], [0], [1], [0, 0, 1, 1], [], []>} : vector<16x32xbf16>, vector<32x128xbf16>, vector<16x128xf32> -> vector<16x128xf32>
    %144 = arith.addf %140, %143 : vector<16x128xf32>
    %145 = vector.extract_strided_slice %49 {offsets = [384, 0], sizes = [16, 32], strides = [1, 1]} : vector<400x32xbf16> to vector<16x32xbf16>
    %c768 = arith.constant 768 : index
    %c0_96 = arith.constant 0 : index
    %146 = vector.load %arg4[%c768, %c0_96] : memref<800x128xbf16, #tpu.memory_space<vmem>>, vector<32x128xbf16>
    %cst_97 = arith.constant dense<0.000000e+00> : vector<16x128xf32>
    %147 = tpu.matmul %145, %146, %cst_97 {dimension_numbers = #tpu.dot_dimension_numbers<[1], [0], [0], [1], [0, 0, 1, 1], [], []>} : vector<16x32xbf16>, vector<32x128xbf16>, vector<16x128xf32> -> vector<16x128xf32>
    %148 = arith.addf %144, %147 : vector<16x128xf32>
    %c0_98 = arith.constant 0 : index
    %c0_99 = arith.constant 0 : index
    %149 = vector.load %arg5[%c0_98, %c0_99] : memref<1x128xf32, #tpu.memory_space<vmem>>, vector<1x128xf32>
    %150 = vector.broadcast %149 : vector<1x128xf32> to vector<16x128xf32>
    %151 = arith.addf %148, %150 : vector<16x128xf32>
    %c0_100 = arith.constant 0 : index
    %c0_101 = arith.constant 0 : index
    %152 = vector.load %arg6[%c0_100, %c0_101] : memref<16x128xf32, #tpu.memory_space<vmem>>, vector<16x128xf32>
    tpu.vector_store %arg6[%c0_100, %c0_101], %151 {strides = array<i32>} : memref<16x128xf32, #tpu.memory_space<vmem>>, vector<16x128xf32>,
    return
  }
  func.func @transform_0(%arg0: i32) -> (i32, i32, i32) {
    %c0_i32 = arith.constant 0 : i32
    %c0_i32_0 = arith.constant 0 : i32
    %c0_i32_1 = arith.constant 0 : i32
    return %c0_i32, %arg0, %c0_i32_0 : i32, i32, i32
  }
  func.func @transform_1(%arg0: i32) -> (i32, i32) {
    %c0_i32 = arith.constant 0 : i32
    %c0_i32_0 = arith.constant 0 : i32
    %c0_i32_1 = arith.constant 0 : i32
    return %c0_i32, %c0_i32_0 : i32, i32
  }
  func.func @transform_2(%arg0: i32) -> (i32, i32) {
    %c0_i32 = arith.constant 0 : i32
    %c0_i32_0 = arith.constant 0 : i32
    %c0_i32_1 = arith.constant 0 : i32
    return %c0_i32, %c0_i32_0 : i32, i32
  }
  func.func @transform_3(%arg0: i32) -> (i32, i32) {
    %c0_i32 = arith.constant 0 : i32
    %c0_i32_0 = arith.constant 0 : i32
    %c0_i32_1 = arith.constant 0 : i32
    return %c0_i32, %c0_i32_0 : i32, i32
  }
  func.func @transform_4(%arg0: i32) -> (i32, i32) {
    %c0_i32 = arith.constant 0 : i32
    %c0_i32_0 = arith.constant 0 : i32
    %c0_i32_1 = arith.constant 0 : i32
    return %c0_i32, %c0_i32_0 : i32, i32
  }
  func.func @transform_5(%arg0: i32) -> (i32, i32) {
    %c0_i32 = arith.constant 0 : i32
    %c0_i32_0 = arith.constant 0 : i32
    return %arg0, %c0_i32 : i32, i32
  }
}

</mosaic_0001>

<bundles_post_ra>
// kernel: model_forward.1
= control target key start
LH: loop header
LB: loop body
LE: loop exit
PB: predicated region body
PF: predicated region fallthrough
CT: control target
= control target key end

     0   :  { %v12794_v0 = vmov 0.0   ;;  %vm9193_vm0 = vmmov 0   ;;  %vm220_vm1 = vcmask 392192   ;;  %vm4953_vm2 = vcmask 261120   ;;  %s12785_s1 = inlined_call_operand.vmem [shape: bf16[48,32], index: 1, kind: input, shape index: {}]   ;;  %s12786_s0 = inlined_call_operand.vmem [shape: bf16[9,400,48], index: 0, kind: input, shape index: {}]   ;;  %s12787_s3 = inlined_call_operand.vmem [shape: bf16[800,128], index: 3, kind: input, shape index: {}]   ;;  %s12788_s2 = inlined_call_operand.vmem [shape: f32[1,32], index: 2, kind: input, shape index: {}]   ;;  %s12789_s4 = inlined_call_operand.vmem [shape: f32[1,128], index: 4, kind: input, shape index: {}]   ;;  %s12790_s5 = inlined_call_operand.vmem [shape: f32[16,128], index: 5, kind: output, shape index: {}]  }
   0x1   :  { %7752 = vmatprep.subr.bf16.mxu0 %v12794_v0  ;;  %7858 = vmatprep.subr.bf16.mxu1 %v12794_v0  ;;  %v8908_v1 = vld [vmem:[%s12785_s1 + $0x10] sm:$0xff]   ;;  %v8909_v2 = vld [vmem:[%s12785_s1 + $0x8] sm:$0xff]   ;;  %v8910_v3 = vld [vmem:[%s12785_s1] sm:$0xff]  }
   0x2   :  { %7758 = vmatprep.mubr.msk.bf16.mxu0 %vm9193_vm0, %v12794_v0  ;;  %7864 = vmatprep.mubr.msk.bf16.mxu1 %vm9193_vm0, %v12794_v0  ;;  %v8911_v4 = vld [vmem:[%s12786_s0] sm:$0xff]   ;;  %v8912_v5 = vld [vmem:[%s12786_s0 + $0xc8] sm:$0xff]   ;;  %v8914_v7 = vld [vmem:[%s12786_s0 + $0xd0] sm:$0xff]  }
   0x3   :  { %7753 = vmatpush3.bf16.msra.mxu0 %v8908_v1  ;;  %7859 = vmatpush3.bf16.msra.mxu1 %v8908_v1  ;;  %v8913_v6 = vld [vmem:[%s12786_s0 + $0x8] sm:$0xff]   ;;  %v8915_v8 = vld [vmem:[%s12786_s0 + $0x10] sm:$0xff]   ;;  %v8916_v9 = vld [vmem:[%s12786_s0 + $0xd8] sm:$0xff]  }
   0x4   :  { %7754 = vmatprep.subr.bf16.mxu0 %v12794_v0  ;;  %7860 = vmatprep.subr.bf16.mxu1 %v12794_v0  ;;  %v8917_v10 = vld [vmem:[%s12786_s0 + $0x18] sm:$0xff]   ;;  %v8918_v11 = vld [vmem:[%s12786_s0 + $0xe0] sm:$0xff]   ;;  %v8920_v13 = vld [vmem:[%s12786_s0 + $0xe8] sm:$0xff]  }
   0x5   :  { %v8919_v12 = vld [vmem:[%s12786_s0 + $0x20] sm:$0xff]   ;;  %v8921_v14 = vld [vmem:[%s12786_s0 + $0x28] sm:$0xff]   ;;  %v8922_v15 = vld [vmem:[%s12786_s0 + $0xf0] sm:$0xff]  }
   0x6   :  { %v8923_v16 = vld [vmem:[%s12786_s0 + $0x30] sm:$0xff]   ;;  %v8924_v17 = vld [vmem:[%s12786_s0 + $0xf8] sm:$0xff]   ;;  %v8926_v19 = vld [vmem:[%s12786_s0 + $0x100] sm:$0xff]  }
   0x7   :  { %7755 = vmatpush3.bf16.msra.mxu0 %v8909_v2  ;;  %7861 = vmatpush3.bf16.msra.mxu1 %v8909_v2  ;;  %v8925_v18 = vld [vmem:[%s12786_s0 + $0x38] sm:$0xff]   ;;  %v8927_v20 = vld [vmem:[%s12786_s0 + $0x40] sm:$0xff]   ;;  %v8928_v21 = vld [vmem:[%s12786_s0 + $0x108] sm:$0xff]  }
   0x8   :  { %7756 = vmatprep.subr.bf16.mxu0 %v12794_v0  ;;  %7862 = vmatprep.subr.bf16.mxu1 %v12794_v0  ;;  %v8929_v22 = vld [vmem:[%s12786_s0 + $0x48] sm:$0xff]   ;;  %v8930_v23 = vld [vmem:[%s12786_s0 + $0x110] sm:$0xff]   ;;  %v8932_v25 = vld [vmem:[%s12786_s0 + $0x118] sm:$0xff]  }
   0x9   :  { %v8931_v24 = vld [vmem:[%s12786_s0 + $0x50] sm:$0xff]   ;;  %v8933_v26 = vld [vmem:[%s12786_s0 + $0x58] sm:$0xff]   ;;  %v8934_v27 = vld [vmem:[%s12786_s0 + $0x120] sm:$0xff]  }
   0xa   :  { %v8935_v28 = vld [vmem:[%s12786_s0 + $0x60] sm:$0xff]   ;;  %v8936_v29 = vld [vmem:[%s12786_s0 + $0x128] sm:$0xff]   ;;  %v8938_v31 = vld [vmem:[%s12786_s0 + $0x130] sm:$0xff]  }
   0xb   :  { %7757 = vmatpush3.bf16.msra.mxu0 %v8910_v3  ;;  %7863 = vmatpush3.bf16.msra.mxu1 %v8910_v3  ;;  %v8937_v30 = vld [vmem:[%s12786_s0 + $0x68] sm:$0xff]   ;;  %v8939_v32 = vld [vmem:[%s12786_s0 + $0x70] sm:$0xff]   ;;  %v8940_v33 = vld [vmem:[%s12786_s0 + $0x138] sm:$0xff]  }
   0xc   :  { %7964 = vmatprep.subr.bf16.mxu0 %v12794_v0  ;;  %8070 = vmatprep.subr.bf16.mxu1 %v12794_v0  ;;  %v8941_v34 = vld [vmem:[%s12786_s0 + $0x78] sm:$0xff]   ;;  %v8942_v35 = vld [vmem:[%s12786_s0 + $0x140] sm:$0xff]   ;;  %v8944_v37 = vld [vmem:[%s12786_s0 + $0x148] sm:$0xff]  }
   0xd   :  { %v8943_v36 = vld [vmem:[%s12786_s0 + $0x80] sm:$0xff]   ;;  %v8945_v38 = vld [vmem:[%s12786_s0 + $0x88] sm:$0xff]   ;;  %v8946_v39 = vld [vmem:[%s12786_s0 + $0x150] sm:$0xff]  }
   0xe   :  { %7759 = vmatmul.mubr.msk.bf16.vlgmr.msra.gmra.mxu0 %vm220_vm1, %v8911_v4  ;;  %7865 = vmatmul.mubr.msk.bf16.vlgmr.msra.gmra.mxu1 %vm220_vm1, %v8912_v5  ;;  %v8947_v40 = vld [vmem:[%s12786_s0 + $0x90] sm:$0xff]   ;;  %v8948_v41 = vld [vmem:[%s12786_s0 + $0x158] sm:$0xff]   ;;  %v8950_v43 = vld [vmem:[%s12786_s0 + $0x160] sm:$0xff]  }
   0xf   :  { %7965 = vmatpush3.bf16.msra.mxu0 %v8908_v1  ;;  %7762 = vmatprep.mubr.msk.bf16.mxu0 %vm9193_vm0, %v12794_v0  ;;  %v8949_v42 = vld [vmem:[%s12786_s0 + $0x98] sm:$0xff]   ;;  %v8951_v44 = vld [vmem:[%s12786_s0 + $0xa0] sm:$0xff]   ;;  %v8952_v45 = vld [vmem:[%s12786_s0 + $0x168] sm:$0xff]  }
  0x10   :  { %7868 = vmatprep.mubr.msk.bf16.mxu1 %vm9193_vm0, %v12794_v0  ;;  %7966 = vmatprep.subr.bf16.mxu0 %v12794_v0  ;;  %v8953_v46 = vld [vmem:[%s12786_s0 + $0xa8] sm:$0xff]   ;;  %v8954_v47 = vld [vmem:[%s12786_s0 + $0x170] sm:$0xff]   ;;  %v8956_v49 = vld [vmem:[%s12786_s0 + $0x178] sm:$0xff]  }
  0x11   :  { %8071 = vmatpush3.bf16.msra.mxu1 %v8908_v1  ;;  %v8955_v48 = vld [vmem:[%s12786_s0 + $0xb0] sm:$0xff]   ;;  %v8957_v50 = vld [vmem:[%s12786_s0 + $0xb8] sm:$0xff]   ;;  %v8958_v51 = vld [vmem:[%s12786_s0 + $0x180] sm:$0xff]  }
  0x12   :  { %8072 = vmatprep.subr.bf16.mxu1 %v12794_v0  ;;  %v8959_v52 = vld [vmem:[%s12786_s0 + $0xc0] sm:$0xff]   ;;  %v8960_v53 = vld [vmem:[%s12786_s0 + $0x188] sm:$0xff]   ;;  %v8961_v61 = vld [vmem:[%s12786_s0 + $0x190] sm:$0xff]  }
  0x13   :  { %7967 = vmatpush3.bf16.msra.mxu0 %v8909_v2  ;;  %v8962_v62 = vld [vmem:[%s12786_s0 + $0x258] sm:$0xff]  }
  0x14   :  { %7968 = vmatprep.subr.bf16.mxu0 %v12794_v0 }
  0x15   :  { %8073 = vmatpush3.bf16.msra.mxu1 %v8909_v2 }
  0x16   :  { %7763 = vmatmul.mubr.msk.bf16.gmra.mxu0 %vm220_vm1, %v8913_v6  ;;  %7869 = vmatmul.mubr.msk.bf16.gmra.mxu1 %vm220_vm1, %v8914_v7  ;;  %v9580_v6 = vld [vmem:[%s12785_s1 + $0x10] sm:$0xff]  }
  0x17   :  { %7766 = vmatprep.mubr.msk.bf16.mxu0 %vm9193_vm0, %v12794_v0  ;;  %7872 = vmatprep.mubr.msk.bf16.mxu1 %vm9193_vm0, %v12794_v0 }
  0x18   :  { %7969 = vmatpush3.bf16.msra.mxu0 %v8910_v3  ;;  %8074 = vmatprep.subr.bf16.mxu1 %v12794_v0 }
  0x19   :  { %8075 = vmatpush3.bf16.msra.mxu1 %v8910_v3  ;;  %8176 = vmatprep.subr.bf16.mxu0 %v12794_v0 }
  0x1a   :  { %8282 = vmatprep.subr.bf16.mxu1 %v12794_v0 }
  0x1e   :  { %7767 = vmatmul.mubr.msk.bf16.gmra.mxu0 %vm220_vm1, %v8915_v8  ;;  %7873 = vmatmul.mubr.msk.bf16.gmra.mxu1 %vm220_vm1, %v8916_v9 }
  0x1f   :  { %7770 = vmatprep.mubr.msk.bf16.mxu0 %vm9193_vm0, %v12794_v0  ;;  %7876 = vmatprep.mubr.msk.bf16.mxu1 %vm9193_vm0, %v12794_v0 }
  0x26   :  { %7771 = vmatmul.mubr.msk.bf16.gmra.mxu0 %vm220_vm1, %v8917_v10  ;;  %7877 = vmatmul.mubr.msk.bf16.gmra.mxu1 %vm220_vm1, %v8918_v11  ;;  %v8963_v11 = vld [vmem:[%s12786_s0 + $0x198] sm:$0xff]  }
  0x27   :  { %7774 = vmatprep.mubr.msk.bf16.mxu0 %vm9193_vm0, %v12794_v0  ;;  %7880 = vmatprep.mubr.msk.bf16.mxu1 %vm9193_vm0, %v12794_v0 }
  0x2e   :  { %7775 = vmatmul.mubr.msk.bf16.gmra.mxu0 %vm220_vm1, %v8919_v12  ;;  %7881 = vmatmul.mubr.msk.bf16.gmra.mxu1 %vm220_vm1, %v8920_v13  ;;  %v8964_v12 = vld [vmem:[%s12786_s0 + $0x260] sm:$0xff]  }
  0x2f   :  { %7778 = vmatprep.mubr.msk.bf16.mxu0 %vm9193_vm0, %v12794_v0  ;;  %7884 = vmatprep.mubr.msk.bf16.mxu1 %vm9193_vm0, %v12794_v0 }
  0x36   :  { %7779 = vmatmul.mubr.msk.bf16.gmra.mxu0 %vm220_vm1, %v8921_v14  ;;  %7885 = vmatmul.mubr.msk.bf16.gmra.mxu1 %vm220_vm1, %v8922_v15  ;;  %v9605_v14 = vld [vmem:[%s12785_s1 + $0x8] sm:$0xff]  }
  0x37   :  { %7782 = vmatprep.mubr.msk.bf16.mxu0 %vm9193_vm0, %v12794_v0  ;;  %7888 = vmatprep.mubr.msk.bf16.mxu1 %vm9193_vm0, %v12794_v0 }
  0x3e   :  { %7783 = vmatmul.mubr.msk.bf16.gmra.mxu0 %vm220_vm1, %v8923_v16  ;;  %7889 = vmatmul.mubr.msk.bf16.gmra.mxu1 %vm220_vm1, %v8924_v17 }
  0x3f   :  { %7786 = vmatprep.mubr.msk.bf16.mxu0 %vm9193_vm0, %v12794_v0  ;;  %7892 = vmatprep.mubr.msk.bf16.mxu1 %vm9193_vm0, %v12794_v0 }
  0x46   :  { %7787 = vmatmul.mubr.msk.bf16.gmra.mxu0 %vm220_vm1, %v8925_v18  ;;  %7893 = vmatmul.mubr.msk.bf16.gmra.mxu1 %vm220_vm1, %v8926_v19 }
  0x47   :  { %7790 = vmatprep.mubr.msk.bf16.mxu0 %vm9193_vm0, %v12794_v0  ;;  %7896 = vmatprep.mubr.msk.bf16.mxu1 %vm9193_vm0, %v12794_v0 }
  0x4e   :  { %7791 = vmatmul.mubr.msk.bf16.gmra.mxu0 %vm220_vm1, %v8927_v20  ;;  %7897 = vmatmul.mubr.msk.bf16.gmra.mxu1 %vm220_vm1, %v8928_v21 }
  0x4f   :  { %7794 = vmatprep.mubr.msk.bf16.mxu0 %vm9193_vm0, %v12794_v0  ;;  %7900 = vmatprep.mubr.msk.bf16.mxu1 %vm9193_vm0, %v12794_v0 }
  0x56   :  { %7795 = vmatmul.mubr.msk.bf16.gmra.mxu0 %vm220_vm1, %v8929_v22  ;;  %7901 = vmatmul.mubr.msk.bf16.gmra.mxu1 %vm220_vm1, %v8930_v23  ;;  %v9625_v22 = vld [vmem:[%s12785_s1] sm:$0xff]  }
  0x57   :  { %7798 = vmatprep.mubr.msk.bf16.mxu0 %vm9193_vm0, %v12794_v0  ;;  %7904 = vmatprep.mubr.msk.bf16.mxu1 %vm9193_vm0, %v12794_v0 }
  0x5e   :  { %7799 = vmatmul.mubr.msk.bf16.gmra.mxu0 %vm220_vm1, %v8931_v24  ;;  %7905 = vmatmul.mubr.msk.bf16.gmra.mxu1 %vm220_vm1, %v8932_v25  ;;  %v8965_v25 = vld [vmem:[%s12786_s0 + $0x1a0] sm:$0xff]  }
  0x5f   :  { %7802 = vmatprep.mubr.msk.bf16.mxu0 %vm9193_vm0, %v12794_v0  ;;  %7908 = vmatprep.mubr.msk.bf16.mxu1 %vm9193_vm0, %v12794_v0 }
  0x66   :  { %7803 = vmatmul.mubr.msk.bf16.gmra.mxu0 %vm220_vm1, %v8933_v26  ;;  %7909 = vmatmul.mubr.msk.bf16.gmra.mxu1 %vm220_vm1, %v8934_v27  ;;  %v8966_v26 = vld [vmem:[%s12786_s0 + $0x268] sm:$0xff]  }
  0x67   :  { %7806 = vmatprep.mubr.msk.bf16.mxu0 %vm9193_vm0, %v12794_v0  ;;  %7912 = vmatprep.mubr.msk.bf16.mxu1 %vm9193_vm0, %v12794_v0 }
  0x6e   :  { %7807 = vmatmul.mubr.msk.bf16.gmra.mxu0 %vm220_vm1, %v8935_v28  ;;  %7913 = vmatmul.mubr.msk.bf16.gmra.mxu1 %vm220_vm1, %v8936_v29 }
  0x6f   :  { %7810 = vmatprep.mubr.msk.bf16.mxu0 %vm9193_vm0, %v12794_v0  ;;  %7916 = vmatprep.mubr.msk.bf16.mxu1 %vm9193_vm0, %v12794_v0 }
  0x76   :  { %7811 = vmatmul.mubr.msk.bf16.gmra.mxu0 %vm220_vm1, %v8937_v30  ;;  %7917 = vmatmul.mubr.msk.bf16.gmra.mxu1 %vm220_vm1, %v8938_v31 }
  0x77   :  { %7814 = vmatprep.mubr.msk.bf16.mxu0 %vm9193_vm0, %v12794_v0  ;;  %7920 = vmatprep.mubr.msk.bf16.mxu1 %vm9193_vm0, %v12794_v0 }
  0x7e   :  { %7815 = vmatmul.mubr.msk.bf16.gmra.mxu0 %vm220_vm1, %v8939_v32  ;;  %7921 = vmatmul.mubr.msk.bf16.gmra.mxu1 %vm220_vm1, %v8940_v33 }
  0x7f   :  { %7818 = vmatprep.mubr.msk.bf16.mxu0 %vm9193_vm0, %v12794_v0  ;;  %7924 = vmatprep.mubr.msk.bf16.mxu1 %vm9193_vm0, %v12794_v0 }
  0x86   :  { %7819 = vmatmul.mubr.msk.bf16.gmra.mxu0 %vm220_vm1, %v8941_v34  ;;  %7925 = vmatmul.mubr.msk.bf16.gmra.mxu1 %vm220_vm1, %v8942_v35 }
  0x87   :  { %7822 = vmatprep.mubr.msk.bf16.mxu0 %vm9193_vm0, %v12794_v0  ;;  %7928 = vmatprep.mubr.msk.bf16.mxu1 %vm9193_vm0, %v12794_v0 }
  0x8e   :  { %7823 = vmatmul.mubr.msk.bf16.gmra.mxu0 %vm220_vm1, %v8943_v36  ;;  %7929 = vmatmul.mubr.msk.bf16.gmra.mxu1 %vm220_vm1, %v8944_v37  ;;  %v8967_v37 = vld [vmem:[%s12786_s0 + $0x1a8] sm:$0xff]  }
  0x8f   :  { %7826 = vmatprep.mubr.msk.bf16.mxu0 %vm9193_vm0, %v12794_v0  ;;  %7932 = vmatprep.mubr.msk.bf16.mxu1 %vm9193_vm0, %v12794_v0 }
  0x96   :  { %7827 = vmatmul.mubr.msk.bf16.gmra.mxu0 %vm220_vm1, %v8945_v38  ;;  %7933 = vmatmul.mubr.msk.bf16.gmra.mxu1 %vm220_vm1, %v8946_v39  ;;  %v8968_v38 = vld [vmem:[%s12786_s0 + $0x270] sm:$0xff]  }
  0x97   :  { %7830 = vmatprep.mubr.msk.bf16.mxu0 %vm9193_vm0, %v12794_v0  ;;  %7936 = vmatprep.mubr.msk.bf16.mxu1 %vm9193_vm0, %v12794_v0 }
  0x9e   :  { %7831 = vmatmul.mubr.msk.bf16.gmra.mxu0 %vm220_vm1, %v8947_v40  ;;  %7937 = vmatmul.mubr.msk.bf16.gmra.mxu1 %vm220_vm1, %v8948_v41 }
  0x9f   :  { %7834 = vmatprep.mubr.msk.bf16.mxu0 %vm9193_vm0, %v12794_v0  ;;  %7940 = vmatprep.mubr.msk.bf16.mxu1 %vm9193_vm0, %v12794_v0 }
  0xa6   :  { %7835 = vmatmul.mubr.msk.bf16.gmra.mxu0 %vm220_vm1, %v8949_v42  ;;  %7941 = vmatmul.mubr.msk.bf16.gmra.mxu1 %vm220_vm1, %v8950_v43 }
  0xa7   :  { %7838 = vmatprep.mubr.msk.bf16.mxu0 %vm9193_vm0, %v12794_v0  ;;  %7944 = vmatprep.mubr.msk.bf16.mxu1 %vm9193_vm0, %v12794_v0 }
  0xae   :  { %7839 = vmatmul.mubr.msk.bf16.gmra.mxu0 %vm220_vm1, %v8951_v44  ;;  %7945 = vmatmul.mubr.msk.bf16.gmra.mxu1 %vm220_vm1, %v8952_v45 }
  0xaf   :  { %7842 = vmatprep.mubr.msk.bf16.mxu0 %vm9193_vm0, %v12794_v0  ;;  %7948 = vmatprep.mubr.msk.bf16.mxu1 %vm9193_vm0, %v12794_v0 }
  0xb6   :  { %7843 = vmatmul.mubr.msk.bf16.gmra.mxu0 %vm220_vm1, %v8953_v46  ;;  %7949 = vmatmul.mubr.msk.bf16.gmra.mxu1 %vm220_vm1, %v8954_v47 }
  0xb7   :  { %7846 = vmatprep.mubr.msk.bf16.mxu0 %vm9193_vm0, %v12794_v0  ;;  %7952 = vmatprep.mubr.msk.bf16.mxu1 %vm9193_vm0, %v12794_v0 }
  0xbe   :  { %7847 = vmatmul.mubr.msk.bf16.gmra.mxu0 %vm220_vm1, %v8955_v48  ;;  %7953 = vmatmul.mubr.msk.bf16.gmra.mxu1 %vm220_vm1, %v8956_v49  ;;  %v8969_v49 = vld [vmem:[%s12786_s0 + $0x1b0] sm:$0xff]  }
  0xbf   :  { %7850 = vmatprep.mubr.msk.bf16.mxu0 %vm9193_vm0, %v12794_v0  ;;  %7956 = vmatprep.mubr.msk.bf16.mxu1 %vm9193_vm0, %v12794_v0 }
  0xc6   :  { %7851 = vmatmul.mubr.msk.bf16.gmra.mxu0 %vm220_vm1, %v8957_v50  ;;  %7957 = vmatmul.mubr.msk.bf16.gmra.mxu1 %vm220_vm1, %v8958_v51  ;;  %v8970_v50 = vld [vmem:[%s12786_s0 + $0x278] sm:$0xff]  }
  0xc7   :  { %7854 = vmatprep.mubr.msk.bf16.mxu0 %vm9193_vm0, %v12794_v0  ;;  %7960 = vmatprep.mubr.msk.bf16.mxu1 %vm9193_vm0, %v12794_v0 }
  0xce   :  { %v9545_v54 = vpop.f32.mrf.mxu0  ;;  %7855 = vmatmul.mubr.msk.bf16.gmra.mxu0 %vm220_vm1, %v8959_v52  ;;  %v9548_v55 = vpop.f32.mrf.mxu1  ;;  %7961 = vmatmul.mubr.msk.bf16.gmra.mxu1 %vm220_vm1, %v8960_v53 }
  0xcf   :  { %7970 = vmatprep.mubr.msk.bf16.mxu0 %vm9193_vm0, %v12794_v0  ;;  %8076 = vmatprep.mubr.msk.bf16.mxu1 %vm9193_vm0, %v12794_v0 }
  0xd0   :  { %v7760_v57 = vpop.f32.mrf.mxu0  ;;  %v7866_v58 = vpop.f32.mrf.mxu1 }
  0xd2   :  { %v9557_v59 = vpop.f32.mrf.mxu0  ;;  %v9559_v60 = vpop.f32.mrf.mxu1 }
  0xd4   :  { %v7761_v1 = vpop.f32.mrf.mxu0  ;;  %v7867_v2 = vpop.f32.mrf.mxu1 }
  0xd6   :  { %v9569_v3 = vpop.f32.mrf.mxu0  ;;  %v9571_v4 = vpop.f32.mrf.mxu1  ;;  %7971 = vmatmul.mubr.msk.bf16.vlgmr.msra.gmra.mxu0 %vm220_vm1, %v8961_v61  ;;  %8077 = vmatmul.mubr.msk.bf16.vlgmr.msra.gmra.mxu1 %vm220_vm1, %v8962_v62 }
  0xd7   :  { %8177 = vmatpush3.bf16.msra.mxu0 %v9580_v6  ;;  %7974 = vmatprep.mubr.msk.bf16.mxu0 %vm9193_vm0, %v12794_v0 }
  0xd8   :  { %v7764_v7 = vpop.f32.mrf.mxu0  ;;  %v7870_v8 = vpop.f32.mrf.mxu1  ;;  %8080 = vmatprep.mubr.msk.bf16.mxu1 %vm9193_vm0, %v12794_v0  ;;  %8178 = vmatprep.subr.bf16.mxu0 %v12794_v0 }
  0xd9   :  { %8283 = vmatpush3.bf16.msra.mxu1 %v9580_v6  ;;  %v8971_v8 = vld [vmem:[%s12786_s0 + $0x1b8] sm:$0xff]  }
  0xda   :  { %v9589_v9 = vpop.f32.mrf.mxu0  ;;  %v9591_v10 = vpop.f32.mrf.mxu1  ;;  %8284 = vmatprep.subr.bf16.mxu1 %v12794_v0 }
  0xdb   :  { %8179 = vmatpush3.bf16.msra.mxu0 %v9605_v14 }
  0xdc   :  { %v7765_v15 = vpop.f32.mrf.mxu0  ;;  %v7871_v16 = vpop.f32.mrf.mxu1  ;;  %8180 = vmatprep.subr.bf16.mxu0 %v12794_v0 }
  0xdd   :  { %8285 = vmatpush3.bf16.msra.mxu1 %v9605_v14 }
  0xde   :  { %v9610_v17 = vpop.f32.mrf.mxu0  ;;  %v9612_v18 = vpop.f32.mrf.mxu1  ;;  %7975 = vmatmul.mubr.msk.bf16.gmra.mxu0 %vm220_vm1, %v8963_v11  ;;  %8081 = vmatmul.mubr.msk.bf16.gmra.mxu1 %vm220_vm1, %v8964_v12  ;;  %v8972_v11 = vld [vmem:[%s12786_s0 + $0x280] sm:$0xff]  }
  0xdf   :  { %7978 = vmatprep.mubr.msk.bf16.mxu0 %vm9193_vm0, %v12794_v0  ;;  %8084 = vmatprep.mubr.msk.bf16.mxu1 %vm9193_vm0, %v12794_v0 }
  0xe0   :  { %v7768_v20 = vpop.f32.mrf.mxu0  ;;  %v7874_v21 = vpop.f32.mrf.mxu1  ;;  %8181 = vmatpush3.bf16.msra.mxu0 %v9625_v22  ;;  %8286 = vmatprep.subr.bf16.mxu1 %v12794_v0 }
  0xe1   :  { %8287 = vmatpush3.bf16.msra.mxu1 %v9625_v22  ;;  %8388 = vmatprep.subr.bf16.mxu0 %v12794_v0 }
  0xe2   :  { %v9631_v23 = vpop.f32.mrf.mxu0  ;;  %v9633_v24 = vpop.f32.mrf.mxu1  ;;  %8494 = vmatprep.subr.bf16.mxu1 %v12794_v0 }
  0xe4   :  { %v7769_v28 = vpop.f32.mrf.mxu0  ;;  %v7875_v29 = vpop.f32.mrf.mxu1 }
  0xe6   :  { %v9644_v30 = vpop.f32.mrf.mxu0  ;;  %v9646_v31 = vpop.f32.mrf.mxu1  ;;  %7979 = vmatmul.mubr.msk.bf16.gmra.mxu0 %vm220_vm1, %v8965_v25  ;;  %8085 = vmatmul.mubr.msk.bf16.gmra.mxu1 %vm220_vm1, %v8966_v26 }
  0xe7   :  { %7982 = vmatprep.mubr.msk.bf16.mxu0 %vm9193_vm0, %v12794_v0  ;;  %8088 = vmatprep.mubr.msk.bf16.mxu1 %vm9193_vm0, %v12794_v0 }
  0xe8   :  { %v7772_v33 = vpop.f32.mrf.mxu0  ;;  %v7878_v34 = vpop.f32.mrf.mxu1 }
  0xe9   :  { %v8973_v34 = vld [vmem:[%s12786_s0 + $0x1c0] sm:$0xff]  }
  0xea   :  { %v9656_v35 = vpop.f32.mrf.mxu0  ;;  %v9658_v36 = vpop.f32.mrf.mxu1 }
  0xec   :  { %v7773_v40 = vpop.f32.mrf.mxu0  ;;  %v7879_v41 = vpop.f32.mrf.mxu1 }
  0xee   :  { %v9668_v42 = vpop.f32.mrf.mxu0  ;;  %v9670_v43 = vpop.f32.mrf.mxu1  ;;  %7983 = vmatmul.mubr.msk.bf16.gmra.mxu0 %vm220_vm1, %v8967_v37  ;;  %8089 = vmatmul.mubr.msk.bf16.gmra.mxu1 %vm220_vm1, %v8968_v38  ;;  %v8974_v37 = vld [vmem:[%s12786_s0 + $0x288] sm:$0xff]  }
  0xef   :  { %7986 = vmatprep.mubr.msk.bf16.mxu0 %vm9193_vm0, %v12794_v0  ;;  %8092 = vmatprep.mubr.msk.bf16.mxu1 %vm9193_vm0, %v12794_v0 }
  0xf0   :  { %v7776_v45 = vpop.f32.mrf.mxu0  ;;  %v7882_v46 = vpop.f32.mrf.mxu1 }
  0xf2   :  { %v9680_v47 = vpop.f32.mrf.mxu0  ;;  %v9682_v48 = vpop.f32.mrf.mxu1 }
  0xf4   :  { %v7777_v52 = vpop.f32.mrf.mxu0  ;;  %v7883_v53 = vpop.f32.mrf.mxu1 }
  0xf6   :  { %v9692_v57 = vpop.f32.mrf.mxu0  ;;  %v9694_v58 = vpop.f32.mrf.mxu1  ;;  %7987 = vmatmul.mubr.msk.bf16.gmra.mxu0 %vm220_vm1, %v8969_v49  ;;  %8093 = vmatmul.mubr.msk.bf16.gmra.mxu1 %vm220_vm1, %v8970_v50 }
  0xf7   :  { %7990 = vmatprep.mubr.msk.bf16.mxu0 %vm9193_vm0, %v12794_v0  ;;  %8096 = vmatprep.mubr.msk.bf16.mxu1 %vm9193_vm0, %v12794_v0 }
  0xf8   :  { %v7780_v62 = vpop.f32.mrf.mxu0  ;;  %v7886_v1 = vpop.f32.mrf.mxu1 }
  0xf9   :  { %v8975_v1 = vld [vmem:[%s12786_s0 + $0x1c8] sm:$0xff]  }
  0xfa   :  { %v9704_v2 = vpop.f32.mrf.mxu0  ;;  %v9706_v7 = vpop.f32.mrf.mxu1 }
  0xfc   :  { %v7781_v15 = vpop.f32.mrf.mxu0  ;;  %v7887_v16 = vpop.f32.mrf.mxu1 }
  0xfe   :  { %v9716_v20 = vpop.f32.mrf.mxu0  ;;  %v9718_v21 = vpop.f32.mrf.mxu1  ;;  %7991 = vmatmul.mubr.msk.bf16.gmra.mxu0 %vm220_vm1, %v8971_v8  ;;  %8097 = vmatmul.mubr.msk.bf16.gmra.mxu1 %vm220_vm1, %v8972_v11  ;;  %v8976_v8 = vld [vmem:[%s12786_s0 + $0x290] sm:$0xff]  }
  0xff   :  { %7994 = vmatprep.mubr.msk.bf16.mxu0 %vm9193_vm0, %v12794_v0  ;;  %8100 = vmatprep.mubr.msk.bf16.mxu1 %vm9193_vm0, %v12794_v0 }
 0x100   :  { %v7784_v26 = vpop.f32.mrf.mxu0  ;;  %v7890_v28 = vpop.f32.mrf.mxu1 }
 0x102   :  { %v9728_v29 = vpop.f32.mrf.mxu0  ;;  %v9730_v33 = vpop.f32.mrf.mxu1 }
 0x104   :  { %v7785_v40 = vpop.f32.mrf.mxu0  ;;  %v7891_v41 = vpop.f32.mrf.mxu1 }
 0x106   :  { %v9740_v45 = vpop.f32.mrf.mxu0  ;;  %v9742_v46 = vpop.f32.mrf.mxu1  ;;  %7995 = vmatmul.mubr.msk.bf16.gmra.mxu0 %vm220_vm1, %v8973_v34  ;;  %8101 = vmatmul.mubr.msk.bf16.gmra.mxu1 %vm220_vm1, %v8974_v37 }
 0x107   :  { %7998 = vmatprep.mubr.msk.bf16.mxu0 %vm9193_vm0, %v12794_v0  ;;  %8104 = vmatprep.mubr.msk.bf16.mxu1 %vm9193_vm0, %v12794_v0 }
 0x108   :  { %v7788_v50 = vpop.f32.mrf.mxu0  ;;  %v7894_v52 = vpop.f32.mrf.mxu1 }
 0x109   :  { %v8977_v52 = vld [vmem:[%s12786_s0 + $0x1d0] sm:$0xff]  }
 0x10a   :  { %v9752_v53 = vpop.f32.mrf.mxu0  ;;  %v9754_v62 = vpop.f32.mrf.mxu1 }
 0x10c   :  { %v7789_v15 = vpop.f32.mrf.mxu0  ;;  %v7895_v16 = vpop.f32.mrf.mxu1 }
 0x10e   :  { %v9764_v26 = vpop.f32.mrf.mxu0  ;;  %v9766_v28 = vpop.f32.mrf.mxu1  ;;  %7999 = vmatmul.mubr.msk.bf16.gmra.mxu0 %vm220_vm1, %v8975_v1  ;;  %8105 = vmatmul.mubr.msk.bf16.gmra.mxu1 %vm220_vm1, %v8976_v8  ;;  %v8978_v1 = vld [vmem:[%s12786_s0 + $0x298] sm:$0xff]  }
 0x10f   :  { %8002 = vmatprep.mubr.msk.bf16.mxu0 %vm9193_vm0, %v12794_v0  ;;  %8108 = vmatprep.mubr.msk.bf16.mxu1 %vm9193_vm0, %v12794_v0 }
 0x110   :  { %v7792_v37 = vpop.f32.mrf.mxu0  ;;  %v7898_v40 = vpop.f32.mrf.mxu1 }
 0x112   :  { %v9776_v41 = vpop.f32.mrf.mxu0  ;;  %v9778_v50 = vpop.f32.mrf.mxu1 }
 0x114   :  { %v7793_v15 = vpop.f32.mrf.mxu0  ;;  %v7899_v16 = vpop.f32.mrf.mxu1 }
 0x116   :  { %v9788_v34 = vpop.f32.mrf.mxu0  ;;  %v9790_v37 = vpop.f32.mrf.mxu1  ;;  %8003 = vmatmul.mubr.msk.bf16.gmra.mxu0 %vm220_vm1, %v8977_v52  ;;  %8109 = vmatmul.mubr.msk.bf16.gmra.mxu1 %vm220_vm1, %v8978_v1  ;;  %v8979_v52 = vld [vmem:[%s12786_s0 + $0x1d8] sm:$0xff]   ;;  %v8980_v1 = vld [vmem:[%s12786_s0 + $0x2a0] sm:$0xff]  }
 0x117   :  { %8006 = vmatprep.mubr.msk.bf16.mxu0 %vm9193_vm0, %v12794_v0  ;;  %8112 = vmatprep.mubr.msk.bf16.mxu1 %vm9193_vm0, %v12794_v0 }
 0x118   :  { %v7796_v8 = vpop.f32.mrf.mxu0  ;;  %v7902_v15 = vpop.f32.mrf.mxu1 }
 0x11a   :  { %v9800_v16 = vpop.f32.mrf.mxu0  ;;  %v9802_v11 = vpop.f32.mrf.mxu1 }
 0x11c   :  { %v7797_v49 = vpop.f32.mrf.mxu0  ;;  %v7903_v38 = vpop.f32.mrf.mxu1 }
 0x11e   :  { %v9812_v25 = vpop.f32.mrf.mxu0  ;;  %v9814_v8 = vpop.f32.mrf.mxu1  ;;  %8007 = vmatmul.mubr.msk.bf16.gmra.mxu0 %vm220_vm1, %v8979_v52  ;;  %8113 = vmatmul.mubr.msk.bf16.gmra.mxu1 %vm220_vm1, %v8980_v1  ;;  %v8981_v52 = vld [vmem:[%s12786_s0 + $0x1e0] sm:$0xff]   ;;  %v8982_v1 = vld [vmem:[%s12786_s0 + $0x2a8] sm:$0xff]  }
 0x11f   :  { %8010 = vmatprep.mubr.msk.bf16.mxu0 %vm9193_vm0, %v12794_v0  ;;  %8116 = vmatprep.mubr.msk.bf16.mxu1 %vm9193_vm0, %v12794_v0 }
 0x120   :  { %v7800_v40 = vpop.f32.mrf.mxu0  ;;  %v7906_v49 = vpop.f32.mrf.mxu1 }
 0x122   :  { %v9824_v38 = vpop.f32.mrf.mxu0  ;;  %v9826_v12 = vpop.f32.mrf.mxu1 }
 0x124   :  { %v7801_v61 = vpop.f32.mrf.mxu0  ;;  %v7907_v51 = vpop.f32.mrf.mxu1 }
 0x126   :  { %v9836_v44 = vpop.f32.mrf.mxu0  ;;  %v9838_v40 = vpop.f32.mrf.mxu1  ;;  %8011 = vmatmul.mubr.msk.bf16.gmra.mxu0 %vm220_vm1, %v8981_v52  ;;  %8117 = vmatmul.mubr.msk.bf16.gmra.mxu1 %vm220_vm1, %v8982_v1  ;;  %v8983_v52 = vld [vmem:[%s12786_s0 + $0x1e8] sm:$0xff]   ;;  %v8984_v1 = vld [vmem:[%s12786_s0 + $0x2b0] sm:$0xff]  }
 0x127   :  { %8014 = vmatprep.mubr.msk.bf16.mxu0 %vm9193_vm0, %v12794_v0  ;;  %8120 = vmatprep.mubr.msk.bf16.mxu1 %vm9193_vm0, %v12794_v0 }
 0x128   :  { %v7804_v15 = vpop.f32.mrf.mxu0  ;;  %v7910_v61 = vpop.f32.mrf.mxu1 }
 0x12a   :  { %v9848_v51 = vpop.f32.mrf.mxu0  ;;  %v9850_v39 = vpop.f32.mrf.mxu1 }
 0x12c   :  { %v7805_v32 = vpop.f32.mrf.mxu0  ;;  %v7911_v27 = vpop.f32.mrf.mxu1 }
 0x12e   :  { %v9860_v19 = vpop.f32.mrf.mxu0  ;;  %v9862_v15 = vpop.f32.mrf.mxu1  ;;  %8015 = vmatmul.mubr.msk.bf16.gmra.mxu0 %vm220_vm1, %v8983_v52  ;;  %8121 = vmatmul.mubr.msk.bf16.gmra.mxu1 %vm220_vm1, %v8984_v1  ;;  %v8985_v52 = vld [vmem:[%s12786_s0 + $0x1f0] sm:$0xff]   ;;  %v8986_v1 = vld [vmem:[%s12786_s0 + $0x2b8] sm:$0xff]  }
 0x12f   :  { %12998 = vst [vmem:[#allocation2_spill] sm:$0xff] %v9862_v15  ;;  %8018 = vmatprep.mubr.msk.bf16.mxu0 %vm9193_vm0, %v12794_v0  ;;  %8124 = vmatprep.mubr.msk.bf16.mxu1 %vm9193_vm0, %v12794_v0 }
 0x130   :  { %v7808_v49 = vpop.f32.mrf.mxu0  ;;  %v7914_v32 = vpop.f32.mrf.mxu1 }
 0x132   :  { %v9872_v27 = vpop.f32.mrf.mxu0  ;;  %v9874_v13 = vpop.f32.mrf.mxu1 }
 0x133   :  { %12999 = vst [vmem:[#allocation3_spill] sm:$0xff] %v9872_v27  ;;  %13000 = vst [vmem:[#allocation4_spill] sm:$0xff] %v9874_v13  ;;  %v13007_v27 = vmov 0.0  }
 0x134   :  { %v7809_v5 = vpop.f32.mrf.mxu0  ;;  %v7915_v63 = vpop.f32.mrf.mxu1 }
 0x136   :  { %v9884_v56 = vpop.f32.mrf.mxu0  ;;  %v9886_v49 = vpop.f32.mrf.mxu1  ;;  %8019 = vmatmul.mubr.msk.bf16.gmra.mxu0 %vm220_vm1, %v8985_v52  ;;  %8125 = vmatmul.mubr.msk.bf16.gmra.mxu1 %vm220_vm1, %v8986_v1  ;;  %v8987_v52 = vld [vmem:[%s12786_s0 + $0x1f8] sm:$0xff]   ;;  %v8988_v1 = vld [vmem:[%s12786_s0 + $0x2c0] sm:$0xff]  }
 0x137   :  { %13001 = vst [vmem:[#allocation5_spill] sm:$0xff] %v9884_v56  ;;  %13002 = vst [vmem:[#allocation6_spill] sm:$0xff] %v9886_v49  ;;  %8022 = vmatprep.mubr.msk.bf16.mxu0 %vm9193_vm0, %v12794_v0  ;;  %8128 = vmatprep.mubr.msk.bf16.mxu1 %vm9193_vm0, %v12794_v0 }
 0x138   :  { %v7812_v61 = vpop.f32.mrf.mxu0  ;;  %v7918_v5 = vpop.f32.mrf.mxu1 }
 0x13a   :  { %v9896_v63 = vpop.f32.mrf.mxu0  ;;  %v9898_v13 = vpop.f32.mrf.mxu1 }
 0x13b   :  { %13003 = vst [vmem:[#allocation7_spill] sm:$0xff] %v9896_v63  ;;  %13004 = vst [vmem:[#allocation8_spill] sm:$0xff] %v9898_v13 }
 0x13c   :  { %v7813_v49 = vpop.f32.mrf.mxu0  ;;  %v7919_v56 = vpop.f32.mrf.mxu1 }
 0x13e   :  { %v9908_v0 = vpop.f32.mrf.mxu0  ;;  %v9910_v61 = vpop.f32.mrf.mxu1  ;;  %8023 = vmatmul.mubr.msk.bf16.gmra.mxu0 %vm220_vm1, %v8987_v52  ;;  %8129 = vmatmul.mubr.msk.bf16.gmra.mxu1 %vm220_vm1, %v8988_v1  ;;  %v8989_v52 = vld [vmem:[%s12786_s0 + $0x200] sm:$0xff]   ;;  %v8990_v1 = vld [vmem:[%s12786_s0 + $0x2c8] sm:$0xff]  }
 0x13f   :  { %13005 = vst [vmem:[#allocation9_spill] sm:$0xff] %v9908_v0  ;;  %13006 = vst [vmem:[#allocation10_spill] sm:$0xff] %v9910_v61  ;;  %8026 = vmatprep.mubr.msk.bf16.mxu0 %vm9193_vm0, %v13007_v27  ;;  %8132 = vmatprep.mubr.msk.bf16.mxu1 %vm9193_vm0, %v13007_v27 }
 0x140   :  { %v7816_v32 = vpop.f32.mrf.mxu0  ;;  %v7922_v49 = vpop.f32.mrf.mxu1 }
 0x142   :  { %v9920_v56 = vpop.f32.mrf.mxu0  ;;  %v9922_v13 = vpop.f32.mrf.mxu1 }
 0x143   :  { %13008 = vst [vmem:[#allocation11_spill] sm:$0xff] %v9920_v56  ;;  %13009 = vst [vmem:[#allocation12_spill] sm:$0xff] %v9922_v13 }
 0x144   :  { %v7817_v61 = vpop.f32.mrf.mxu0  ;;  %v7923_v0 = vpop.f32.mrf.mxu1 }
 0x146   :  { %v9932_v63 = vpop.f32.mrf.mxu0  ;;  %v9934_v32 = vpop.f32.mrf.mxu1  ;;  %8027 = vmatmul.mubr.msk.bf16.gmra.mxu0 %vm220_vm1, %v8989_v52  ;;  %8133 = vmatmul.mubr.msk.bf16.gmra.mxu1 %vm220_vm1, %v8990_v1  ;;  %v8991_v52 = vld [vmem:[%s12786_s0 + $0x208] sm:$0xff]   ;;  %v8992_v1 = vld [vmem:[%s12786_s0 + $0x2d0] sm:$0xff]  }
 0x147   :  { %13010 = vst [vmem:[#allocation13_spill] sm:$0xff] %v9932_v63  ;;  %13011 = vst [vmem:[#allocation14_spill] sm:$0xff] %v9934_v32  ;;  %8030 = vmatprep.mubr.msk.bf16.mxu0 %vm9193_vm0, %v13007_v27  ;;  %8136 = vmatprep.mubr.msk.bf16.mxu1 %vm9193_vm0, %v13007_v27 }
 0x148   :  { %v7820_v5 = vpop.f32.mrf.mxu0  ;;  %v7926_v61 = vpop.f32.mrf.mxu1 }
 0x14a   :  { %v9944_v0 = vpop.f32.mrf.mxu0  ;;  %v9946_v13 = vpop.f32.mrf.mxu1 }
 0x14b   :  { %13012 = vst [vmem:[#allocation15_spill] sm:$0xff] %v9944_v0  ;;  %13013 = vst [vmem:[#allocation16_spill] sm:$0xff] %v9946_v13 }
 0x14c   :  { %v7821_v32 = vpop.f32.mrf.mxu0  ;;  %v7927_v63 = vpop.f32.mrf.mxu1 }
 0x14e   :  { %v9956_v56 = vpop.f32.mrf.mxu0  ;;  %v9958_v5 = vpop.f32.mrf.mxu1  ;;  %8031 = vmatmul.mubr.msk.bf16.gmra.mxu0 %vm220_vm1, %v8991_v52  ;;  %8137 = vmatmul.mubr.msk.bf16.gmra.mxu1 %vm220_vm1, %v8992_v1  ;;  %v8993_v52 = vld [vmem:[%s12786_s0 + $0x210] sm:$0xff]   ;;  %v8994_v1 = vld [vmem:[%s12786_s0 + $0x2d8] sm:$0xff]  }
 0x14f   :  { %13014 = vst [vmem:[#allocation17_spill] sm:$0xff] %v9956_v56  ;;  %13015 = vst [vmem:[#allocation18_spill] sm:$0xff] %v9958_v5  ;;  %8034 = vmatprep.mubr.msk.bf16.mxu0 %vm9193_vm0, %v13007_v27  ;;  %8140 = vmatprep.mubr.msk.bf16.mxu1 %vm9193_vm0, %v13007_v27 }
 0x150   :  { %v7824_v49 = vpop.f32.mrf.mxu0  ;;  %v7930_v32 = vpop.f32.mrf.mxu1 }
 0x152   :  { %v9968_v63 = vpop.f32.mrf.mxu0  ;;  %v9970_v13 = vpop.f32.mrf.mxu1 }
 0x153   :  { %13016 = vst [vmem:[#allocation19_spill] sm:$0xff] %v9968_v63  ;;  %13017 = vst [vmem:[#allocation20_spill] sm:$0xff] %v9970_v13 }
 0x154   :  { %v7825_v5 = vpop.f32.mrf.mxu0  ;;  %v7931_v56 = vpop.f32.mrf.mxu1 }
 0x156   :  { %v9980_v0 = vpop.f32.mrf.mxu0  ;;  %v9982_v49 = vpop.f32.mrf.mxu1  ;;  %8035 = vmatmul.mubr.msk.bf16.gmra.mxu0 %vm220_vm1, %v8993_v52  ;;  %8141 = vmatmul.mubr.msk.bf16.gmra.mxu1 %vm220_vm1, %v8994_v1  ;;  %v8995_v52 = vld [vmem:[%s12786_s0 + $0x218] sm:$0xff]   ;;  %v8996_v1 = vld [vmem:[%s12786_s0 + $0x2e0] sm:$0xff]  }
 0x157   :  { %13018 = vst [vmem:[#allocation21_spill] sm:$0xff] %v9980_v0  ;;  %13019 = vst [vmem:[#allocation22_spill] sm:$0xff] %v9982_v49  ;;  %8038 = vmatprep.mubr.msk.bf16.mxu0 %vm9193_vm0, %v13007_v27  ;;  %8144 = vmatprep.mubr.msk.bf16.mxu1 %vm9193_vm0, %v13007_v27 }
 0x158   :  { %v7828_v61 = vpop.f32.mrf.mxu0  ;;  %v7934_v5 = vpop.f32.mrf.mxu1 }
 0x15a   :  { %v9992_v56 = vpop.f32.mrf.mxu0  ;;  %v9994_v13 = vpop.f32.mrf.mxu1 }
 0x15b   :  { %13020 = vst [vmem:[#allocation23_spill] sm:$0xff] %v9992_v56  ;;  %13021 = vst [vmem:[#allocation24_spill] sm:$0xff] %v9994_v13 }
 0x15c   :  { %v7829_v49 = vpop.f32.mrf.mxu0  ;;  %v7935_v0 = vpop.f32.mrf.mxu1 }
 0x15e   :  { %v10004_v63 = vpop.f32.mrf.mxu0  ;;  %v10006_v61 = vpop.f32.mrf.mxu1  ;;  %8039 = vmatmul.mubr.msk.bf16.gmra.mxu0 %vm220_vm1, %v8995_v52  ;;  %8145 = vmatmul.mubr.msk.bf16.gmra.mxu1 %vm220_vm1, %v8996_v1  ;;  %v8997_v52 = vld [vmem:[%s12786_s0 + $0x220] sm:$0xff]   ;;  %v8998_v1 = vld [vmem:[%s12786_s0 + $0x2e8] sm:$0xff]  }
 0x15f   :  { %13022 = vst [vmem:[#allocation25_spill] sm:$0xff] %v10004_v63  ;;  %13023 = vst [vmem:[#allocation26_spill] sm:$0xff] %v10006_v61  ;;  %8042 = vmatprep.mubr.msk.bf16.mxu0 %vm9193_vm0, %v13007_v27  ;;  %8148 = vmatprep.mubr.msk.bf16.mxu1 %vm9193_vm0, %v13007_v27 }
 0x160   :  { %v7832_v32 = vpop.f32.mrf.mxu0  ;;  %v7938_v49 = vpop.f32.mrf.mxu1 }
 0x162   :  { %v10016_v0 = vpop.f32.mrf.mxu0  ;;  %v10018_v13 = vpop.f32.mrf.mxu1 }
 0x163   :  { %13024 = vst [vmem:[#allocation27_spill] sm:$0xff] %v10016_v0  ;;  %13025 = vst [vmem:[#allocation28_spill] sm:$0xff] %v10018_v13 }
 0x164   :  { %v7833_v61 = vpop.f32.mrf.mxu0  ;;  %v7939_v63 = vpop.f32.mrf.mxu1 }
 0x166   :  { %v10028_v56 = vpop.f32.mrf.mxu0  ;;  %v10030_v32 = vpop.f32.mrf.mxu1  ;;  %8043 = vmatmul.mubr.msk.bf16.gmra.mxu0 %vm220_vm1, %v8997_v52  ;;  %8149 = vmatmul.mubr.msk.bf16.gmra.mxu1 %vm220_vm1, %v8998_v1  ;;  %v8999_v52 = vld [vmem:[%s12786_s0 + $0x228] sm:$0xff]   ;;  %v9000_v1 = vld [vmem:[%s12786_s0 + $0x2f0] sm:$0xff]  }
 0x167   :  { %13026 = vst [vmem:[#allocation29_spill] sm:$0xff] %v10028_v56  ;;  %13027 = vst [vmem:[#allocation30_spill] sm:$0xff] %v10030_v32  ;;  %8046 = vmatprep.mubr.msk.bf16.mxu0 %vm9193_vm0, %v13007_v27  ;;  %8152 = vmatprep.mubr.msk.bf16.mxu1 %vm9193_vm0, %v13007_v27 }
 0x168   :  { %v7836_v5 = vpop.f32.mrf.mxu0  ;;  %v7942_v61 = vpop.f32.mrf.mxu1 }
 0x16a   :  { %v10040_v63 = vpop.f32.mrf.mxu0  ;;  %v10042_v13 = vpop.f32.mrf.mxu1 }
 0x16b   :  { %13028 = vst [vmem:[#allocation31_spill] sm:$0xff] %v10040_v63  ;;  %13029 = vst [vmem:[#allocation32_spill] sm:$0xff] %v10042_v13 }
 0x16c   :  { %v7837_v32 = vpop.f32.mrf.mxu0  ;;  %v7943_v56 = vpop.f32.mrf.mxu1 }
 0x16e   :  { %v10052_v0 = vpop.f32.mrf.mxu0  ;;  %v10054_v5 = vpop.f32.mrf.mxu1  ;;  %8047 = vmatmul.mubr.msk.bf16.gmra.mxu0 %vm220_vm1, %v8999_v52  ;;  %8153 = vmatmul.mubr.msk.bf16.gmra.mxu1 %vm220_vm1, %v9000_v1  ;;  %v9001_v52 = vld [vmem:[%s12786_s0 + $0x230] sm:$0xff]   ;;  %v9002_v1 = vld [vmem:[%s12786_s0 + $0x2f8] sm:$0xff]  }
 0x16f   :  { %13030 = vst [vmem:[#allocation33_spill] sm:$0xff] %v10052_v0  ;;  %13031 = vst [vmem:[#allocation34_spill] sm:$0xff] %v10054_v5  ;;  %8050 = vmatprep.mubr.msk.bf16.mxu0 %vm9193_vm0, %v13007_v27  ;;  %8156 = vmatprep.mubr.msk.bf16.mxu1 %vm9193_vm0, %v13007_v27 }
 0x170   :  { %v7840_v49 = vpop.f32.mrf.mxu0  ;;  %v7946_v32 = vpop.f32.mrf.mxu1 }
 0x172   :  { %v10064_v56 = vpop.f32.mrf.mxu0  ;;  %v10066_v13 = vpop.f32.mrf.mxu1 }
 0x173   :  { %13032 = vst [vmem:[#allocation35_spill] sm:$0xff] %v10064_v56  ;;  %13033 = vst [vmem:[#allocation36_spill] sm:$0xff] %v10066_v13 }
 0x174   :  { %v7841_v5 = vpop.f32.mrf.mxu0  ;;  %v7947_v0 = vpop.f32.mrf.mxu1 }
 0x176   :  { %v10076_v63 = vpop.f32.mrf.mxu0  ;;  %v10078_v49 = vpop.f32.mrf.mxu1  ;;  %8051 = vmatmul.mubr.msk.bf16.gmra.mxu0 %vm220_vm1, %v9001_v52  ;;  %8157 = vmatmul.mubr.msk.bf16.gmra.mxu1 %vm220_vm1, %v9002_v1  ;;  %v9003_v52 = vld [vmem:[%s12786_s0 + $0x238] sm:$0xff]   ;;  %v9004_v1 = vld [vmem:[%s12786_s0 + $0x300] sm:$0xff]  }
 0x177   :  { %13034 = vst [vmem:[#allocation37_spill] sm:$0xff] %v10076_v63  ;;  %13035 = vst [vmem:[#allocation38_spill] sm:$0xff] %v10078_v49  ;;  %8054 = vmatprep.mubr.msk.bf16.mxu0 %vm9193_vm0, %v13007_v27  ;;  %8160 = vmatprep.mubr.msk.bf16.mxu1 %vm9193_vm0, %v13007_v27 }
 0x178   :  { %v7844_v61 = vpop.f32.mrf.mxu0  ;;  %v7950_v5 = vpop.f32.mrf.mxu1 }
 0x17a   :  { %v10088_v0 = vpop.f32.mrf.mxu0  ;;  %v10090_v13 = vpop.f32.mrf.mxu1 }
 0x17b   :  { %13036 = vst [vmem:[#allocation39_spill] sm:$0xff] %v10088_v0  ;;  %13037 = vst [vmem:[#allocation40_spill] sm:$0xff] %v10090_v13 }
 0x17c   :  { %v7845_v49 = vpop.f32.mrf.mxu0  ;;  %v7951_v63 = vpop.f32.mrf.mxu1 }
 0x17e   :  { %v10100_v56 = vpop.f32.mrf.mxu0  ;;  %v10102_v61 = vpop.f32.mrf.mxu1  ;;  %8055 = vmatmul.mubr.msk.bf16.gmra.mxu0 %vm220_vm1, %v9003_v52  ;;  %8161 = vmatmul.mubr.msk.bf16.gmra.mxu1 %vm220_vm1, %v9004_v1  ;;  %v9005_v52 = vld [vmem:[%s12786_s0 + $0x240] sm:$0xff]   ;;  %v9006_v1 = vld [vmem:[%s12786_s0 + $0x308] sm:$0xff]  }
 0x17f   :  { %13038 = vst [vmem:[#allocation41_spill] sm:$0xff] %v10100_v56  ;;  %13039 = vst [vmem:[#allocation42_spill] sm:$0xff] %v10102_v61  ;;  %8058 = vmatprep.mubr.msk.bf16.mxu0 %vm9193_vm0, %v13007_v27  ;;  %8164 = vmatprep.mubr.msk.bf16.mxu1 %vm9193_vm0, %v13007_v27 }
 0x180   :  { %v7848_v32 = vpop.f32.mrf.mxu0  ;;  %v7954_v49 = vpop.f32.mrf.mxu1 }
 0x182   :  { %v10112_v63 = vpop.f32.mrf.mxu0  ;;  %v10114_v13 = vpop.f32.mrf.mxu1 }
 0x183   :  { %13040 = vst [vmem:[#allocation43_spill] sm:$0xff] %v10112_v63  ;;  %13041 = vst [vmem:[#allocation44_spill] sm:$0xff] %v10114_v13 }
 0x184   :  { %v7849_v61 = vpop.f32.mrf.mxu0  ;;  %v7955_v56 = vpop.f32.mrf.mxu1 }
 0x186   :  { %v10124_v0 = vpop.f32.mrf.mxu0  ;;  %v10126_v32 = vpop.f32.mrf.mxu1  ;;  %8059 = vmatmul.mubr.msk.bf16.gmra.mxu0 %vm220_vm1, %v9005_v52  ;;  %8165 = vmatmul.mubr.msk.bf16.gmra.mxu1 %vm220_vm1, %v9006_v1  ;;  %v9007_v52 = vld [vmem:[%s12786_s0 + $0x248] sm:$0xff]   ;;  %v9008_v1 = vld [vmem:[%s12786_s0 + $0x310] sm:$0xff]  }
 0x187   :  { %13042 = vst [vmem:[#allocation45_spill] sm:$0xff] %v10124_v0  ;;  %13043 = vst [vmem:[#allocation46_spill] sm:$0xff] %v10126_v32  ;;  %8062 = vmatprep.mubr.msk.bf16.mxu0 %vm9193_vm0, %v13007_v27  ;;  %8168 = vmatprep.mubr.msk.bf16.mxu1 %vm9193_vm0, %v13007_v27 }
 0x188   :  { %v7852_v5 = vpop.f32.mrf.mxu0  ;;  %v7958_v61 = vpop.f32.mrf.mxu1 }
 0x18a   :  { %v10136_v56 = vpop.f32.mrf.mxu0  ;;  %v10138_v13 = vpop.f32.mrf.mxu1 }
 0x18b   :  { %13044 = vst [vmem:[#allocation47_spill] sm:$0xff] %v10136_v56  ;;  %13045 = vst [vmem:[#allocation48_spill] sm:$0xff] %v10138_v13 }
 0x18c   :  { %v7853_v32 = vpop.f32.mrf.mxu0  ;;  %v7959_v0 = vpop.f32.mrf.mxu1 }
 0x18e   :  { %v10148_v63 = vpop.f32.mrf.mxu0  ;;  %v10150_v5 = vpop.f32.mrf.mxu1  ;;  %8063 = vmatmul.mubr.msk.bf16.gmra.mxu0 %vm220_vm1, %v9007_v52  ;;  %8169 = vmatmul.mubr.msk.bf16.gmra.mxu1 %vm220_vm1, %v9008_v1  ;;  %v9009_v52 = vld [vmem:[%s12786_s0 + $0x250] sm:$0xff]   ;;  %v9010_v1 = vld [vmem:[%s12786_s0 + $0x318] sm:$0xff]  }
 0x18f   :  { %13046 = vst [vmem:[#allocation49_spill] sm:$0xff] %v10148_v63  ;;  %13047 = vst [vmem:[#allocation50_spill] sm:$0xff] %v10150_v5  ;;  %8066 = vmatprep.mubr.msk.bf16.mxu0 %vm9193_vm0, %v13007_v27  ;;  %8172 = vmatprep.mubr.msk.bf16.mxu1 %vm9193_vm0, %v13007_v27 }
 0x190   :  { %v7856_v49 = vpop.f32.mrf.mxu0  ;;  %v7962_v32 = vpop.f32.mrf.mxu1 }
 0x191   :  { %v13051_v32 = vmax.f32 %v9545_v54, %v9548_v55  ;;  %v9011_v54 = vld [vmem:[%s12786_s0 + $0x320] sm:$0xff]   ;;  %v9012_v55 = vld [vmem:[%s12786_s0 + $0x3e8] sm:$0xff]  }
 0x192   :  { %v10160_v0 = vpop.f32.mrf.mxu0  ;;  %v10162_v13 = vpop.f32.mrf.mxu1 }
 0x193   :  { %13048 = vst [vmem:[#allocation51_spill] sm:$0xff] %v10160_v0  ;;  %13049 = vst [vmem:[#allocation52_spill] sm:$0xff] %v10162_v13 }
 0x194   :  { %v7857_v5 = vpop.f32.mrf.mxu0  ;;  %v7963_v63 = vpop.f32.mrf.mxu1 }
 0x196   :  { %v1348_v56 = vpop.f32.mrf.mxu0  ;;  %8067 = vmatmul.mubr.msk.bf16.gmra.mxu0 %vm220_vm1, %v9009_v52  ;;  %v10173_v49 = vpop.f32.mrf.mxu1  ;;  %8173 = vmatmul.mubr.msk.bf16.gmra.mxu1 %vm220_vm1, %v9010_v1 }
 0x197   :  { %13050 = vst [vmem:[#allocation53_spill] sm:$0xff] %v10173_v49  ;;  %v10179_v15 = vmax.f32 %v13051_v32, %v1348_v56  ;;  %8182 = vmatprep.mubr.msk.bf16.mxu0 %vm9193_vm0, %v13007_v27  ;;  %8288 = vmatprep.mubr.msk.bf16.mxu1 %vm9193_vm0, %v13007_v27  ;;  %v13053_v56 = vmax.f32 %v9557_v59, %v9559_v60 }
 0x198   :  { %v7972_v5 = vpop.f32.mrf.mxu0  ;;  %v8078_v63 = vpop.f32.mrf.mxu1 }
 0x199   :  { %13052 = vst [vmem:[#allocation54_spill] sm:$0xff] %v10179_v15  ;;  %v13054_v15 = vmax.f32 %v9569_v3, %v9571_v4  ;;  %v13087_v63 = vld [vmem:[#allocation6_spill] sm:$0xff] }
 0x19a   :  { %v1351_v61 = vpop.f32.mrf.mxu0  ;;  %v10187_v13 = vpop.f32.mrf.mxu1 }
 0x19b   :  { %v10198_v1 = vmax.f32 %v13053_v56, %v1351_v61  ;;  %v13086_v61 = vld [vmem:[#allocation5_spill] sm:$0xff] }
 0x19c   :  { %v7973_v32 = vpop.f32.mrf.mxu0  ;;  %v8079_v5 = vpop.f32.mrf.mxu1 }
 0x19e   :  { %v1356_v52 = vpop.f32.mrf.mxu0  ;;  %8183 = vmatmul.mubr.msk.bf16.vlgmr.msra.gmra.mxu0 %vm220_vm1, %v9011_v54  ;;  %v10203_v49 = vpop.f32.mrf.mxu1  ;;  %8289 = vmatmul.mubr.msk.bf16.vlgmr.msra.gmra.mxu1 %vm220_vm1, %v9012_v55  ;;  %v13055_v54 = vmax.f32 %v9589_v9, %v9591_v10  ;;  %v13056_v9 = vmax.f32 %v9610_v17, %v9612_v18 }
 0x19f   :  { %v10209_v0 = vmax.f32 %v13054_v15, %v1356_v52  ;;  %8389 = vmatpush3.bf16.msra.mxu0 %v9580_v6  ;;  %8186 = vmatprep.mubr.msk.bf16.mxu0 %vm9193_vm0, %v13007_v27  ;;  %v9013_v15 = vld [vmem:[%s12786_s0 + $0x328] sm:$0xff]   ;;  %v9014_v52 = vld [vmem:[%s12786_s0 + $0x3f0] sm:$0xff]  }
 0x1a0   :  { %v7976_v59 = vpop.f32.mrf.mxu0  ;;  %v8082_v60 = vpop.f32.mrf.mxu1  ;;  %8292 = vmatprep.mubr.msk.bf16.mxu1 %vm9193_vm0, %v13007_v27  ;;  %8390 = vmatprep.subr.bf16.mxu0 %v13007_v27 }
 0x1a1   :  { %8495 = vmatpush3.bf16.msra.mxu1 %v9580_v6 }
 0x1a2   :  { %v1359_v3 = vpop.f32.mrf.mxu0  ;;  %v10220_v4 = vpop.f32.mrf.mxu1  ;;  %8496 = vmatprep.subr.bf16.mxu1 %v13007_v27 }
 0x1a3   :  { %v10232_v55 = vmax.f32 %v13055_v54, %v1359_v3  ;;  %8391 = vmatpush3.bf16.msra.mxu0 %v9605_v14  ;;  %v13057_v54 = vmax.f32 %v9631_v23, %v9633_v24 }
 0x1a4   :  { %v7977_v6 = vpop.f32.mrf.mxu0  ;;  %v8083_v56 = vpop.f32.mrf.mxu1  ;;  %8392 = vmatprep.subr.bf16.mxu0 %v13007_v27 }
 0x1a5   :  { %8497 = vmatpush3.bf16.msra.mxu1 %v9605_v14 }
 0x1a6   :  { %v1364_v5 = vpop.f32.mrf.mxu0  ;;  %8187 = vmatmul.mubr.msk.bf16.gmra.mxu0 %vm220_vm1, %v9013_v15  ;;  %v10240_v59 = vpop.f32.mrf.mxu1  ;;  %8293 = vmatmul.mubr.msk.bf16.gmra.mxu1 %vm220_vm1, %v9014_v52  ;;  %v9015_v15 = vld [vmem:[%s12786_s0 + $0x330] sm:$0xff]   ;;  %v9016_v52 = vld [vmem:[%s12786_s0 + $0x3f8] sm:$0xff]  }
 0x1a7   :  { %v10246_v10 = vmax.f32 %v13056_v9, %v1364_v5  ;;  %8190 = vmatprep.mubr.msk.bf16.mxu0 %vm9193_vm0, %v13007_v27  ;;  %8296 = vmatprep.mubr.msk.bf16.mxu1 %vm9193_vm0, %v13007_v27 }
 0x1a8   :  { %v7980_v60 = vpop.f32.mrf.mxu0  ;;  %v8086_v14 = vpop.f32.mrf.mxu1  ;;  %8393 = vmatpush3.bf16.msra.mxu0 %v9625_v22  ;;  %8498 = vmatprep.subr.bf16.mxu1 %v13007_v27 }
 0x1a9   :  { %8499 = vmatpush3.bf16.msra.mxu1 %v9625_v22  ;;  %8600 = vmatprep.subr.bf16.mxu0 %v13007_v27  ;;  %v13058_v14 = vmax.f32 %v9644_v30, %v9646_v31  ;;  %v9017_v30 = vld [vmem:[%s12786_s0 + $0x338] sm:$0xff]   ;;  %v9018_v31 = vld [vmem:[%s12786_s0 + $0x400] sm:$0xff]  }
 0x1aa   :  { %v1367_v17 = vpop.f32.mrf.mxu0  ;;  %v10258_v18 = vpop.f32.mrf.mxu1  ;;  %8706 = vmatprep.subr.bf16.mxu1 %v13007_v27 }
 0x1ab   :  { %v10270_v6 = vmax.f32 %v13057_v54, %v1367_v17  ;;  %v13060_v17 = vmax.f32 %v9668_v42, %v9670_v43  ;;  %v9019_v42 = vld [vmem:[%s12786_s0 + $0x340] sm:$0xff]   ;;  %v9020_v43 = vld [vmem:[%s12786_s0 + $0x408] sm:$0xff]  }
 0x1ac   :  { %v7981_v22 = vpop.f32.mrf.mxu0  ;;  %v8087_v56 = vpop.f32.mrf.mxu1 }
 0x1ae   :  { %v1372_v9 = vpop.f32.mrf.mxu0  ;;  %8191 = vmatmul.mubr.msk.bf16.gmra.mxu0 %vm220_vm1, %v9015_v15  ;;  %v10275_v60 = vpop.f32.mrf.mxu1  ;;  %8297 = vmatmul.mubr.msk.bf16.gmra.mxu1 %vm220_vm1, %v9016_v52  ;;  %v13059_v52 = vmax.f32 %v9656_v35, %v9658_v36 }
 0x1af   :  { %v10281_v3 = vmax.f32 %v13058_v14, %v1372_v9  ;;  %8194 = vmatprep.mubr.msk.bf16.mxu0 %vm9193_vm0, %v13007_v27  ;;  %8300 = vmatprep.mubr.msk.bf16.mxu1 %vm9193_vm0, %v13007_v27 }
 0x1b0   :  { %v7984_v23 = vpop.f32.mrf.mxu0  ;;  %v8090_v24 = vpop.f32.mrf.mxu1 }
 0x1b2   :  { %v1375_v15 = vpop.f32.mrf.mxu0  ;;  %v10289_v54 = vpop.f32.mrf.mxu1 }
 0x1b3   :  { %v10300_v22 = vmax.f32 %v13059_v52, %v1375_v15  ;;  %v13062_v15 = vmax.f32 %v9692_v57, %v9694_v58  ;;  %v9021_v57 = vld [vmem:[%s12786_s0 + $0x348] sm:$0xff]   ;;  %v9022_v58 = vld [vmem:[%s12786_s0 + $0x410] sm:$0xff]  }
 0x1b4   :  { %v7985_v56 = vpop.f32.mrf.mxu0  ;;  %v8091_v9 = vpop.f32.mrf.mxu1 }
 0x1b6   :  { %v1380_v23 = vpop.f32.mrf.mxu0  ;;  %8195 = vmatmul.mubr.msk.bf16.gmra.mxu0 %vm220_vm1, %v9017_v30  ;;  %v10305_v24 = vpop.f32.mrf.mxu1  ;;  %8301 = vmatmul.mubr.msk.bf16.gmra.mxu1 %vm220_vm1, %v9018_v31 }
 0x1b7   :  { %v10311_v5 = vmax.f32 %v13060_v17, %v1380_v23  ;;  %8198 = vmatprep.mubr.msk.bf16.mxu0 %vm9193_vm0, %v13007_v27  ;;  %8304 = vmatprep.mubr.msk.bf16.mxu1 %vm9193_vm0, %v13007_v27  ;;  %v13061_v17 = vmax.f32 %v9680_v47, %v9682_v48 }
 0x1b8   :  { %v7988_v35 = vpop.f32.mrf.mxu0  ;;  %v8094_v36 = vpop.f32.mrf.mxu1 }
 0x1ba   :  { %v1383_v30 = vpop.f32.mrf.mxu0  ;;  %v10319_v52 = vpop.f32.mrf.mxu1 }
 0x1bb   :  { %v10330_v31 = vmax.f32 %v13061_v17, %v1383_v30  ;;  %v13064_v30 = vmax.f32 %v9716_v20, %v9718_v21  ;;  %v9023_v20 = vld [vmem:[%s12786_s0 + $0x350] sm:$0xff]   ;;  %v9024_v21 = vld [vmem:[%s12786_s0 + $0x418] sm:$0xff]  }
 0x1bc   :  { %v7989_v56 = vpop.f32.mrf.mxu0  ;;  %v8095_v9 = vpop.f32.mrf.mxu1 }
 0x1be   :  { %v1388_v35 = vpop.f32.mrf.mxu0  ;;  %8199 = vmatmul.mubr.msk.bf16.gmra.mxu0 %vm220_vm1, %v9019_v42  ;;  %v10335_v36 = vpop.f32.mrf.mxu1  ;;  %8305 = vmatmul.mubr.msk.bf16.gmra.mxu1 %vm220_vm1, %v9020_v43 }
 0x1bf   :  { %v10341_v14 = vmax.f32 %v13062_v15, %v1388_v35  ;;  %8202 = vmatprep.mubr.msk.bf16.mxu0 %vm9193_vm0, %v13007_v27  ;;  %8308 = vmatprep.mubr.msk.bf16.mxu1 %vm9193_vm0, %v13007_v27  ;;  %v13063_v15 = vmax.f32 %v9704_v2, %v9706_v7 }
 0x1c0   :  { %v7992_v47 = vpop.f32.mrf.mxu0  ;;  %v8098_v48 = vpop.f32.mrf.mxu1 }
 0x1c2   :  { %v1391_v42 = vpop.f32.mrf.mxu0  ;;  %v10349_v17 = vpop.f32.mrf.mxu1 }
 0x1c3   :  { %v10360_v43 = vmax.f32 %v13063_v15, %v1391_v42  ;;  %v13066_v42 = vmax.f32 %v9740_v45, %v9742_v46  ;;  %v9025_v45 = vld [vmem:[%s12786_s0 + $0x358] sm:$0xff]   ;;  %v9026_v46 = vld [vmem:[%s12786_s0 + $0x420] sm:$0xff]  }
 0x1c4   :  { %v7993_v56 = vpop.f32.mrf.mxu0  ;;  %v8099_v9 = vpop.f32.mrf.mxu1 }
 0x1c6   :  { %v1396_v47 = vpop.f32.mrf.mxu0  ;;  %8203 = vmatmul.mubr.msk.bf16.gmra.mxu0 %vm220_vm1, %v9021_v57  ;;  %v10365_v48 = vpop.f32.mrf.mxu1  ;;  %8309 = vmatmul.mubr.msk.bf16.gmra.mxu1 %vm220_vm1, %v9022_v58 }
 0x1c7   :  { %v10371_v23 = vmax.f32 %v13064_v30, %v1396_v47  ;;  %8206 = vmatprep.mubr.msk.bf16.mxu0 %vm9193_vm0, %v13007_v27  ;;  %8312 = vmatprep.mubr.msk.bf16.mxu1 %vm9193_vm0, %v13007_v27  ;;  %v13065_v30 = vmax.f32 %v9728_v29, %v9730_v33 }
 0x1c8   :  { %v7996_v2 = vpop.f32.mrf.mxu0  ;;  %v8102_v7 = vpop.f32.mrf.mxu1 }
 0x1ca   :  { %v1399_v57 = vpop.f32.mrf.mxu0  ;;  %v10379_v15 = vpop.f32.mrf.mxu1 }
 0x1cb   :  { %v10390_v58 = vmax.f32 %v13065_v30, %v1399_v57  ;;  %v13068_v57 = vmax.f32 %v9764_v26, %v9766_v28  ;;  %v9027_v26 = vld [vmem:[%s12786_s0 + $0x360] sm:$0xff]   ;;  %v9028_v28 = vld [vmem:[%s12786_s0 + $0x428] sm:$0xff]  }
 0x1cc   :  { %v7997_v56 = vpop.f32.mrf.mxu0  ;;  %v8103_v9 = vpop.f32.mrf.mxu1 }
 0x1ce   :  { %v1404_v2 = vpop.f32.mrf.mxu0  ;;  %8207 = vmatmul.mubr.msk.bf16.gmra.mxu0 %vm220_vm1, %v9023_v20  ;;  %v10395_v7 = vpop.f32.mrf.mxu1  ;;  %8313 = vmatmul.mubr.msk.bf16.gmra.mxu1 %vm220_vm1, %v9024_v21 }
 0x1cf   :  { %v10401_v35 = vmax.f32 %v13066_v42, %v1404_v2  ;;  %8210 = vmatprep.mubr.msk.bf16.mxu0 %vm9193_vm0, %v13007_v27  ;;  %8316 = vmatprep.mubr.msk.bf16.mxu1 %vm9193_vm0, %v13007_v27  ;;  %v13067_v42 = vmax.f32 %v9752_v53, %v9754_v62 }
 0x1d0   :  { %v8000_v29 = vpop.f32.mrf.mxu0  ;;  %v8106_v33 = vpop.f32.mrf.mxu1 }
 0x1d2   :  { %v1407_v20 = vpop.f32.mrf.mxu0  ;;  %v10409_v30 = vpop.f32.mrf.mxu1 }
 0x1d3   :  { %v10420_v21 = vmax.f32 %v13067_v42, %v1407_v20  ;;  %v13070_v20 = vmax.f32 %v9788_v34, %v9790_v37  ;;  %v9029_v34 = vld [vmem:[%s12786_s0 + $0x368] sm:$0xff]   ;;  %v9030_v37 = vld [vmem:[%s12786_s0 + $0x430] sm:$0xff]  }
 0x1d4   :  { %v8001_v56 = vpop.f32.mrf.mxu0  ;;  %v8107_v9 = vpop.f32.mrf.mxu1 }
 0x1d6   :  { %v1412_v29 = vpop.f32.mrf.mxu0  ;;  %8211 = vmatmul.mubr.msk.bf16.gmra.mxu0 %vm220_vm1, %v9025_v45  ;;  %v10425_v33 = vpop.f32.mrf.mxu1  ;;  %8317 = vmatmul.mubr.msk.bf16.gmra.mxu1 %vm220_vm1, %v9026_v46 }
 0x1d7   :  { %v10431_v47 = vmax.f32 %v13068_v57, %v1412_v29  ;;  %8214 = vmatprep.mubr.msk.bf16.mxu0 %vm9193_vm0, %v13007_v27  ;;  %8320 = vmatprep.mubr.msk.bf16.mxu1 %vm9193_vm0, %v13007_v27  ;;  %v13069_v57 = vmax.f32 %v9776_v41, %v9778_v50 }
 0x1d8   :  { %v8004_v53 = vpop.f32.mrf.mxu0  ;;  %v8110_v62 = vpop.f32.mrf.mxu1 }
 0x1da   :  { %v1415_v45 = vpop.f32.mrf.mxu0  ;;  %v10439_v42 = vpop.f32.mrf.mxu1 }
 0x1db   :  { %v10450_v46 = vmax.f32 %v13069_v57, %v1415_v45  ;;  %v13072_v45 = vmax.f32 %v9812_v25, %v9814_v8  ;;  %v9031_v25 = vld [vmem:[%s12786_s0 + $0x370] sm:$0xff]   ;;  %v9032_v8 = vld [vmem:[%s12786_s0 + $0x438] sm:$0xff]  }
 0x1dc   :  { %v8005_v56 = vpop.f32.mrf.mxu0  ;;  %v8111_v9 = vpop.f32.mrf.mxu1 }
 0x1de   :  { %v1420_v53 = vpop.f32.mrf.mxu0  ;;  %8215 = vmatmul.mubr.msk.bf16.gmra.mxu0 %vm220_vm1, %v9027_v26  ;;  %v10455_v62 = vpop.f32.mrf.mxu1  ;;  %8321 = vmatmul.mubr.msk.bf16.gmra.mxu1 %vm220_vm1, %v9028_v28 }
 0x1df   :  { %v10461_v2 = vmax.f32 %v13070_v20, %v1420_v53  ;;  %8218 = vmatprep.mubr.msk.bf16.mxu0 %vm9193_vm0, %v13007_v27  ;;  %8324 = vmatprep.mubr.msk.bf16.mxu1 %vm9193_vm0, %v13007_v27  ;;  %v13071_v20 = vmax.f32 %v9800_v16, %v9802_v11 }
 0x1e0   :  { %v8008_v41 = vpop.f32.mrf.mxu0  ;;  %v8114_v50 = vpop.f32.mrf.mxu1 }
 0x1e2   :  { %v1423_v26 = vpop.f32.mrf.mxu0  ;;  %v10469_v57 = vpop.f32.mrf.mxu1 }
 0x1e3   :  { %v10480_v28 = vmax.f32 %v13071_v20, %v1423_v26  ;;  %v13074_v26 = vmax.f32 %v9836_v44, %v9838_v40  ;;  %v9033_v44 = vld [vmem:[%s12786_s0 + $0x378] sm:$0xff]   ;;  %v9034_v40 = vld [vmem:[%s12786_s0 + $0x440] sm:$0xff]  }
 0x1e4   :  { %v8009_v56 = vpop.f32.mrf.mxu0  ;;  %v8115_v9 = vpop.f32.mrf.mxu1 }
 0x1e6   :  { %v1428_v41 = vpop.f32.mrf.mxu0  ;;  %8219 = vmatmul.mubr.msk.bf16.gmra.mxu0 %vm220_vm1, %v9029_v34  ;;  %v10485_v50 = vpop.f32.mrf.mxu1  ;;  %8325 = vmatmul.mubr.msk.bf16.gmra.mxu1 %vm220_vm1, %v9030_v37 }
 0x1e7   :  { %v10491_v29 = vmax.f32 %v13072_v45, %v1428_v41  ;;  %8222 = vmatprep.mubr.msk.bf16.mxu0 %vm9193_vm0, %v13007_v27  ;;  %8328 = vmatprep.mubr.msk.bf16.mxu1 %vm9193_vm0, %v13007_v27  ;;  %v13073_v45 = vmax.f32 %v9824_v38, %v9826_v12 }
 0x1e8   :  { %v8012_v11 = vpop.f32.mrf.mxu0  ;;  %v8118_v16 = vpop.f32.mrf.mxu1 }
 0x1ea   :  { %v1431_v34 = vpop.f32.mrf.mxu0  ;;  %v10499_v20 = vpop.f32.mrf.mxu1 }
 0x1eb   :  { %v10510_v37 = vmax.f32 %v13073_v45, %v1431_v34  ;;  %v13077_v34 = vld [vmem:[#allocation2_spill] sm:$0xff] }
 0x1ec   :  { %v8013_v56 = vpop.f32.mrf.mxu0  ;;  %v8119_v9 = vpop.f32.mrf.mxu1  ;;  %v13078_v41 = vmax.f32 %v9860_v19, %v13077_v34  ;;  %v9035_v19 = vld [vmem:[%s12786_s0 + $0x380] sm:$0xff]   ;;  %v13081_v34 = vld [vmem:[#allocation3_spill] sm:$0xff] }
 0x1ee   :  { %v1436_v11 = vpop.f32.mrf.mxu0  ;;  %8223 = vmatmul.mubr.msk.bf16.gmra.mxu0 %vm220_vm1, %v9031_v25  ;;  %v10515_v16 = vpop.f32.mrf.mxu1  ;;  %8329 = vmatmul.mubr.msk.bf16.gmra.mxu1 %vm220_vm1, %v9032_v8 }
 0x1ef   :  { %v10521_v53 = vmax.f32 %v13074_v26, %v1436_v11  ;;  %8226 = vmatprep.mubr.msk.bf16.mxu0 %vm9193_vm0, %v13007_v27  ;;  %8332 = vmatprep.mubr.msk.bf16.mxu1 %vm9193_vm0, %v13007_v27  ;;  %v13075_v26 = vmax.f32 %v9848_v51, %v9850_v39 }
 0x1f0   :  { %v8016_v12 = vpop.f32.mrf.mxu0  ;;  %v8122_v38 = vpop.f32.mrf.mxu1 }
 0x1f2   :  { %v1439_v25 = vpop.f32.mrf.mxu0  ;;  %v10529_v45 = vpop.f32.mrf.mxu1 }
 0x1f3   :  { %v10540_v8 = vmax.f32 %v13075_v26, %v1439_v25 }
 0x1f4   :  { %v8017_v56 = vpop.f32.mrf.mxu0  ;;  %v8123_v9 = vpop.f32.mrf.mxu1 }
 0x1f6   :  { %v1444_v12 = vpop.f32.mrf.mxu0  ;;  %8227 = vmatmul.mubr.msk.bf16.gmra.mxu0 %vm220_vm1, %v9033_v44  ;;  %v10545_v38 = vpop.f32.mrf.mxu1  ;;  %8333 = vmatmul.mubr.msk.bf16.gmra.mxu1 %vm220_vm1, %v9034_v40  ;;  %v13082_v40 = vld [vmem:[#allocation4_spill] sm:$0xff] }
 0x1f7   :  { %13076 = vst [vmem:[#allocation55_spill] sm:$0xff] %v10545_v38  ;;  %v10551_v32 = vmax.f32 %v13078_v41, %v1444_v12  ;;  %8230 = vmatprep.mubr.msk.bf16.mxu0 %vm9193_vm0, %v13007_v27  ;;  %8336 = vmatprep.mubr.msk.bf16.mxu1 %vm9193_vm0, %v13007_v27  ;;  %v9036_v41 = vld [vmem:[%s12786_s0 + $0x448] sm:$0xff]   ;;  %v13083_v56 = vmax.f32 %v13081_v34, %v13082_v40 }
 0x1f8   :  { %v8020_v39 = vpop.f32.mrf.mxu0  ;;  %v8126_v51 = vpop.f32.mrf.mxu1  ;;  %v13088_v38 = vmax.f32 %v13086_v61, %v13087_v63  ;;  %v9037_v63 = vld [vmem:[%s12786_s0 + $0x388] sm:$0xff]   ;;  %v9038_v61 = vld [vmem:[%s12786_s0 + $0x450] sm:$0xff]  }
 0x1f9   :  { %13079 = vst [vmem:[#allocation2_spill] sm:$0xff] %v10551_v32 }
 0x1fa   :  { %v1447_v44 = vpop.f32.mrf.mxu0  ;;  %v10559_v26 = vpop.f32.mrf.mxu1 }
 0x1fb   :  { %13080 = vst [vmem:[#allocation56_spill] sm:$0xff] %v10559_v26  ;;  %v10570_v9 = vmax.f32 %v13083_v56, %v1447_v44 }
 0x1fc   :  { %v8021_v12 = vpop.f32.mrf.mxu0  ;;  %v8127_v39 = vpop.f32.mrf.mxu1 }
 0x1fd   :  { %13084 = vst [vmem:[#allocation3_spill] sm:$0xff] %v10570_v9 }
 0x1fe   :  { %v1452_v25 = vpop.f32.mrf.mxu0  ;;  %8231 = vmatmul.mubr.msk.bf16.gmra.mxu0 %vm220_vm1, %v9035_v19  ;;  %v10575_v11 = vpop.f32.mrf.mxu1  ;;  %8337 = vmatmul.mubr.msk.bf16.gmra.mxu1 %vm220_vm1, %v9036_v41 }
 0x1ff   :  { %13085 = vst [vmem:[#allocation4_spill] sm:$0xff] %v10575_v11  ;;  %v10581_v32 = vmax.f32 %v13088_v38, %v1452_v25  ;;  %8234 = vmatprep.mubr.msk.bf16.mxu0 %vm9193_vm0, %v13007_v27  ;;  %8340 = vmatprep.mubr.msk.bf16.mxu1 %vm9193_vm0, %v13007_v27  ;;  %v13091_v38 = vld [vmem:[#allocation7_spill] sm:$0xff]  ;;  %v13092_v25 = vld [vmem:[#allocation8_spill] sm:$0xff]  ;;  %v13096_v11 = vld [vmem:[#allocation9_spill] sm:$0xff] }
 0x200   :  { %v8024_v44 = vpop.f32.mrf.mxu0  ;;  %v8130_v34 = vpop.f32.mrf.mxu1  ;;  %v13093_v41 = vmax.f32 %v13091_v38, %v13092_v25 }
 0x201   :  { %13089 = vst [vmem:[#allocation5_spill] sm:$0xff] %v10581_v32  ;;  %v13097_v32 = vld [vmem:[#allocation10_spill] sm:$0xff] }
 0x202   :  { %v1455_v40 = vpop.f32.mrf.mxu0  ;;  %v10589_v56 = vpop.f32.mrf.mxu1  ;;  %v13098_v26 = vmax.f32 %v13096_v11, %v13097_v32  ;;  %v9039_v32 = vld [vmem:[%s12786_s0 + $0x390] sm:$0xff]   ;;  %v9040_v11 = vld [vmem:[%s12786_s0 + $0x458] sm:$0xff]  }
 0x203   :  { %13090 = vst [vmem:[#allocation6_spill] sm:$0xff] %v10589_v56  ;;  %v10600_v12 = vmax.f32 %v13093_v41, %v1455_v40 }
 0x204   :  { %v8025_v39 = vpop.f32.mrf.mxu0  ;;  %v8131_v44 = vpop.f32.mrf.mxu1 }
 0x205   :  { %13094 = vst [vmem:[#allocation7_spill] sm:$0xff] %v10600_v12 }
 0x206   :  { %v1460_v19 = vpop.f32.mrf.mxu0  ;;  %8235 = vmatmul.mubr.msk.bf16.gmra.mxu0 %vm220_vm1, %v9037_v63  ;;  %v10605_v51 = vpop.f32.mrf.mxu1  ;;  %8341 = vmatmul.mubr.msk.bf16.gmra.mxu1 %vm220_vm1, %v9038_v61 }
 0x207   :  { %13095 = vst [vmem:[#allocation8_spill] sm:$0xff] %v10605_v51  ;;  %v10611_v9 = vmax.f32 %v13098_v26, %v1460_v19  ;;  %8238 = vmatprep.mubr.msk.bf16.mxu0 %vm9193_vm0, %v13007_v27  ;;  %8344 = vmatprep.mubr.msk.bf16.mxu1 %vm9193_vm0, %v13007_v27  ;;  %v13101_v26 = vld [vmem:[#allocation11_spill] sm:$0xff]  ;;  %v13102_v19 = vld [vmem:[#allocation12_spill] sm:$0xff]  ;;  %v13106_v51 = vld [vmem:[#allocation13_spill] sm:$0xff] }
 0x208   :  { %v8028_v40 = vpop.f32.mrf.mxu0  ;;  %v8134_v38 = vpop.f32.mrf.mxu1  ;;  %v13103_v61 = vmax.f32 %v13101_v26, %v13102_v19 }
 0x209   :  { %13099 = vst [vmem:[#allocation9_spill] sm:$0xff] %v10611_v9  ;;  %v13107_v9 = vld [vmem:[#allocation14_spill] sm:$0xff] }
 0x20a   :  { %v1463_v25 = vpop.f32.mrf.mxu0  ;;  %v10619_v41 = vpop.f32.mrf.mxu1  ;;  %v13108_v56 = vmax.f32 %v13106_v51, %v13107_v9  ;;  %v9041_v9 = vld [vmem:[%s12786_s0 + $0x398] sm:$0xff]   ;;  %v9042_v51 = vld [vmem:[%s12786_s0 + $0x460] sm:$0xff]  }
 0x20b   :  { %13100 = vst [vmem:[#allocation10_spill] sm:$0xff] %v10619_v41  ;;  %v10630_v39 = vmax.f32 %v13103_v61, %v1463_v25 }
 0x20c   :  { %v8029_v44 = vpop.f32.mrf.mxu0  ;;  %v8135_v40 = vpop.f32.mrf.mxu1 }
 0x20d   :  { %13104 = vst [vmem:[#allocation11_spill] sm:$0xff] %v10630_v39 }
 0x20e   :  { %v1468_v63 = vpop.f32.mrf.mxu0  ;;  %8239 = vmatmul.mubr.msk.bf16.gmra.mxu0 %vm220_vm1, %v9039_v32  ;;  %v10635_v34 = vpop.f32.mrf.mxu1  ;;  %8345 = vmatmul.mubr.msk.bf16.gmra.mxu1 %vm220_vm1, %v9040_v11 }
 0x20f   :  { %13105 = vst [vmem:[#allocation12_spill] sm:$0xff] %v10635_v34  ;;  %v10641_v12 = vmax.f32 %v13108_v56, %v1468_v63  ;;  %8242 = vmatprep.mubr.msk.bf16.mxu0 %vm9193_vm0, %v13007_v27  ;;  %8348 = vmatprep.mubr.msk.bf16.mxu1 %vm9193_vm0, %v13007_v27  ;;  %v13111_v56 = vld [vmem:[#allocation15_spill] sm:$0xff]  ;;  %v13112_v63 = vld [vmem:[#allocation16_spill] sm:$0xff]  ;;  %v13116_v34 = vld [vmem:[#allocation17_spill] sm:$0xff] }
 0x210   :  { %v8032_v25 = vpop.f32.mrf.mxu0  ;;  %v8138_v26 = vpop.f32.mrf.mxu1  ;;  %v13113_v11 = vmax.f32 %v13111_v56, %v13112_v63 }
 0x211   :  { %13109 = vst [vmem:[#allocation13_spill] sm:$0xff] %v10641_v12  ;;  %v13117_v12 = vld [vmem:[#allocation18_spill] sm:$0xff] }
 0x212   :  { %v1471_v19 = vpop.f32.mrf.mxu0  ;;  %v10649_v61 = vpop.f32.mrf.mxu1  ;;  %v13118_v41 = vmax.f32 %v13116_v34, %v13117_v12  ;;  %v9043_v12 = vld [vmem:[%s12786_s0 + $0x3a0] sm:$0xff]   ;;  %v9044_v34 = vld [vmem:[%s12786_s0 + $0x468] sm:$0xff]  }
 0x213   :  { %13110 = vst [vmem:[#allocation14_spill] sm:$0xff] %v10649_v61  ;;  %v10660_v44 = vmax.f32 %v13113_v11, %v1471_v19 }
 0x214   :  { %v8033_v40 = vpop.f32.mrf.mxu0  ;;  %v8139_v25 = vpop.f32.mrf.mxu1 }
 0x215   :  { %13114 = vst [vmem:[#allocation15_spill] sm:$0xff] %v10660_v44 }
 0x216   :  { %v1476_v32 = vpop.f32.mrf.mxu0  ;;  %8243 = vmatmul.mubr.msk.bf16.gmra.mxu0 %vm220_vm1, %v9041_v9  ;;  %v10665_v38 = vpop.f32.mrf.mxu1  ;;  %8349 = vmatmul.mubr.msk.bf16.gmra.mxu1 %vm220_vm1, %v9042_v51 }
 0x217   :  { %13115 = vst [vmem:[#allocation16_spill] sm:$0xff] %v10665_v38  ;;  %v10671_v39 = vmax.f32 %v13118_v41, %v1476_v32  ;;  %8246 = vmatprep.mubr.msk.bf16.mxu0 %vm9193_vm0, %v13007_v27  ;;  %8352 = vmatprep.mubr.msk.bf16.mxu1 %vm9193_vm0, %v13007_v27  ;;  %v13121_v41 = vld [vmem:[#allocation19_spill] sm:$0xff]  ;;  %v13122_v32 = vld [vmem:[#allocation20_spill] sm:$0xff]  ;;  %v13126_v38 = vld [vmem:[#allocation21_spill] sm:$0xff] }
 0x218   :  { %v8036_v19 = vpop.f32.mrf.mxu0  ;;  %v8142_v56 = vpop.f32.mrf.mxu1  ;;  %v13123_v51 = vmax.f32 %v13121_v41, %v13122_v32 }
 0x219   :  { %13119 = vst [vmem:[#allocation17_spill] sm:$0xff] %v10671_v39  ;;  %v13127_v39 = vld [vmem:[#allocation22_spill] sm:$0xff] }
 0x21a   :  { %v1479_v63 = vpop.f32.mrf.mxu0  ;;  %v10679_v11 = vpop.f32.mrf.mxu1  ;;  %v13128_v61 = vmax.f32 %v13126_v38, %v13127_v39  ;;  %v9045_v39 = vld [vmem:[%s12786_s0 + $0x3a8] sm:$0xff]   ;;  %v9046_v38 = vld [vmem:[%s12786_s0 + $0x470] sm:$0xff]  }
 0x21b   :  { %13120 = vst [vmem:[#allocation18_spill] sm:$0xff] %v10679_v11  ;;  %v10690_v40 = vmax.f32 %v13123_v51, %v1479_v63 }
 0x21c   :  { %v8037_v25 = vpop.f32.mrf.mxu0  ;;  %v8143_v19 = vpop.f32.mrf.mxu1 }
 0x21d   :  { %13124 = vst [vmem:[#allocation19_spill] sm:$0xff] %v10690_v40 }
 0x21e   :  { %v1484_v9 = vpop.f32.mrf.mxu0  ;;  %8247 = vmatmul.mubr.msk.bf16.gmra.mxu0 %vm220_vm1, %v9043_v12  ;;  %v10695_v26 = vpop.f32.mrf.mxu1  ;;  %8353 = vmatmul.mubr.msk.bf16.gmra.mxu1 %vm220_vm1, %v9044_v34 }
 0x21f   :  { %13125 = vst [vmem:[#allocation20_spill] sm:$0xff] %v10695_v26  ;;  %v10701_v44 = vmax.f32 %v13128_v61, %v1484_v9  ;;  %8250 = vmatprep.mubr.msk.bf16.mxu0 %vm9193_vm0, %v13007_v27  ;;  %8356 = vmatprep.mubr.msk.bf16.mxu1 %vm9193_vm0, %v13007_v27  ;;  %v13131_v61 = vld [vmem:[#allocation23_spill] sm:$0xff]  ;;  %v13132_v9 = vld [vmem:[#allocation24_spill] sm:$0xff]  ;;  %v13136_v26 = vld [vmem:[#allocation25_spill] sm:$0xff] }
 0x220   :  { %v8040_v63 = vpop.f32.mrf.mxu0  ;;  %v8146_v41 = vpop.f32.mrf.mxu1  ;;  %v13133_v34 = vmax.f32 %v13131_v61, %v13132_v9 }
 0x221   :  { %13129 = vst [vmem:[#allocation21_spill] sm:$0xff] %v10701_v44  ;;  %v13137_v44 = vld [vmem:[#allocation26_spill] sm:$0xff] }
 0x222   :  { %v1487_v32 = vpop.f32.mrf.mxu0  ;;  %v10709_v51 = vpop.f32.mrf.mxu1  ;;  %v13138_v11 = vmax.f32 %v13136_v26, %v13137_v44  ;;  %v9047_v44 = vld [vmem:[%s12786_s0 + $0x3b0] sm:$0xff]   ;;  %v9048_v26 = vld [vmem:[%s12786_s0 + $0x478] sm:$0xff]  }
 0x223   :  { %13130 = vst [vmem:[#allocation22_spill] sm:$0xff] %v10709_v51  ;;  %v10720_v25 = vmax.f32 %v13133_v34, %v1487_v32 }
 0x224   :  { %v8041_v19 = vpop.f32.mrf.mxu0  ;;  %v8147_v63 = vpop.f32.mrf.mxu1 }
 0x225   :  { %13134 = vst [vmem:[#allocation23_spill] sm:$0xff] %v10720_v25 }
 0x226   :  { %v1492_v12 = vpop.f32.mrf.mxu0  ;;  %8251 = vmatmul.mubr.msk.bf16.gmra.mxu0 %vm220_vm1, %v9045_v39  ;;  %v10725_v56 = vpop.f32.mrf.mxu1  ;;  %8357 = vmatmul.mubr.msk.bf16.gmra.mxu1 %vm220_vm1, %v9046_v38 }
 0x227   :  { %13135 = vst [vmem:[#allocation24_spill] sm:$0xff] %v10725_v56  ;;  %v10731_v40 = vmax.f32 %v13138_v11, %v1492_v12  ;;  %8254 = vmatprep.mubr.msk.bf16.mxu0 %vm9193_vm0, %v13007_v27  ;;  %8360 = vmatprep.mubr.msk.bf16.mxu1 %vm9193_vm0, %v13007_v27  ;;  %v13141_v11 = vld [vmem:[#allocation27_spill] sm:$0xff]  ;;  %v13142_v12 = vld [vmem:[#allocation28_spill] sm:$0xff]  ;;  %v13146_v56 = vld [vmem:[#allocation29_spill] sm:$0xff] }
 0x228   :  { %v8044_v32 = vpop.f32.mrf.mxu0  ;;  %v8150_v61 = vpop.f32.mrf.mxu1  ;;  %v13143_v38 = vmax.f32 %v13141_v11, %v13142_v12 }
 0x229   :  { %13139 = vst [vmem:[#allocation25_spill] sm:$0xff] %v10731_v40  ;;  %v13147_v40 = vld [vmem:[#allocation30_spill] sm:$0xff] }
 0x22a   :  { %v1495_v9 = vpop.f32.mrf.mxu0  ;;  %v10739_v34 = vpop.f32.mrf.mxu1  ;;  %v13148_v51 = vmax.f32 %v13146_v56, %v13147_v40  ;;  %v9049_v40 = vld [vmem:[%s12786_s0 + $0x3b8] sm:$0xff]   ;;  %v9050_v56 = vld [vmem:[%s12786_s0 + $0x480] sm:$0xff]  }
 0x22b   :  { %13140 = vst [vmem:[#allocation26_spill] sm:$0xff] %v10739_v34  ;;  %v10750_v19 = vmax.f32 %v13143_v38, %v1495_v9 }
 0x22c   :  { %v8045_v63 = vpop.f32.mrf.mxu0  ;;  %v8151_v32 = vpop.f32.mrf.mxu1 }
 0x22d   :  { %13144 = vst [vmem:[#allocation27_spill] sm:$0xff] %v10750_v19 }
 0x22e   :  { %v1500_v39 = vpop.f32.mrf.mxu0  ;;  %8255 = vmatmul.mubr.msk.bf16.gmra.mxu0 %vm220_vm1, %v9047_v44  ;;  %v10755_v41 = vpop.f32.mrf.mxu1  ;;  %8361 = vmatmul.mubr.msk.bf16.gmra.mxu1 %vm220_vm1, %v9048_v26 }
 0x22f   :  { %13145 = vst [vmem:[#allocation28_spill] sm:$0xff] %v10755_v41  ;;  %v10761_v25 = vmax.f32 %v13148_v51, %v1500_v39  ;;  %8258 = vmatprep.mubr.msk.bf16.mxu0 %vm9193_vm0, %v13007_v27  ;;  %8364 = vmatprep.mubr.msk.bf16.mxu1 %vm9193_vm0, %v13007_v27  ;;  %v13151_v51 = vld [vmem:[#allocation31_spill] sm:$0xff]  ;;  %v13152_v39 = vld [vmem:[#allocation32_spill] sm:$0xff]  ;;  %v13156_v41 = vld [vmem:[#allocation33_spill] sm:$0xff] }
 0x230   :  { %v8048_v9 = vpop.f32.mrf.mxu0  ;;  %v8154_v11 = vpop.f32.mrf.mxu1  ;;  %v13153_v26 = vmax.f32 %v13151_v51, %v13152_v39 }
 0x231   :  { %13149 = vst [vmem:[#allocation29_spill] sm:$0xff] %v10761_v25  ;;  %v13157_v25 = vld [vmem:[#allocation34_spill] sm:$0xff] }
 0x232   :  { %v1503_v12 = vpop.f32.mrf.mxu0  ;;  %v10769_v38 = vpop.f32.mrf.mxu1  ;;  %v13158_v34 = vmax.f32 %v13156_v41, %v13157_v25  ;;  %v9051_v25 = vld [vmem:[%s12786_s0 + $0x3c0] sm:$0xff]   ;;  %v9052_v41 = vld [vmem:[%s12786_s0 + $0x488] sm:$0xff]  }
 0x233   :  { %13150 = vst [vmem:[#allocation30_spill] sm:$0xff] %v10769_v38  ;;  %v10780_v63 = vmax.f32 %v13153_v26, %v1503_v12 }
 0x234   :  { %v8049_v32 = vpop.f32.mrf.mxu0  ;;  %v8155_v9 = vpop.f32.mrf.mxu1 }
 0x235   :  { %13154 = vst [vmem:[#allocation31_spill] sm:$0xff] %v10780_v63 }
 0x236   :  { %v1508_v44 = vpop.f32.mrf.mxu0  ;;  %8259 = vmatmul.mubr.msk.bf16.gmra.mxu0 %vm220_vm1, %v9049_v40  ;;  %v10785_v61 = vpop.f32.mrf.mxu1  ;;  %8365 = vmatmul.mubr.msk.bf16.gmra.mxu1 %vm220_vm1, %v9050_v56 }
 0x237   :  { %13155 = vst [vmem:[#allocation32_spill] sm:$0xff] %v10785_v61  ;;  %v10791_v19 = vmax.f32 %v13158_v34, %v1508_v44  ;;  %8262 = vmatprep.mubr.msk.bf16.mxu0 %vm9193_vm0, %v13007_v27  ;;  %8368 = vmatprep.mubr.msk.bf16.mxu1 %vm9193_vm0, %v13007_v27  ;;  %v13161_v34 = vld [vmem:[#allocation35_spill] sm:$0xff]  ;;  %v13162_v44 = vld [vmem:[#allocation36_spill] sm:$0xff]  ;;  %v13166_v61 = vld [vmem:[#allocation37_spill] sm:$0xff] }
 0x238   :  { %v8052_v12 = vpop.f32.mrf.mxu0  ;;  %v8158_v51 = vpop.f32.mrf.mxu1  ;;  %v13163_v56 = vmax.f32 %v13161_v34, %v13162_v44 }
 0x239   :  { %13159 = vst [vmem:[#allocation33_spill] sm:$0xff] %v10791_v19  ;;  %v13167_v19 = vld [vmem:[#allocation38_spill] sm:$0xff] }
 0x23a   :  { %v1511_v39 = vpop.f32.mrf.mxu0  ;;  %v10799_v26 = vpop.f32.mrf.mxu1  ;;  %v13168_v38 = vmax.f32 %v13166_v61, %v13167_v19  ;;  %v9053_v19 = vld [vmem:[%s12786_s0 + $0x3c8] sm:$0xff]   ;;  %v9054_v61 = vld [vmem:[%s12786_s0 + $0x490] sm:$0xff]  }
 0x23b   :  { %13160 = vst [vmem:[#allocation34_spill] sm:$0xff] %v10799_v26  ;;  %v10810_v32 = vmax.f32 %v13163_v56, %v1511_v39 }
 0x23c   :  { %v8053_v9 = vpop.f32.mrf.mxu0  ;;  %v8159_v12 = vpop.f32.mrf.mxu1 }
 0x23d   :  { %13164 = vst [vmem:[#allocation35_spill] sm:$0xff] %v10810_v32 }
 0x23e   :  { %v1516_v40 = vpop.f32.mrf.mxu0  ;;  %8263 = vmatmul.mubr.msk.bf16.gmra.mxu0 %vm220_vm1, %v9051_v25  ;;  %v10815_v11 = vpop.f32.mrf.mxu1  ;;  %8369 = vmatmul.mubr.msk.bf16.gmra.mxu1 %vm220_vm1, %v9052_v41 }
 0x23f   :  { %13165 = vst [vmem:[#allocation36_spill] sm:$0xff] %v10815_v11  ;;  %v10821_v63 = vmax.f32 %v13168_v38, %v1516_v40  ;;  %8266 = vmatprep.mubr.msk.bf16.mxu0 %vm9193_vm0, %v13007_v27  ;;  %8372 = vmatprep.mubr.msk.bf16.mxu1 %vm9193_vm0, %v13007_v27  ;;  %v13171_v38 = vld [vmem:[#allocation39_spill] sm:$0xff]  ;;  %v13172_v40 = vld [vmem:[#allocation40_spill] sm:$0xff]  ;;  %v13176_v11 = vld [vmem:[#allocation41_spill] sm:$0xff] }
 0x240   :  { %v8056_v39 = vpop.f32.mrf.mxu0  ;;  %v8162_v34 = vpop.f32.mrf.mxu1  ;;  %v13173_v41 = vmax.f32 %v13171_v38, %v13172_v40 }
 0x241   :  { %13169 = vst [vmem:[#allocation37_spill] sm:$0xff] %v10821_v63  ;;  %v13177_v63 = vld [vmem:[#allocation42_spill] sm:$0xff] }
 0x242   :  { %v1519_v44 = vpop.f32.mrf.mxu0  ;;  %v10829_v56 = vpop.f32.mrf.mxu1  ;;  %v13178_v26 = vmax.f32 %v13176_v11, %v13177_v63  ;;  %v9055_v63 = vld [vmem:[%s12786_s0 + $0x3d0] sm:$0xff]   ;;  %v9056_v11 = vld [vmem:[%s12786_s0 + $0x498] sm:$0xff]  }
 0x243   :  { %13170 = vst [vmem:[#allocation38_spill] sm:$0xff] %v10829_v56  ;;  %v10840_v9 = vmax.f32 %v13173_v41, %v1519_v44 }
 0x244   :  { %v8057_v12 = vpop.f32.mrf.mxu0  ;;  %v8163_v39 = vpop.f32.mrf.mxu1 }
 0x245   :  { %13174 = vst [vmem:[#allocation39_spill] sm:$0xff] %v10840_v9 }
 0x246   :  { %v1524_v25 = vpop.f32.mrf.mxu0  ;;  %8267 = vmatmul.mubr.msk.bf16.gmra.mxu0 %vm220_vm1, %v9053_v19  ;;  %v10845_v51 = vpop.f32.mrf.mxu1  ;;  %8373 = vmatmul.mubr.msk.bf16.gmra.mxu1 %vm220_vm1, %v9054_v61 }
 0x247   :  { %13175 = vst [vmem:[#allocation40_spill] sm:$0xff] %v10845_v51  ;;  %v10851_v32 = vmax.f32 %v13178_v26, %v1524_v25  ;;  %8270 = vmatprep.mubr.msk.bf16.mxu0 %vm9193_vm0, %v13007_v27  ;;  %8376 = vmatprep.mubr.msk.bf16.mxu1 %vm9193_vm0, %v13007_v27  ;;  %v13181_v26 = vld [vmem:[#allocation43_spill] sm:$0xff]  ;;  %v13182_v25 = vld [vmem:[#allocation44_spill] sm:$0xff]  ;;  %v13186_v51 = vld [vmem:[#allocation45_spill] sm:$0xff] }
 0x248   :  { %v8060_v44 = vpop.f32.mrf.mxu0  ;;  %v8166_v38 = vpop.f32.mrf.mxu1  ;;  %v13183_v61 = vmax.f32 %v13181_v26, %v13182_v25 }
 0x249   :  { %13179 = vst [vmem:[#allocation41_spill] sm:$0xff] %v10851_v32  ;;  %v13187_v32 = vld [vmem:[#allocation46_spill] sm:$0xff] }
 0x24a   :  { %v1527_v40 = vpop.f32.mrf.mxu0  ;;  %v10859_v41 = vpop.f32.mrf.mxu1  ;;  %v13188_v56 = vmax.f32 %v13186_v51, %v13187_v32  ;;  %v9057_v32 = vld [vmem:[%s12786_s0 + $0x3d8] sm:$0xff]   ;;  %v9058_v51 = vld [vmem:[%s12786_s0 + $0x4a0] sm:$0xff]  }
 0x24b   :  { %13180 = vst [vmem:[#allocation42_spill] sm:$0xff] %v10859_v41  ;;  %v10870_v12 = vmax.f32 %v13183_v61, %v1527_v40 }
 0x24c   :  { %v8061_v39 = vpop.f32.mrf.mxu0  ;;  %v8167_v44 = vpop.f32.mrf.mxu1 }
 0x24d   :  { %13184 = vst [vmem:[#allocation43_spill] sm:$0xff] %v10870_v12 }
 0x24e   :  { %v1532_v19 = vpop.f32.mrf.mxu0  ;;  %8271 = vmatmul.mubr.msk.bf16.gmra.mxu0 %vm220_vm1, %v9055_v63  ;;  %v10875_v34 = vpop.f32.mrf.mxu1  ;;  %8377 = vmatmul.mubr.msk.bf16.gmra.mxu1 %vm220_vm1, %v9056_v11 }
 0x24f   :  { %13185 = vst [vmem:[#allocation44_spill] sm:$0xff] %v10875_v34  ;;  %v10881_v9 = vmax.f32 %v13188_v56, %v1532_v19  ;;  %8274 = vmatprep.mubr.msk.bf16.mxu0 %vm9193_vm0, %v13007_v27  ;;  %8380 = vmatprep.mubr.msk.bf16.mxu1 %vm9193_vm0, %v13007_v27  ;;  %v13191_v56 = vld [vmem:[#allocation47_spill] sm:$0xff]  ;;  %v13192_v19 = vld [vmem:[#allocation48_spill] sm:$0xff]  ;;  %v13196_v34 = vld [vmem:[#allocation49_spill] sm:$0xff] }
 0x250   :  { %v8064_v40 = vpop.f32.mrf.mxu0  ;;  %v8170_v26 = vpop.f32.mrf.mxu1  ;;  %v13193_v11 = vmax.f32 %v13191_v56, %v13192_v19 }
 0x251   :  { %13189 = vst [vmem:[#allocation45_spill] sm:$0xff] %v10881_v9  ;;  %v13197_v9 = vld [vmem:[#allocation50_spill] sm:$0xff] }
 0x252   :  { %v1535_v25 = vpop.f32.mrf.mxu0  ;;  %v10889_v61 = vpop.f32.mrf.mxu1  ;;  %v13198_v41 = vmax.f32 %v13196_v34, %v13197_v9  ;;  %v9059_v9 = vld [vmem:[%s12786_s0 + $0x3e0] sm:$0xff]   ;;  %v9060_v34 = vld [vmem:[%s12786_s0 + $0x4a8] sm:$0xff]  }
 0x253   :  { %13190 = vst [vmem:[#allocation46_spill] sm:$0xff] %v10889_v61  ;;  %v10900_v39 = vmax.f32 %v13193_v11, %v1535_v25 }
 0x254   :  { %v8065_v44 = vpop.f32.mrf.mxu0  ;;  %v8171_v40 = vpop.f32.mrf.mxu1 }
 0x255   :  { %13194 = vst [vmem:[#allocation47_spill] sm:$0xff] %v10900_v39 }
 0x256   :  { %v1540_v63 = vpop.f32.mrf.mxu0  ;;  %8275 = vmatmul.mubr.msk.bf16.gmra.mxu0 %vm220_vm1, %v9057_v32  ;;  %v10905_v38 = vpop.f32.mrf.mxu1  ;;  %8381 = vmatmul.mubr.msk.bf16.gmra.mxu1 %vm220_vm1, %v9058_v51 }
 0x257   :  { %13195 = vst [vmem:[#allocation48_spill] sm:$0xff] %v10905_v38  ;;  %v10911_v12 = vmax.f32 %v13198_v41, %v1540_v63  ;;  %8278 = vmatprep.mubr.msk.bf16.mxu0 %vm9193_vm0, %v13007_v27  ;;  %8384 = vmatprep.mubr.msk.bf16.mxu1 %vm9193_vm0, %v13007_v27  ;;  %v13200_v41 = vld [vmem:[#allocation51_spill] sm:$0xff]  ;;  %v13201_v63 = vld [vmem:[#allocation52_spill] sm:$0xff]  ;;  %v13203_v38 = vld [vmem:[#allocation54_spill] sm:$0xff] }
 0x258   :  { %v8068_v25 = vpop.f32.mrf.mxu0  ;;  %v8174_v56 = vpop.f32.mrf.mxu1  ;;  %v13202_v51 = vmax.f32 %v13200_v41, %v13201_v63 }
 0x259   :  { %13199 = vst [vmem:[#allocation49_spill] sm:$0xff] %v10911_v12  ;;  %v13204_v12 = vld [vmem:[#allocation53_spill] sm:$0xff] }
 0x25a   :  { %v1543_v19 = vpop.f32.mrf.mxu0  ;;  %v10919_v11 = vpop.f32.mrf.mxu1  ;;  %v13205_v61 = vmax.f32 %v13203_v38, %v13204_v12  ;;  %v9061_v12 = vld [vmem:[%s12786_s0 + $0x4b0] sm:$0xff]   ;;  %v9062_v38 = vld [vmem:[%s12786_s0 + $0x578] sm:$0xff]  }
 0x25b   :  { %v10930_v44 = vmax.f32 %v13202_v51, %v1543_v19 }
 0x25c   :  { %v8069_v40 = vpop.f32.mrf.mxu0  ;;  %v8175_v25 = vpop.f32.mrf.mxu1 }
 0x25e   :  { %v2416_v32 = vpop.f32.mrf.mxu0  ;;  %8279 = vmatmul.mubr.msk.bf16.gmra.mxu0 %vm220_vm1, %v9059_v9  ;;  %v10935_v26 = vpop.f32.mrf.mxu1  ;;  %8385 = vmatmul.mubr.msk.bf16.gmra.mxu1 %vm220_vm1, %v9060_v34  ;;  %v13207_v9 = vmax.f32 %v10209_v0, %v10203_v49 }
 0x25f   :  { %v10941_v39 = vmax.f32 %v13205_v61, %v2416_v32  ;;  %8394 = vmatprep.mubr.msk.bf16.mxu0 %vm9193_vm0, %v13007_v27  ;;  %8500 = vmatprep.mubr.msk.bf16.mxu1 %vm9193_vm0, %v13007_v27  ;;  %v13206_v61 = vmax.f32 %v10198_v1, %v10187_v13  ;;  %v9189_v13 = vld [vmem:[%s12785_s1 + $0x10] sm:$0xff]  }
 0x260   :  { %v8184_v19 = vpop.f32.mrf.mxu0  ;;  %v8290_v41 = vpop.f32.mrf.mxu1 }
 0x262   :  { %v2419_v63 = vpop.f32.mrf.mxu0  ;;  %v10949_v51 = vpop.f32.mrf.mxu1 }
 0x263   :  { %v10960_v32 = vmax.f32 %v13206_v61, %v2419_v63  ;;  %v13208_v61 = vmax.f32 %v10232_v55, %v10220_v4  ;;  %v13209_v4 = vmax.f32 %v10246_v10, %v10240_v59  ;;  %v9065_v10 = vld [vmem:[%s12786_s0 + $0x4c0] sm:$0xff]  }
 0x264   :  { %v8185_v34 = vpop.f32.mrf.mxu0  ;;  %v8291_v40 = vpop.f32.mrf.mxu1 }
 0x265   :  { %v9190_v40 = vld [vmem:[%s12785_s1 + $0x8] sm:$0xff]  }
 0x266   :  { %v2424_v19 = vpop.f32.mrf.mxu0  ;;  %8395 = vmatmul.mubr.msk.bf16.vlgmr.msra.gmra.mxu0 %vm220_vm1, %v9061_v12  ;;  %v10965_v41 = vpop.f32.mrf.mxu1  ;;  %8501 = vmatmul.mubr.msk.bf16.vlgmr.msra.gmra.mxu1 %vm220_vm1, %v9062_v38  ;;  %v9063_v12 = vld [vmem:[%s12786_s0 + $0x4b8] sm:$0xff]   ;;  %v9064_v38 = vld [vmem:[%s12786_s0 + $0x580] sm:$0xff]  }
 0x267   :  { %v10971_v56 = vmax.f32 %v13207_v9, %v2424_v19  ;;  %8601 = vmatpush3.bf16.msra.mxu0 %v9189_v13  ;;  %8398 = vmatprep.mubr.msk.bf16.mxu0 %vm9193_vm0, %v13007_v27 }
 0x268   :  { %v8188_v1 = vpop.f32.mrf.mxu0  ;;  %v8294_v63 = vpop.f32.mrf.mxu1  ;;  %8504 = vmatprep.mubr.msk.bf16.mxu1 %vm9193_vm0, %v13007_v27  ;;  %8602 = vmatprep.subr.bf16.mxu0 %v13007_v27 }
 0x269   :  { %v13211_v1 = vmax.f32 %v10281_v3, %v10275_v60  ;;  %v9067_v3 = vld [vmem:[%s12786_s0 + $0x4c8] sm:$0xff]   ;;  %v9068_v60 = vld [vmem:[%s12786_s0 + $0x590] sm:$0xff]  }
 0x26a   :  { %v2427_v49 = vpop.f32.mrf.mxu0  ;;  %v10983_v9 = vpop.f32.mrf.mxu1 }
 0x26b   :  { %v10994_v34 = vmax.f32 %v13208_v61, %v2427_v49  ;;  %8603 = vmatpush3.bf16.msra.mxu0 %v9190_v40 }
 0x26c   :  { %v8189_v19 = vpop.f32.mrf.mxu0  ;;  %v8295_v13 = vpop.f32.mrf.mxu1  ;;  %8604 = vmatprep.subr.bf16.mxu0 %v13007_v27 }
 0x26d   :  { %v9066_v19 = vld [vmem:[%s12786_s0 + $0x588] sm:$0xff]   ;;  %v13210_v13 = vmax.f32 %v10270_v6, %v10258_v18 }
 0x26e   :  { %v2432_v63 = vpop.f32.mrf.mxu0  ;;  %8399 = vmatmul.mubr.msk.bf16.gmra.mxu0 %vm220_vm1, %v9063_v12  ;;  %v11003_v0 = vpop.f32.mrf.mxu1  ;;  %8505 = vmatmul.mubr.msk.bf16.gmra.mxu1 %vm220_vm1, %v9064_v38  ;;  %v9191_v12 = vld [vmem:[%s12785_s1] sm:$0xff]  }
 0x26f   :  { %v11009_v55 = vmax.f32 %v13209_v4, %v2432_v63  ;;  %8402 = vmatprep.mubr.msk.bf16.mxu0 %vm9193_vm0, %v13007_v27  ;;  %8508 = vmatprep.mubr.msk.bf16.mxu1 %vm9193_vm0, %v13007_v27 }
 0x270   :  { %v8192_v49 = vpop.f32.mrf.mxu0  ;;  %v8298_v61 = vpop.f32.mrf.mxu1  ;;  %8605 = vmatpush3.bf16.msra.mxu0 %v9191_v12 }
 0x272   :  { %v2435_v40 = vpop.f32.mrf.mxu0  ;;  %v11020_v59 = vpop.f32.mrf.mxu1 }
 0x273   :  { %v11031_v63 = vmax.f32 %v13210_v13, %v2435_v40  ;;  %v13213_v40 = vmax.f32 %v10311_v5, %v10305_v24  ;;  %v9069_v5 = vld [vmem:[%s12786_s0 + $0x4d0] sm:$0xff]   ;;  %v9070_v24 = vld [vmem:[%s12786_s0 + $0x598] sm:$0xff]  }
 0x274   :  { %v8193_v4 = vpop.f32.mrf.mxu0  ;;  %v8299_v49 = vpop.f32.mrf.mxu1 }
 0x276   :  { %v2440_v12 = vpop.f32.mrf.mxu0  ;;  %8403 = vmatmul.mubr.msk.bf16.gmra.mxu0 %vm220_vm1, %v9065_v10  ;;  %v11036_v38 = vpop.f32.mrf.mxu1  ;;  %8509 = vmatmul.mubr.msk.bf16.gmra.mxu1 %vm220_vm1, %v9066_v19 }
 0x277   :  { %v11042_v25 = vmax.f32 %v13211_v1, %v2440_v12  ;;  %8406 = vmatprep.mubr.msk.bf16.mxu0 %vm9193_vm0, %v13007_v27  ;;  %8512 = vmatprep.mubr.msk.bf16.mxu1 %vm9193_vm0, %v13007_v27  ;;  %v13212_v1 = vmax.f32 %v10300_v22, %v10289_v54 }
 0x278   :  { %v8196_v18 = vpop.f32.mrf.mxu0  ;;  %v8302_v6 = vpop.f32.mrf.mxu1 }
 0x27a   :  { %v2443_v10 = vpop.f32.mrf.mxu0  ;;  %v11050_v13 = vpop.f32.mrf.mxu1 }
 0x27b   :  { %v11061_v19 = vmax.f32 %v13212_v1, %v2443_v10  ;;  %v13215_v10 = vmax.f32 %v10341_v14, %v10335_v36  ;;  %v9071_v14 = vld [vmem:[%s12786_s0 + $0x4d8] sm:$0xff]   ;;  %v9072_v36 = vld [vmem:[%s12786_s0 + $0x5a0] sm:$0xff]  }
 0x27c   :  { %v8197_v4 = vpop.f32.mrf.mxu0  ;;  %v8303_v49 = vpop.f32.mrf.mxu1 }
 0x27e   :  { %v2448_v18 = vpop.f32.mrf.mxu0  ;;  %8407 = vmatmul.mubr.msk.bf16.gmra.mxu0 %vm220_vm1, %v9067_v3  ;;  %v11066_v6 = vpop.f32.mrf.mxu1  ;;  %8513 = vmatmul.mubr.msk.bf16.gmra.mxu1 %vm220_vm1, %v9068_v60 }
 0x27f   :  { %v11072_v61 = vmax.f32 %v13213_v40, %v2448_v18  ;;  %8410 = vmatprep.mubr.msk.bf16.mxu0 %vm9193_vm0, %v13007_v27  ;;  %8516 = vmatprep.mubr.msk.bf16.mxu1 %vm9193_vm0, %v13007_v27  ;;  %v13214_v40 = vmax.f32 %v10330_v31, %v10319_v52 }
 0x280   :  { %v8200_v54 = vpop.f32.mrf.mxu0  ;;  %v8306_v22 = vpop.f32.mrf.mxu1 }
 0x282   :  { %v2451_v3 = vpop.f32.mrf.mxu0  ;;  %v11080_v1 = vpop.f32.mrf.mxu1 }
 0x283   :  { %v11091_v60 = vmax.f32 %v13214_v40, %v2451_v3  ;;  %v13217_v3 = vmax.f32 %v10371_v23, %v10365_v48  ;;  %v9073_v23 = vld [vmem:[%s12786_s0 + $0x4e0] sm:$0xff]   ;;  %v9074_v48 = vld [vmem:[%s12786_s0 + $0x5a8] sm:$0xff]  }
 0x284   :  { %v8201_v4 = vpop.f32.mrf.mxu0  ;;  %v8307_v49 = vpop.f32.mrf.mxu1 }
 0x286   :  { %v2456_v54 = vpop.f32.mrf.mxu0  ;;  %8411 = vmatmul.mubr.msk.bf16.gmra.mxu0 %vm220_vm1, %v9069_v5  ;;  %v11096_v22 = vpop.f32.mrf.mxu1  ;;  %8517 = vmatmul.mubr.msk.bf16.gmra.mxu1 %vm220_vm1, %v9070_v24 }
 0x287   :  { %v11102_v12 = vmax.f32 %v13215_v10, %v2456_v54  ;;  %8414 = vmatprep.mubr.msk.bf16.mxu0 %vm9193_vm0, %v13007_v27  ;;  %8520 = vmatprep.mubr.msk.bf16.mxu1 %vm9193_vm0, %v13007_v27  ;;  %v13216_v10 = vmax.f32 %v10360_v43, %v10349_v17 }
 0x288   :  { %v8204_v52 = vpop.f32.mrf.mxu0  ;;  %v8310_v31 = vpop.f32.mrf.mxu1 }
 0x28a   :  { %v2459_v5 = vpop.f32.mrf.mxu0  ;;  %v11110_v40 = vpop.f32.mrf.mxu1 }
 0x28b   :  { %v11121_v24 = vmax.f32 %v13216_v10, %v2459_v5  ;;  %v13219_v5 = vmax.f32 %v10401_v35, %v10395_v7  ;;  %v9075_v35 = vld [vmem:[%s12786_s0 + $0x4e8] sm:$0xff]   ;;  %v9076_v7 = vld [vmem:[%s12786_s0 + $0x5b0] sm:$0xff]  }
 0x28c   :  { %v8205_v4 = vpop.f32.mrf.mxu0  ;;  %v8311_v49 = vpop.f32.mrf.mxu1 }
 0x28e   :  { %v2464_v52 = vpop.f32.mrf.mxu0  ;;  %8415 = vmatmul.mubr.msk.bf16.gmra.mxu0 %vm220_vm1, %v9071_v14  ;;  %v11126_v31 = vpop.f32.mrf.mxu1  ;;  %8521 = vmatmul.mubr.msk.bf16.gmra.mxu1 %vm220_vm1, %v9072_v36 }
 0x28f   :  { %v11132_v18 = vmax.f32 %v13217_v3, %v2464_v52  ;;  %8418 = vmatprep.mubr.msk.bf16.mxu0 %vm9193_vm0, %v13007_v27  ;;  %8524 = vmatprep.mubr.msk.bf16.mxu1 %vm9193_vm0, %v13007_v27  ;;  %v13218_v3 = vmax.f32 %v10390_v58, %v10379_v15 }
 0x290   :  { %v8208_v17 = vpop.f32.mrf.mxu0  ;;  %v8314_v43 = vpop.f32.mrf.mxu1 }
 0x292   :  { %v2467_v14 = vpop.f32.mrf.mxu0  ;;  %v11140_v10 = vpop.f32.mrf.mxu1 }
 0x293   :  { %v11151_v36 = vmax.f32 %v13218_v3, %v2467_v14  ;;  %v13221_v14 = vmax.f32 %v10431_v47, %v10425_v33  ;;  %v9077_v47 = vld [vmem:[%s12786_s0 + $0x4f0] sm:$0xff]   ;;  %v9078_v33 = vld [vmem:[%s12786_s0 + $0x5b8] sm:$0xff]  }
 0x294   :  { %v8209_v4 = vpop.f32.mrf.mxu0  ;;  %v8315_v49 = vpop.f32.mrf.mxu1 }
 0x296   :  { %v2472_v17 = vpop.f32.mrf.mxu0  ;;  %8419 = vmatmul.mubr.msk.bf16.gmra.mxu0 %vm220_vm1, %v9073_v23  ;;  %v11156_v43 = vpop.f32.mrf.mxu1  ;;  %8525 = vmatmul.mubr.msk.bf16.gmra.mxu1 %vm220_vm1, %v9074_v48 }
 0x297   :  { %v11162_v54 = vmax.f32 %v13219_v5, %v2472_v17  ;;  %8422 = vmatprep.mubr.msk.bf16.mxu0 %vm9193_vm0, %v13007_v27  ;;  %8528 = vmatprep.mubr.msk.bf16.mxu1 %vm9193_vm0, %v13007_v27  ;;  %v13220_v5 = vmax.f32 %v10420_v21, %v10409_v30 }
 0x298   :  { %v8212_v15 = vpop.f32.mrf.mxu0  ;;  %v8318_v58 = vpop.f32.mrf.mxu1 }
 0x29a   :  { %v2475_v23 = vpop.f32.mrf.mxu0  ;;  %v11170_v3 = vpop.f32.mrf.mxu1 }
 0x29b   :  { %v11181_v48 = vmax.f32 %v13220_v5, %v2475_v23  ;;  %v13223_v23 = vmax.f32 %v10461_v2, %v10455_v62  ;;  %v9079_v2 = vld [vmem:[%s12786_s0 + $0x4f8] sm:$0xff]   ;;  %v9080_v62 = vld [vmem:[%s12786_s0 + $0x5c0] sm:$0xff]  }
 0x29c   :  { %v8213_v4 = vpop.f32.mrf.mxu0  ;;  %v8319_v49 = vpop.f32.mrf.mxu1 }
 0x29e   :  { %v2480_v15 = vpop.f32.mrf.mxu0  ;;  %8423 = vmatmul.mubr.msk.bf16.gmra.mxu0 %vm220_vm1, %v9075_v35  ;;  %v11186_v58 = vpop.f32.mrf.mxu1  ;;  %8529 = vmatmul.mubr.msk.bf16.gmra.mxu1 %vm220_vm1, %v9076_v7 }
 0x29f   :  { %v11192_v52 = vmax.f32 %v13221_v14, %v2480_v15  ;;  %8426 = vmatprep.mubr.msk.bf16.mxu0 %vm9193_vm0, %v13007_v27  ;;  %8532 = vmatprep.mubr.msk.bf16.mxu1 %vm9193_vm0, %v13007_v27  ;;  %v13222_v14 = vmax.f32 %v10450_v46, %v10439_v42 }
 0x2a0   :  { %v8216_v30 = vpop.f32.mrf.mxu0  ;;  %v8322_v21 = vpop.f32.mrf.mxu1 }
 0x2a2   :  { %v2483_v35 = vpop.f32.mrf.mxu0  ;;  %v11200_v5 = vpop.f32.mrf.mxu1 }
 0x2a3   :  { %v11211_v7 = vmax.f32 %v13222_v14, %v2483_v35  ;;  %v13225_v35 = vmax.f32 %v10491_v29, %v10485_v50  ;;  %v9081_v29 = vld [vmem:[%s12786_s0 + $0x500] sm:$0xff]   ;;  %v9082_v50 = vld [vmem:[%s12786_s0 + $0x5c8] sm:$0xff]  }
 0x2a4   :  { %v8217_v4 = vpop.f32.mrf.mxu0  ;;  %v8323_v49 = vpop.f32.mrf.mxu1 }
 0x2a6   :  { %v2488_v30 = vpop.f32.mrf.mxu0  ;;  %8427 = vmatmul.mubr.msk.bf16.gmra.mxu0 %vm220_vm1, %v9077_v47  ;;  %v11216_v21 = vpop.f32.mrf.mxu1  ;;  %8533 = vmatmul.mubr.msk.bf16.gmra.mxu1 %vm220_vm1, %v9078_v33 }
 0x2a7   :  { %v11222_v17 = vmax.f32 %v13223_v23, %v2488_v30  ;;  %8430 = vmatprep.mubr.msk.bf16.mxu0 %vm9193_vm0, %v13007_v27  ;;  %8536 = vmatprep.mubr.msk.bf16.mxu1 %vm9193_vm0, %v13007_v27  ;;  %v13224_v23 = vmax.f32 %v10480_v28, %v10469_v57 }
 0x2a8   :  { %v8220_v42 = vpop.f32.mrf.mxu0  ;;  %v8326_v46 = vpop.f32.mrf.mxu1 }
 0x2aa   :  { %v2491_v47 = vpop.f32.mrf.mxu0  ;;  %v11230_v14 = vpop.f32.mrf.mxu1 }
 0x2ab   :  { %v11241_v33 = vmax.f32 %v13224_v23, %v2491_v47  ;;  %v13228_v47 = vmax.f32 %v10521_v53, %v10515_v16  ;;  %v9083_v53 = vld [vmem:[%s12786_s0 + $0x508] sm:$0xff]   ;;  %v9084_v16 = vld [vmem:[%s12786_s0 + $0x5d0] sm:$0xff]  }
 0x2ac   :  { %v8221_v4 = vpop.f32.mrf.mxu0  ;;  %v8327_v49 = vpop.f32.mrf.mxu1 }
 0x2ae   :  { %v2496_v42 = vpop.f32.mrf.mxu0  ;;  %8431 = vmatmul.mubr.msk.bf16.gmra.mxu0 %vm220_vm1, %v9079_v2  ;;  %v11246_v46 = vpop.f32.mrf.mxu1  ;;  %8537 = vmatmul.mubr.msk.bf16.gmra.mxu1 %vm220_vm1, %v9080_v62 }
 0x2af   :  { %v11252_v15 = vmax.f32 %v13225_v35, %v2496_v42  ;;  %8434 = vmatprep.mubr.msk.bf16.mxu0 %vm9193_vm0, %v13007_v27  ;;  %8540 = vmatprep.mubr.msk.bf16.mxu1 %vm9193_vm0, %v13007_v27  ;;  %v13226_v35 = vmax.f32 %v10510_v37, %v10499_v20  ;;  %v13234_v42 = vld [vmem:[#allocation2_spill] sm:$0xff] }
 0x2b0   :  { %v8224_v57 = vpop.f32.mrf.mxu0  ;;  %v8330_v28 = vpop.f32.mrf.mxu1 }
 0x2b2   :  { %v2499_v2 = vpop.f32.mrf.mxu0  ;;  %v11260_v23 = vpop.f32.mrf.mxu1 }
 0x2b3   :  { %v11271_v62 = vmax.f32 %v13226_v35, %v2499_v2  ;;  %v9113_v2 = vld [vmem:[%s12787_s3 + $0x18] sm:$0xff]  }
 0x2b4   :  { %v8225_v4 = vpop.f32.mrf.mxu0  ;;  %v8331_v49 = vpop.f32.mrf.mxu1  ;;  %8707 = vmatpush3.bf16.msra.mxu1 %v9113_v2 }
 0x2b5   :  { %8708 = vmatprep.subr.bf16.mxu1 %v13007_v27 }
 0x2b6   :  { %v2504_v57 = vpop.f32.mrf.mxu0  ;;  %8435 = vmatmul.mubr.msk.bf16.gmra.mxu0 %vm220_vm1, %v9081_v29  ;;  %v11276_v28 = vpop.f32.mrf.mxu1  ;;  %8541 = vmatmul.mubr.msk.bf16.gmra.mxu1 %vm220_vm1, %v9082_v50 }
 0x2b7   :  { %13227 = vst [vmem:[#allocation50_spill] sm:$0xff] %v11276_v28  ;;  %v11282_v30 = vmax.f32 %v13228_v47, %v2504_v57  ;;  %8438 = vmatprep.mubr.msk.bf16.mxu0 %vm9193_vm0, %v13007_v27  ;;  %8544 = vmatprep.mubr.msk.bf16.mxu1 %vm9193_vm0, %v13007_v27  ;;  %v13231_v47 = vmax.f32 %v10540_v8, %v10529_v45  ;;  %v13235_v45 = vld [vmem:[#allocation55_spill] sm:$0xff] }
 0x2b8   :  { %v8228_v20 = vpop.f32.mrf.mxu0  ;;  %v8334_v37 = vpop.f32.mrf.mxu1  ;;  %v13236_v8 = vmax.f32 %v13234_v42, %v13235_v45  ;;  %v13239_v45 = vld [vmem:[#allocation3_spill] sm:$0xff]  ;;  %v13244_v42 = vld [vmem:[#allocation5_spill] sm:$0xff] }
 0x2b9   :  { %13229 = vst [vmem:[#allocation51_spill] sm:$0xff] %v11282_v30 }
 0x2ba   :  { %v2507_v29 = vpop.f32.mrf.mxu0  ;;  %v11290_v35 = vpop.f32.mrf.mxu1 }
 0x2bb   :  { %13230 = vst [vmem:[#allocation52_spill] sm:$0xff] %v11290_v35  ;;  %v11301_v50 = vmax.f32 %v13231_v47, %v2507_v29 }
 0x2bc   :  { %v8229_v4 = vpop.f32.mrf.mxu0  ;;  %v8335_v49 = vpop.f32.mrf.mxu1 }
 0x2bd   :  { %13232 = vst [vmem:[#allocation54_spill] sm:$0xff] %v11301_v50  ;;  %v9086_v4 = vld [vmem:[%s12786_s0 + $0x5d8] sm:$0xff]  }
 0x2be   :  { %v2512_v20 = vpop.f32.mrf.mxu0  ;;  %8439 = vmatmul.mubr.msk.bf16.gmra.mxu0 %vm220_vm1, %v9083_v53  ;;  %v11306_v37 = vpop.f32.mrf.mxu1  ;;  %8545 = vmatmul.mubr.msk.bf16.gmra.mxu1 %vm220_vm1, %v9084_v16  ;;  %v9085_v16 = vld [vmem:[%s12786_s0 + $0x510] sm:$0xff]  }
 0x2bf   :  { %13233 = vst [vmem:[#allocation53_spill] sm:$0xff] %v11306_v37  ;;  %v11315_v29 = vmax.f32 %v13236_v8, %v2512_v20  ;;  %8442 = vmatprep.mubr.msk.bf16.mxu0 %vm9193_vm0, %v13007_v27  ;;  %8548 = vmatprep.mubr.msk.bf16.mxu1 %vm9193_vm0, %v13007_v27  ;;  %v13240_v8 = vld [vmem:[#allocation56_spill] sm:$0xff] }
 0x2c0   :  { %v8232_v53 = vpop.f32.mrf.mxu0  ;;  %v8338_v47 = vpop.f32.mrf.mxu1  ;;  %v13245_v37 = vld [vmem:[#allocation4_spill] sm:$0xff] }
 0x2c1   :  { %13237 = vst [vmem:[#allocation2_spill] sm:$0xff] %v11315_v29  ;;  %v13241_v53 = vmax.f32 %v13239_v45, %v13240_v8  ;;  %v13246_v29 = vmax.f32 %v13244_v42, %v13245_v37  ;;  %v13249_v42 = vld [vmem:[#allocation7_spill] sm:$0xff] }
 0x2c2   :  { %v2515_v49 = vpop.f32.mrf.mxu0  ;;  %v11330_v20 = vpop.f32.mrf.mxu1 }
 0x2c3   :  { %13238 = vst [vmem:[#allocation55_spill] sm:$0xff] %v11330_v20  ;;  %v11335_v47 = vmax.f32 %v13241_v53, %v2515_v49  ;;  %v13250_v49 = vld [vmem:[#allocation6_spill] sm:$0xff] }
 0x2c4   :  { %v8233_v57 = vpop.f32.mrf.mxu0  ;;  %v8339_v35 = vpop.f32.mrf.mxu1  ;;  %v13251_v45 = vmax.f32 %v13249_v42, %v13250_v49  ;;  %v13260_v49 = vld [vmem:[#allocation10_spill] sm:$0xff] }
 0x2c5   :  { %13242 = vst [vmem:[#allocation3_spill] sm:$0xff] %v11335_v47 }
 0x2c6   :  { %v2520_v28 = vpop.f32.mrf.mxu0  ;;  %8443 = vmatmul.mubr.msk.bf16.gmra.mxu0 %vm220_vm1, %v9085_v16  ;;  %v11340_v2 = vpop.f32.mrf.mxu1  ;;  %8549 = vmatmul.mubr.msk.bf16.gmra.mxu1 %vm220_vm1, %v9086_v4  ;;  %v9087_v16 = vld [vmem:[%s12786_s0 + $0x518] sm:$0xff]   ;;  %v9088_v4 = vld [vmem:[%s12786_s0 + $0x5e0] sm:$0xff]  }
 0x2c7   :  { %13243 = vst [vmem:[#allocation56_spill] sm:$0xff] %v11340_v2  ;;  %v11346_v30 = vmax.f32 %v13246_v29, %v2520_v28  ;;  %8446 = vmatprep.mubr.msk.bf16.mxu0 %vm9193_vm0, %v13007_v27  ;;  %8552 = vmatprep.mubr.msk.bf16.mxu1 %vm9193_vm0, %v13007_v27  ;;  %v13254_v28 = vld [vmem:[#allocation9_spill] sm:$0xff]  ;;  %v13255_v2 = vld [vmem:[#allocation8_spill] sm:$0xff] }
 0x2c8   :  { %v8236_v35 = vpop.f32.mrf.mxu0  ;;  %v8342_v57 = vpop.f32.mrf.mxu1 }
 0x2c9   :  { %13247 = vst [vmem:[#allocation5_spill] sm:$0xff] %v11346_v30  ;;  %v13256_v30 = vmax.f32 %v13254_v28, %v13255_v2  ;;  %v13259_v28 = vld [vmem:[#allocation11_spill] sm:$0xff] }
 0x2ca   :  { %v2523_v37 = vpop.f32.mrf.mxu0  ;;  %v11360_v29 = vpop.f32.mrf.mxu1 }
 0x2cb   :  { %13248 = vst [vmem:[#allocation4_spill] sm:$0xff] %v11360_v29  ;;  %v11365_v8 = vmax.f32 %v13251_v45, %v2523_v37  ;;  %v13261_v45 = vmax.f32 %v13259_v28, %v13260_v49  ;;  %v13270_v49 = vld [vmem:[#allocation14_spill] sm:$0xff] }
 0x2cc   :  { %v8237_v53 = vpop.f32.mrf.mxu0  ;;  %v8343_v35 = vpop.f32.mrf.mxu1 }
 0x2cd   :  { %13252 = vst [vmem:[#allocation7_spill] sm:$0xff] %v11365_v8 }
 0x2ce   :  { %v2528_v50 = vpop.f32.mrf.mxu0  ;;  %8447 = vmatmul.mubr.msk.bf16.gmra.mxu0 %vm220_vm1, %v9087_v16  ;;  %v11370_v20 = vpop.f32.mrf.mxu1  ;;  %8553 = vmatmul.mubr.msk.bf16.gmra.mxu1 %vm220_vm1, %v9088_v4  ;;  %v9089_v16 = vld [vmem:[%s12786_s0 + $0x520] sm:$0xff]   ;;  %v9090_v4 = vld [vmem:[%s12786_s0 + $0x5e8] sm:$0xff]  }
 0x2cf   :  { %13253 = vst [vmem:[#allocation6_spill] sm:$0xff] %v11370_v20  ;;  %v11376_v47 = vmax.f32 %v13256_v30, %v2528_v50  ;;  %8450 = vmatprep.mubr.msk.bf16.mxu0 %vm9193_vm0, %v13007_v27  ;;  %8556 = vmatprep.mubr.msk.bf16.mxu1 %vm9193_vm0, %v13007_v27  ;;  %v13264_v30 = vld [vmem:[#allocation13_spill] sm:$0xff]  ;;  %v13265_v20 = vld [vmem:[#allocation12_spill] sm:$0xff] }
 0x2d0   :  { %v8240_v37 = vpop.f32.mrf.mxu0  ;;  %v8346_v42 = vpop.f32.mrf.mxu1 }
 0x2d1   :  { %13257 = vst [vmem:[#allocation9_spill] sm:$0xff] %v11376_v47  ;;  %v13266_v47 = vmax.f32 %v13264_v30, %v13265_v20  ;;  %v13269_v30 = vld [vmem:[#allocation15_spill] sm:$0xff]  ;;  %v13274_v20 = vld [vmem:[#allocation17_spill] sm:$0xff] }
 0x2d2   :  { %v2531_v50 = vpop.f32.mrf.mxu0  ;;  %v11390_v2 = vpop.f32.mrf.mxu1 }
 0x2d3   :  { %13258 = vst [vmem:[#allocation8_spill] sm:$0xff] %v11390_v2  ;;  %v11395_v53 = vmax.f32 %v13261_v45, %v2531_v50  ;;  %v13271_v45 = vmax.f32 %v13269_v30, %v13270_v49 }
 0x2d4   :  { %v8241_v35 = vpop.f32.mrf.mxu0  ;;  %v8347_v37 = vpop.f32.mrf.mxu1 }
 0x2d5   :  { %13262 = vst [vmem:[#allocation11_spill] sm:$0xff] %v11395_v53 }
 0x2d6   :  { %v2536_v57 = vpop.f32.mrf.mxu0  ;;  %8451 = vmatmul.mubr.msk.bf16.gmra.mxu0 %vm220_vm1, %v9089_v16  ;;  %v11400_v29 = vpop.f32.mrf.mxu1  ;;  %8557 = vmatmul.mubr.msk.bf16.gmra.mxu1 %vm220_vm1, %v9090_v4  ;;  %v9091_v16 = vld [vmem:[%s12786_s0 + $0x528] sm:$0xff]   ;;  %v9092_v4 = vld [vmem:[%s12786_s0 + $0x5f0] sm:$0xff]  }
 0x2d7   :  { %13263 = vst [vmem:[#allocation10_spill] sm:$0xff] %v11400_v29  ;;  %v11406_v8 = vmax.f32 %v13266_v47, %v2536_v57  ;;  %8454 = vmatprep.mubr.msk.bf16.mxu0 %vm9193_vm0, %v13007_v27  ;;  %8560 = vmatprep.mubr.msk.bf16.mxu1 %vm9193_vm0, %v13007_v27  ;;  %v13275_v29 = vld [vmem:[#allocation16_spill] sm:$0xff] }
 0x2d8   :  { %v8244_v50 = vpop.f32.mrf.mxu0  ;;  %v8350_v28 = vpop.f32.mrf.mxu1 }
 0x2d9   :  { %13267 = vst [vmem:[#allocation13_spill] sm:$0xff] %v11406_v8  ;;  %v13276_v8 = vmax.f32 %v13274_v20, %v13275_v29  ;;  %v9093_v29 = vld [vmem:[%s12786_s0 + $0x530] sm:$0xff]  }
 0x2da   :  { %v2539_v47 = vpop.f32.mrf.mxu0  ;;  %v11420_v57 = vpop.f32.mrf.mxu1 }
 0x2db   :  { %13268 = vst [vmem:[#allocation12_spill] sm:$0xff] %v11420_v57  ;;  %v11425_v35 = vmax.f32 %v13271_v45, %v2539_v47 }
 0x2dc   :  { %v8245_v37 = vpop.f32.mrf.mxu0  ;;  %v8351_v50 = vpop.f32.mrf.mxu1 }
 0x2dd   :  { %13272 = vst [vmem:[#allocation15_spill] sm:$0xff] %v11425_v35 }
 0x2de   :  { %v2544_v42 = vpop.f32.mrf.mxu0  ;;  %8455 = vmatmul.mubr.msk.bf16.gmra.mxu0 %vm220_vm1, %v9091_v16  ;;  %v11430_v2 = vpop.f32.mrf.mxu1  ;;  %8561 = vmatmul.mubr.msk.bf16.gmra.mxu1 %vm220_vm1, %v9092_v4  ;;  %v13280_v4 = vld [vmem:[#allocation18_spill] sm:$0xff] }
 0x2df   :  { %13273 = vst [vmem:[#allocation14_spill] sm:$0xff] %v11430_v2  ;;  %v11436_v53 = vmax.f32 %v13276_v8, %v2544_v42  ;;  %8458 = vmatprep.mubr.msk.bf16.mxu0 %vm9193_vm0, %v13007_v27  ;;  %8564 = vmatprep.mubr.msk.bf16.mxu1 %vm9193_vm0, %v13007_v27  ;;  %v9094_v8 = vld [vmem:[%s12786_s0 + $0x5f8] sm:$0xff]   ;;  %v13279_v42 = vld [vmem:[#allocation19_spill] sm:$0xff] }
 0x2e0   :  { %v8248_v47 = vpop.f32.mrf.mxu0  ;;  %v8354_v30 = vpop.f32.mrf.mxu1  ;;  %v13281_v20 = vmax.f32 %v13279_v42, %v13280_v4  ;;  %v13284_v2 = vld [vmem:[#allocation21_spill] sm:$0xff] }
 0x2e1   :  { %13277 = vst [vmem:[#allocation17_spill] sm:$0xff] %v11436_v53  ;;  %v13285_v53 = vld [vmem:[#allocation20_spill] sm:$0xff] }
 0x2e2   :  { %v2547_v49 = vpop.f32.mrf.mxu0  ;;  %v11444_v45 = vpop.f32.mrf.mxu1  ;;  %v13286_v57 = vmax.f32 %v13284_v2, %v13285_v53  ;;  %v9095_v2 = vld [vmem:[%s12786_s0 + $0x538] sm:$0xff]   ;;  %v9096_v53 = vld [vmem:[%s12786_s0 + $0x600] sm:$0xff]  }
 0x2e3   :  { %13278 = vst [vmem:[#allocation16_spill] sm:$0xff] %v11444_v45  ;;  %v11455_v37 = vmax.f32 %v13281_v20, %v2547_v49 }
 0x2e4   :  { %v8249_v50 = vpop.f32.mrf.mxu0  ;;  %v8355_v47 = vpop.f32.mrf.mxu1 }
 0x2e5   :  { %13282 = vst [vmem:[#allocation19_spill] sm:$0xff] %v11455_v37 }
 0x2e6   :  { %v2552_v16 = vpop.f32.mrf.mxu0  ;;  %8459 = vmatmul.mubr.msk.bf16.gmra.mxu0 %vm220_vm1, %v9093_v29  ;;  %v11460_v28 = vpop.f32.mrf.mxu1  ;;  %8565 = vmatmul.mubr.msk.bf16.gmra.mxu1 %vm220_vm1, %v9094_v8 }
 0x2e7   :  { %13283 = vst [vmem:[#allocation18_spill] sm:$0xff] %v11460_v28  ;;  %v11466_v35 = vmax.f32 %v13286_v57, %v2552_v16  ;;  %8462 = vmatprep.mubr.msk.bf16.mxu0 %vm9193_vm0, %v13007_v27  ;;  %8568 = vmatprep.mubr.msk.bf16.mxu1 %vm9193_vm0, %v13007_v27  ;;  %v13289_v57 = vld [vmem:[#allocation23_spill] sm:$0xff]  ;;  %v13290_v16 = vld [vmem:[#allocation22_spill] sm:$0xff]  ;;  %v13294_v28 = vld [vmem:[#allocation25_spill] sm:$0xff] }
 0x2e8   :  { %v8252_v49 = vpop.f32.mrf.mxu0  ;;  %v8358_v42 = vpop.f32.mrf.mxu1  ;;  %v13291_v8 = vmax.f32 %v13289_v57, %v13290_v16 }
 0x2e9   :  { %13287 = vst [vmem:[#allocation21_spill] sm:$0xff] %v11466_v35  ;;  %v13295_v35 = vld [vmem:[#allocation24_spill] sm:$0xff] }
 0x2ea   :  { %v2555_v4 = vpop.f32.mrf.mxu0  ;;  %v11474_v20 = vpop.f32.mrf.mxu1  ;;  %v13296_v45 = vmax.f32 %v13294_v28, %v13295_v35  ;;  %v9097_v35 = vld [vmem:[%s12786_s0 + $0x540] sm:$0xff]   ;;  %v9098_v28 = vld [vmem:[%s12786_s0 + $0x608] sm:$0xff]  }
 0x2eb   :  { %13288 = vst [vmem:[#allocation20_spill] sm:$0xff] %v11474_v20  ;;  %v11485_v50 = vmax.f32 %v13291_v8, %v2555_v4 }
 0x2ec   :  { %v8253_v47 = vpop.f32.mrf.mxu0  ;;  %v8359_v49 = vpop.f32.mrf.mxu1 }
 0x2ed   :  { %13292 = vst [vmem:[#allocation23_spill] sm:$0xff] %v11485_v50 }
 0x2ee   :  { %v2560_v29 = vpop.f32.mrf.mxu0  ;;  %8463 = vmatmul.mubr.msk.bf16.gmra.mxu0 %vm220_vm1, %v9095_v2  ;;  %v11490_v30 = vpop.f32.mrf.mxu1  ;;  %8569 = vmatmul.mubr.msk.bf16.gmra.mxu1 %vm220_vm1, %v9096_v53 }
 0x2ef   :  { %13293 = vst [vmem:[#allocation22_spill] sm:$0xff] %v11490_v30  ;;  %v11496_v37 = vmax.f32 %v13296_v45, %v2560_v29  ;;  %8466 = vmatprep.mubr.msk.bf16.mxu0 %vm9193_vm0, %v13007_v27  ;;  %8572 = vmatprep.mubr.msk.bf16.mxu1 %vm9193_vm0, %v13007_v27  ;;  %v13299_v45 = vld [vmem:[#allocation27_spill] sm:$0xff]  ;;  %v13300_v29 = vld [vmem:[#allocation26_spill] sm:$0xff]  ;;  %v13304_v30 = vld [vmem:[#allocation29_spill] sm:$0xff] }
 0x2f0   :  { %v8256_v4 = vpop.f32.mrf.mxu0  ;;  %v8362_v57 = vpop.f32.mrf.mxu1  ;;  %v13301_v53 = vmax.f32 %v13299_v45, %v13300_v29 }
 0x2f1   :  { %13297 = vst [vmem:[#allocation25_spill] sm:$0xff] %v11496_v37  ;;  %v13305_v37 = vld [vmem:[#allocation28_spill] sm:$0xff] }
 0x2f2   :  { %v2563_v16 = vpop.f32.mrf.mxu0  ;;  %v11504_v8 = vpop.f32.mrf.mxu1  ;;  %v13306_v20 = vmax.f32 %v13304_v30, %v13305_v37  ;;  %v9099_v37 = vld [vmem:[%s12786_s0 + $0x548] sm:$0xff]   ;;  %v9100_v30 = vld [vmem:[%s12786_s0 + $0x610] sm:$0xff]  }
 0x2f3   :  { %13298 = vst [vmem:[#allocation24_spill] sm:$0xff] %v11504_v8  ;;  %v11515_v47 = vmax.f32 %v13301_v53, %v2563_v16 }
 0x2f4   :  { %v8257_v49 = vpop.f32.mrf.mxu0  ;;  %v8363_v4 = vpop.f32.mrf.mxu1 }
 0x2f5   :  { %13302 = vst [vmem:[#allocation27_spill] sm:$0xff] %v11515_v47 }
 0x2f6   :  { %v2568_v2 = vpop.f32.mrf.mxu0  ;;  %8467 = vmatmul.mubr.msk.bf16.gmra.mxu0 %vm220_vm1, %v9097_v35  ;;  %v11520_v42 = vpop.f32.mrf.mxu1  ;;  %8573 = vmatmul.mubr.msk.bf16.gmra.mxu1 %vm220_vm1, %v9098_v28 }
 0x2f7   :  { %13303 = vst [vmem:[#allocation26_spill] sm:$0xff] %v11520_v42  ;;  %v11526_v50 = vmax.f32 %v13306_v20, %v2568_v2  ;;  %8470 = vmatprep.mubr.msk.bf16.mxu0 %vm9193_vm0, %v13007_v27  ;;  %8576 = vmatprep.mubr.msk.bf16.mxu1 %vm9193_vm0, %v13007_v27  ;;  %v13309_v20 = vld [vmem:[#allocation31_spill] sm:$0xff]  ;;  %v13310_v2 = vld [vmem:[#allocation30_spill] sm:$0xff]  ;;  %v13314_v42 = vld [vmem:[#allocation33_spill] sm:$0xff] }
 0x2f8   :  { %v8260_v16 = vpop.f32.mrf.mxu0  ;;  %v8366_v45 = vpop.f32.mrf.mxu1  ;;  %v13311_v28 = vmax.f32 %v13309_v20, %v13310_v2 }
 0x2f9   :  { %13307 = vst [vmem:[#allocation29_spill] sm:$0xff] %v11526_v50  ;;  %v13315_v50 = vld [vmem:[#allocation32_spill] sm:$0xff] }
 0x2fa   :  { %v2571_v29 = vpop.f32.mrf.mxu0  ;;  %v11534_v53 = vpop.f32.mrf.mxu1  ;;  %v13316_v8 = vmax.f32 %v13314_v42, %v13315_v50  ;;  %v9101_v50 = vld [vmem:[%s12786_s0 + $0x550] sm:$0xff]   ;;  %v9102_v42 = vld [vmem:[%s12786_s0 + $0x618] sm:$0xff]  }
 0x2fb   :  { %13308 = vst [vmem:[#allocation28_spill] sm:$0xff] %v11534_v53  ;;  %v11545_v49 = vmax.f32 %v13311_v28, %v2571_v29 }
 0x2fc   :  { %v8261_v4 = vpop.f32.mrf.mxu0  ;;  %v8367_v16 = vpop.f32.mrf.mxu1 }
 0x2fd   :  { %13312 = vst [vmem:[#allocation31_spill] sm:$0xff] %v11545_v49 }
 0x2fe   :  { %v2576_v35 = vpop.f32.mrf.mxu0  ;;  %8471 = vmatmul.mubr.msk.bf16.gmra.mxu0 %vm220_vm1, %v9099_v37  ;;  %v11550_v57 = vpop.f32.mrf.mxu1  ;;  %8577 = vmatmul.mubr.msk.bf16.gmra.mxu1 %vm220_vm1, %v9100_v30 }
 0x2ff   :  { %13313 = vst [vmem:[#allocation30_spill] sm:$0xff] %v11550_v57  ;;  %v11556_v47 = vmax.f32 %v13316_v8, %v2576_v35  ;;  %8474 = vmatprep.mubr.msk.bf16.mxu0 %vm9193_vm0, %v13007_v27  ;;  %8580 = vmatprep.mubr.msk.bf16.mxu1 %vm9193_vm0, %v13007_v27  ;;  %v13319_v8 = vld [vmem:[#allocation35_spill] sm:$0xff]  ;;  %v13320_v35 = vld [vmem:[#allocation34_spill] sm:$0xff]  ;;  %v13324_v57 = vld [vmem:[#allocation37_spill] sm:$0xff] }
 0x300   :  { %v8264_v29 = vpop.f32.mrf.mxu0  ;;  %v8370_v20 = vpop.f32.mrf.mxu1  ;;  %v13321_v30 = vmax.f32 %v13319_v8, %v13320_v35 }
 0x301   :  { %13317 = vst [vmem:[#allocation33_spill] sm:$0xff] %v11556_v47  ;;  %v13325_v47 = vld [vmem:[#allocation36_spill] sm:$0xff] }
 0x302   :  { %v2579_v2 = vpop.f32.mrf.mxu0  ;;  %v11564_v28 = vpop.f32.mrf.mxu1  ;;  %v13326_v53 = vmax.f32 %v13324_v57, %v13325_v47  ;;  %v9103_v47 = vld [vmem:[%s12786_s0 + $0x558] sm:$0xff]   ;;  %v9104_v57 = vld [vmem:[%s12786_s0 + $0x620] sm:$0xff]  }
 0x303   :  { %13318 = vst [vmem:[#allocation32_spill] sm:$0xff] %v11564_v28  ;;  %v11575_v4 = vmax.f32 %v13321_v30, %v2579_v2 }
 0x304   :  { %v8265_v16 = vpop.f32.mrf.mxu0  ;;  %v8371_v29 = vpop.f32.mrf.mxu1 }
 0x305   :  { %13322 = vst [vmem:[#allocation35_spill] sm:$0xff] %v11575_v4 }
 0x306   :  { %v2584_v37 = vpop.f32.mrf.mxu0  ;;  %8475 = vmatmul.mubr.msk.bf16.gmra.mxu0 %vm220_vm1, %v9101_v50  ;;  %v11580_v45 = vpop.f32.mrf.mxu1  ;;  %8581 = vmatmul.mubr.msk.bf16.gmra.mxu1 %vm220_vm1, %v9102_v42 }
 0x307   :  { %13323 = vst [vmem:[#allocation34_spill] sm:$0xff] %v11580_v45  ;;  %v11586_v49 = vmax.f32 %v13326_v53, %v2584_v37  ;;  %8478 = vmatprep.mubr.msk.bf16.mxu0 %vm9193_vm0, %v13007_v27  ;;  %8584 = vmatprep.mubr.msk.bf16.mxu1 %vm9193_vm0, %v13007_v27  ;;  %v13329_v53 = vld [vmem:[#allocation39_spill] sm:$0xff]  ;;  %v13330_v37 = vld [vmem:[#allocation38_spill] sm:$0xff]  ;;  %v13334_v45 = vld [vmem:[#allocation41_spill] sm:$0xff] }
 0x308   :  { %v8268_v2 = vpop.f32.mrf.mxu0  ;;  %v8374_v8 = vpop.f32.mrf.mxu1  ;;  %v13331_v42 = vmax.f32 %v13329_v53, %v13330_v37 }
 0x309   :  { %13327 = vst [vmem:[#allocation37_spill] sm:$0xff] %v11586_v49  ;;  %v13335_v49 = vld [vmem:[#allocation40_spill] sm:$0xff] }
 0x30a   :  { %v2587_v35 = vpop.f32.mrf.mxu0  ;;  %v11594_v30 = vpop.f32.mrf.mxu1  ;;  %v13336_v28 = vmax.f32 %v13334_v45, %v13335_v49  ;;  %v9105_v49 = vld [vmem:[%s12786_s0 + $0x560] sm:$0xff]   ;;  %v9106_v45 = vld [vmem:[%s12786_s0 + $0x628] sm:$0xff]  }
 0x30b   :  { %13328 = vst [vmem:[#allocation36_spill] sm:$0xff] %v11594_v30  ;;  %v11605_v16 = vmax.f32 %v13331_v42, %v2587_v35 }
 0x30c   :  { %v8269_v29 = vpop.f32.mrf.mxu0  ;;  %v8375_v2 = vpop.f32.mrf.mxu1 }
 0x30d   :  { %13332 = vst [vmem:[#allocation39_spill] sm:$0xff] %v11605_v16 }
 0x30e   :  { %v2592_v50 = vpop.f32.mrf.mxu0  ;;  %8479 = vmatmul.mubr.msk.bf16.gmra.mxu0 %vm220_vm1, %v9103_v47  ;;  %v11610_v20 = vpop.f32.mrf.mxu1  ;;  %8585 = vmatmul.mubr.msk.bf16.gmra.mxu1 %vm220_vm1, %v9104_v57 }
 0x30f   :  { %13333 = vst [vmem:[#allocation38_spill] sm:$0xff] %v11610_v20  ;;  %v11616_v4 = vmax.f32 %v13336_v28, %v2592_v50  ;;  %8482 = vmatprep.mubr.msk.bf16.mxu0 %vm9193_vm0, %v13007_v27  ;;  %8588 = vmatprep.mubr.msk.bf16.mxu1 %vm9193_vm0, %v13007_v27  ;;  %v13339_v28 = vld [vmem:[#allocation43_spill] sm:$0xff]  ;;  %v13340_v50 = vld [vmem:[#allocation42_spill] sm:$0xff]  ;;  %v13344_v20 = vld [vmem:[#allocation45_spill] sm:$0xff] }
 0x310   :  { %v8272_v35 = vpop.f32.mrf.mxu0  ;;  %v8378_v53 = vpop.f32.mrf.mxu1  ;;  %v13341_v57 = vmax.f32 %v13339_v28, %v13340_v50 }
 0x311   :  { %13337 = vst [vmem:[#allocation41_spill] sm:$0xff] %v11616_v4  ;;  %v13345_v4 = vld [vmem:[#allocation44_spill] sm:$0xff] }
 0x312   :  { %v2595_v37 = vpop.f32.mrf.mxu0  ;;  %v11624_v42 = vpop.f32.mrf.mxu1  ;;  %v13346_v30 = vmax.f32 %v13344_v20, %v13345_v4  ;;  %v9107_v4 = vld [vmem:[%s12786_s0 + $0x568] sm:$0xff]   ;;  %v9108_v20 = vld [vmem:[%s12786_s0 + $0x630] sm:$0xff]  }
 0x313   :  { %13338 = vst [vmem:[#allocation40_spill] sm:$0xff] %v11624_v42  ;;  %v11635_v29 = vmax.f32 %v13341_v57, %v2595_v37 }
 0x314   :  { %v8273_v2 = vpop.f32.mrf.mxu0  ;;  %v8379_v35 = vpop.f32.mrf.mxu1 }
 0x315   :  { %13342 = vst [vmem:[#allocation43_spill] sm:$0xff] %v11635_v29 }
 0x316   :  { %v2600_v47 = vpop.f32.mrf.mxu0  ;;  %8483 = vmatmul.mubr.msk.bf16.gmra.mxu0 %vm220_vm1, %v9105_v49  ;;  %v11640_v8 = vpop.f32.mrf.mxu1  ;;  %8589 = vmatmul.mubr.msk.bf16.gmra.mxu1 %vm220_vm1, %v9106_v45 }
 0x317   :  { %13343 = vst [vmem:[#allocation42_spill] sm:$0xff] %v11640_v8  ;;  %v11646_v16 = vmax.f32 %v13346_v30, %v2600_v47  ;;  %8486 = vmatprep.mubr.msk.bf16.mxu0 %vm9193_vm0, %v13007_v27  ;;  %8592 = vmatprep.mubr.msk.bf16.mxu1 %vm9193_vm0, %v13007_v27  ;;  %v13348_v30 = vld [vmem:[#allocation47_spill] sm:$0xff]  ;;  %v13349_v47 = vld [vmem:[#allocation46_spill] sm:$0xff]  ;;  %v13351_v8 = vld [vmem:[#allocation49_spill] sm:$0xff] }
 0x318   :  { %v8276_v37 = vpop.f32.mrf.mxu0  ;;  %v8382_v28 = vpop.f32.mrf.mxu1  ;;  %v13350_v45 = vmax.f32 %v13348_v30, %v13349_v47 }
 0x319   :  { %13347 = vst [vmem:[#allocation45_spill] sm:$0xff] %v11646_v16  ;;  %v13352_v16 = vld [vmem:[#allocation48_spill] sm:$0xff] }
 0x31a   :  { %v2603_v50 = vpop.f32.mrf.mxu0  ;;  %v11654_v57 = vpop.f32.mrf.mxu1  ;;  %v13353_v42 = vmax.f32 %v13351_v8, %v13352_v16  ;;  %v9109_v16 = vld [vmem:[%s12786_s0 + $0x570] sm:$0xff]   ;;  %v9110_v8 = vld [vmem:[%s12786_s0 + $0x638] sm:$0xff]  }
 0x31b   :  { %v11665_v2 = vmax.f32 %v13350_v45, %v2603_v50 }
 0x31c   :  { %v8277_v35 = vpop.f32.mrf.mxu0  ;;  %v8383_v37 = vpop.f32.mrf.mxu1 }
 0x31e   :  { %v2608_v49 = vpop.f32.mrf.mxu0  ;;  %8487 = vmatmul.mubr.msk.bf16.gmra.mxu0 %vm220_vm1, %v9107_v4  ;;  %v11670_v53 = vpop.f32.mrf.mxu1  ;;  %8593 = vmatmul.mubr.msk.bf16.gmra.mxu1 %vm220_vm1, %v9108_v20  ;;  %v9127_v20 = vld [vmem:[%s12787_s3 + $0x10] sm:$0xff]  }
 0x31f   :  { %v11676_v29 = vmax.f32 %v13353_v42, %v2608_v49  ;;  %8490 = vmatprep.mubr.msk.bf16.mxu0 %vm9193_vm0, %v13007_v27  ;;  %8596 = vmatprep.mubr.msk.bf16.mxu1 %vm9193_vm0, %v13007_v27  ;;  %v13354_v42 = vmax.f32 %v10930_v44, %v10919_v11  ;;  %v13355_v11 = vmax.f32 %v10941_v39, %v10935_v26  ;;  %v9111_v39 = vld [vmem:[%s12786_s0 + $0x640] sm:$0xff]  }
 0x320   :  { %v8280_v50 = vpop.f32.mrf.mxu0  ;;  %v8386_v30 = vpop.f32.mrf.mxu1  ;;  %8709 = vmatpush3.bf16.msra.mxu1 %v9127_v20  ;;  %v13356_v26 = vmax.f32 %v10960_v32, %v10949_v51 }
 0x321   :  { %8714 = vmatprep.subr.bf16.mxu1 %v13007_v27 }
 0x322   :  { %v2611_v47 = vpop.f32.mrf.mxu0  ;;  %v11687_v45 = vpop.f32.mrf.mxu1 }
 0x323   :  { %v11698_v49 = vmax.f32 %v13354_v42, %v2611_v47 }
 0x324   :  { %v8281_v35 = vpop.f32.mrf.mxu0  ;;  %v8387_v37 = vpop.f32.mrf.mxu1 }
 0x326   :  { %v3484_v30 = vpop.f32.mrf.mxu0  ;;  %8491 = vmatmul.mubr.msk.bf16.gmra.mxu0 %vm220_vm1, %v9109_v16  ;;  %v11704_v4 = vpop.f32.mrf.mxu1  ;;  %8597 = vmatmul.mubr.msk.bf16.gmra.mxu1 %vm220_vm1, %v9110_v8  ;;  %v13357_v16 = vmax.f32 %v10971_v56, %v10965_v41  ;;  %v13358_v56 = vmax.f32 %v10994_v34, %v10983_v9 }
 0x327   :  { %v11710_v44 = vmax.f32 %v13355_v11, %v3484_v30  ;;  %8606 = vmatprep.mubr.msk.bf16.mxu0 %vm9193_vm0, %v13007_v27  ;;  %8710 = vmatprep.mubr.msk.bf16.mxu1 %vm9193_vm0, %v13007_v27 }
 0x328   :  { %v8396_v20 = vpop.f32.mrf.mxu0  ;;  %v8502_v47 = vpop.f32.mrf.mxu1 }
 0x32a   :  { %v3487_v42 = vpop.f32.mrf.mxu0  ;;  %v11718_v35 = vpop.f32.mrf.mxu1 }
 0x32b   :  { %v11726_v8 = vmax.f32 %v13356_v26, %v3487_v42  ;;  %v13359_v42 = vmax.f32 %v11009_v55, %v11003_v0  ;;  %v13360_v0 = vmax.f32 %v11031_v63, %v11020_v59 }
 0x32c   :  { %v8397_v37 = vpop.f32.mrf.mxu0  ;;  %v8503_v30 = vpop.f32.mrf.mxu1 }
 0x32e   :  { %v3492_v20 = vpop.f32.mrf.mxu0  ;;  %8607 = vmatmul.mubr.msk.bf16.vlgmr.msra.gmra.mxu0 %vm220_vm1, %v9111_v39  ;;  %v11731_v47 = vpop.f32.mrf.mxu1  ;;  %v9112_v39 = vld [vmem:[%s12786_s0 + $0x648] sm:$0xff]  }
 0x32f   :  { %v11736_v50 = vmax.f32 %v13357_v16, %v3492_v20  ;;  %8610 = vmatprep.mubr.msk.bf16.mxu0 %vm9193_vm0, %v13007_v27 }
 0x330   :  { %v8400_v51 = vpop.f32.mrf.mxu0  ;;  %v8506_v32 = vpop.f32.mrf.mxu1 }
 0x332   :  { %v3495_v26 = vpop.f32.mrf.mxu0  ;;  %v11742_v37 = vpop.f32.mrf.mxu1 }
 0x333   :  { %v11750_v41 = vmax.f32 %v13358_v56, %v3495_v26  ;;  %v13361_v26 = vmax.f32 %v11042_v25, %v11036_v38  ;;  %v13362_v25 = vmax.f32 %v11061_v19, %v11050_v13 }
 0x334   :  { %v8401_v16 = vpop.f32.mrf.mxu0  ;;  %v8507_v30 = vpop.f32.mrf.mxu1 }
 0x336   :  { %v3500_v51 = vpop.f32.mrf.mxu0  ;;  %8611 = vmatmul.mubr.msk.bf16.gmra.mxu0 %vm220_vm1, %v9112_v39  ;;  %v11755_v32 = vpop.f32.mrf.mxu1  ;;  %v9114_v39 = vld [vmem:[%s12786_s0 + $0x650] sm:$0xff]  }
 0x337   :  { %v11760_v11 = vmax.f32 %v13359_v42, %v3500_v51  ;;  %8614 = vmatprep.mubr.msk.bf16.mxu0 %vm9193_vm0, %v13007_v27 }
 0x338   :  { %v8404_v9 = vpop.f32.mrf.mxu0  ;;  %v8510_v34 = vpop.f32.mrf.mxu1 }
 0x33a   :  { %v3503_v56 = vpop.f32.mrf.mxu0  ;;  %v11766_v16 = vpop.f32.mrf.mxu1 }
 0x33b   :  { %v11774_v55 = vmax.f32 %v13360_v0, %v3503_v56  ;;  %v13363_v56 = vmax.f32 %v11072_v61, %v11066_v6  ;;  %v13364_v61 = vmax.f32 %v11091_v60, %v11080_v1 }
 0x33c   :  { %v8405_v42 = vpop.f32.mrf.mxu0  ;;  %v8511_v30 = vpop.f32.mrf.mxu1 }
 0x33e   :  { %v3508_v9 = vpop.f32.mrf.mxu0  ;;  %8615 = vmatmul.mubr.msk.bf16.gmra.mxu0 %vm220_vm1, %v9114_v39  ;;  %v11779_v34 = vpop.f32.mrf.mxu1  ;;  %v9115_v39 = vld [vmem:[%s12786_s0 + $0x658] sm:$0xff]  }
 0x33f   :  { %v11784_v20 = vmax.f32 %v13361_v26, %v3508_v9  ;;  %8618 = vmatprep.mubr.msk.bf16.mxu0 %vm9193_vm0, %v13007_v27 }
 0x340   :  { %v8408_v59 = vpop.f32.mrf.mxu0  ;;  %v8514_v63 = vpop.f32.mrf.mxu1 }
 0x342   :  { %v3511_v0 = vpop.f32.mrf.mxu0  ;;  %v11790_v42 = vpop.f32.mrf.mxu1 }
 0x343   :  { %v11798_v38 = vmax.f32 %v13362_v25, %v3511_v0  ;;  %v13365_v0 = vmax.f32 %v11102_v12, %v11096_v22  ;;  %v13366_v12 = vmax.f32 %v11121_v24, %v11110_v40 }
 0x344   :  { %v8409_v26 = vpop.f32.mrf.mxu0  ;;  %v8515_v30 = vpop.f32.mrf.mxu1 }
 0x346   :  { %v3516_v59 = vpop.f32.mrf.mxu0  ;;  %8619 = vmatmul.mubr.msk.bf16.gmra.mxu0 %vm220_vm1, %v9115_v39  ;;  %v11803_v63 = vpop.f32.mrf.mxu1  ;;  %v9116_v39 = vld [vmem:[%s12786_s0 + $0x660] sm:$0xff]  }
 0x347   :  { %v11808_v51 = vmax.f32 %v13363_v56, %v3516_v59  ;;  %8622 = vmatprep.mubr.msk.bf16.mxu0 %vm9193_vm0, %v13007_v27 }
 0x348   :  { %v8412_v13 = vpop.f32.mrf.mxu0  ;;  %v8518_v19 = vpop.f32.mrf.mxu1 }
 0x34a   :  { %v3519_v25 = vpop.f32.mrf.mxu0  ;;  %v11814_v26 = vpop.f32.mrf.mxu1 }
 0x34b   :  { %v11822_v6 = vmax.f32 %v13364_v61, %v3519_v25  ;;  %v13367_v25 = vmax.f32 %v11132_v18, %v11126_v31  ;;  %v13368_v18 = vmax.f32 %v11151_v36, %v11140_v10 }
 0x34c   :  { %v8413_v56 = vpop.f32.mrf.mxu0  ;;  %v8519_v30 = vpop.f32.mrf.mxu1 }
 0x34e   :  { %v3524_v13 = vpop.f32.mrf.mxu0  ;;  %8623 = vmatmul.mubr.msk.bf16.gmra.mxu0 %vm220_vm1, %v9116_v39  ;;  %v11827_v19 = vpop.f32.mrf.mxu1  ;;  %v9117_v39 = vld [vmem:[%s12786_s0 + $0x668] sm:$0xff]  }
 0x34f   :  { %v11832_v9 = vmax.f32 %v13365_v0, %v3524_v13  ;;  %8626 = vmatprep.mubr.msk.bf16.mxu0 %vm9193_vm0, %v13007_v27 }
 0x350   :  { %v8416_v1 = vpop.f32.mrf.mxu0  ;;  %v8522_v60 = vpop.f32.mrf.mxu1 }
 0x352   :  { %v3527_v61 = vpop.f32.mrf.mxu0  ;;  %v11838_v56 = vpop.f32.mrf.mxu1 }
 0x353   :  { %v11846_v22 = vmax.f32 %v13366_v12, %v3527_v61  ;;  %v13369_v61 = vmax.f32 %v11162_v54, %v11156_v43  ;;  %v13370_v54 = vmax.f32 %v11181_v48, %v11170_v3 }
 0x354   :  { %v8417_v0 = vpop.f32.mrf.mxu0  ;;  %v8523_v30 = vpop.f32.mrf.mxu1 }
 0x356   :  { %v3532_v1 = vpop.f32.mrf.mxu0  ;;  %8627 = vmatmul.mubr.msk.bf16.gmra.mxu0 %vm220_vm1, %v9117_v39  ;;  %v11851_v60 = vpop.f32.mrf.mxu1  ;;  %v9118_v39 = vld [vmem:[%s12786_s0 + $0x670] sm:$0xff]  }
 0x357   :  { %v11856_v59 = vmax.f32 %v13367_v25, %v3532_v1  ;;  %8630 = vmatprep.mubr.msk.bf16.mxu0 %vm9193_vm0, %v13007_v27 }
 0x358   :  { %v8420_v40 = vpop.f32.mrf.mxu0  ;;  %v8526_v24 = vpop.f32.mrf.mxu1 }
 0x35a   :  { %v3535_v12 = vpop.f32.mrf.mxu0  ;;  %v11862_v0 = vpop.f32.mrf.mxu1 }
 0x35b   :  { %v11870_v31 = vmax.f32 %v13368_v18, %v3535_v12  ;;  %v13371_v12 = vmax.f32 %v11192_v52, %v11186_v58  ;;  %v13372_v52 = vmax.f32 %v11211_v7, %v11200_v5 }
 0x35c   :  { %v8421_v25 = vpop.f32.mrf.mxu0  ;;  %v8527_v30 = vpop.f32.mrf.mxu1 }
 0x35e   :  { %v3540_v40 = vpop.f32.mrf.mxu0  ;;  %8631 = vmatmul.mubr.msk.bf16.gmra.mxu0 %vm220_vm1, %v9118_v39  ;;  %v11875_v24 = vpop.f32.mrf.mxu1  ;;  %v9119_v39 = vld [vmem:[%s12786_s0 + $0x678] sm:$0xff]  }
 0x35f   :  { %v11880_v13 = vmax.f32 %v13369_v61, %v3540_v40  ;;  %8634 = vmatprep.mubr.msk.bf16.mxu0 %vm9193_vm0, %v13007_v27 }
 0x360   :  { %v8424_v10 = vpop.f32.mrf.mxu0  ;;  %v8530_v36 = vpop.f32.mrf.mxu1 }
 0x362   :  { %v3543_v18 = vpop.f32.mrf.mxu0  ;;  %v11886_v25 = vpop.f32.mrf.mxu1 }
 0x363   :  { %v11894_v43 = vmax.f32 %v13370_v54, %v3543_v18  ;;  %v13373_v18 = vmax.f32 %v11222_v17, %v11216_v21  ;;  %v13374_v17 = vmax.f32 %v11241_v33, %v11230_v14 }
 0x364   :  { %v8425_v61 = vpop.f32.mrf.mxu0  ;;  %v8531_v30 = vpop.f32.mrf.mxu1 }
 0x366   :  { %v3548_v10 = vpop.f32.mrf.mxu0  ;;  %8635 = vmatmul.mubr.msk.bf16.gmra.mxu0 %vm220_vm1, %v9119_v39  ;;  %v11899_v36 = vpop.f32.mrf.mxu1  ;;  %v9120_v39 = vld [vmem:[%s12786_s0 + $0x680] sm:$0xff]  }
 0x367   :  { %v11904_v1 = vmax.f32 %v13371_v12, %v3548_v10  ;;  %8638 = vmatprep.mubr.msk.bf16.mxu0 %vm9193_vm0, %v13007_v27 }
 0x368   :  { %v8428_v3 = vpop.f32.mrf.mxu0  ;;  %v8534_v48 = vpop.f32.mrf.mxu1 }
 0x36a   :  { %v3551_v54 = vpop.f32.mrf.mxu0  ;;  %v11910_v61 = vpop.f32.mrf.mxu1 }
 0x36b   :  { %v11918_v58 = vmax.f32 %v13372_v52, %v3551_v54  ;;  %v13376_v54 = vmax.f32 %v11252_v15, %v11246_v46  ;;  %v13378_v15 = vmax.f32 %v11271_v62, %v11260_v23 }
 0x36c   :  { %v8429_v12 = vpop.f32.mrf.mxu0  ;;  %v8535_v30 = vpop.f32.mrf.mxu1 }
 0x36e   :  { %v3556_v3 = vpop.f32.mrf.mxu0  ;;  %8639 = vmatmul.mubr.msk.bf16.gmra.mxu0 %vm220_vm1, %v9120_v39  ;;  %v11923_v48 = vpop.f32.mrf.mxu1  ;;  %v9121_v39 = vld [vmem:[%s12786_s0 + $0x688] sm:$0xff]  }
 0x36f   :  { %v11928_v40 = vmax.f32 %v13373_v18, %v3556_v3  ;;  %8642 = vmatprep.mubr.msk.bf16.mxu0 %vm9193_vm0, %v13007_v27  ;;  %v13382_v3 = vld [vmem:[#allocation50_spill] sm:$0xff] }
 0x370   :  { %v8432_v5 = vpop.f32.mrf.mxu0  ;;  %v8538_v7 = vpop.f32.mrf.mxu1 }
 0x372   :  { %v3559_v52 = vpop.f32.mrf.mxu0  ;;  %v11934_v12 = vpop.f32.mrf.mxu1 }
 0x373   :  { %v11942_v21 = vmax.f32 %v13374_v17, %v3559_v52  ;;  %v13381_v52 = vld [vmem:[#allocation51_spill] sm:$0xff] }
 0x374   :  { %v8433_v18 = vpop.f32.mrf.mxu0  ;;  %v8539_v30 = vpop.f32.mrf.mxu1  ;;  %v13383_v28 = vmax.f32 %v13381_v52, %v13382_v3 }
 0x376   :  { %v3564_v5 = vpop.f32.mrf.mxu0  ;;  %8643 = vmatmul.mubr.msk.bf16.gmra.mxu0 %vm220_vm1, %v9121_v39  ;;  %v11947_v7 = vpop.f32.mrf.mxu1  ;;  %v9122_v39 = vld [vmem:[%s12786_s0 + $0x690] sm:$0xff]  }
 0x377   :  { %13375 = vst [vmem:[#allocation44_spill] sm:$0xff] %v11947_v7  ;;  %v11952_v10 = vmax.f32 %v13376_v54, %v3564_v5  ;;  %8646 = vmatprep.mubr.msk.bf16.mxu0 %vm9193_vm0, %v13007_v27  ;;  %v13387_v5 = vld [vmem:[#allocation52_spill] sm:$0xff] }
 0x378   :  { %v8436_v14 = vpop.f32.mrf.mxu0  ;;  %v8542_v33 = vpop.f32.mrf.mxu1 }
 0x37a   :  { %v3567_v17 = vpop.f32.mrf.mxu0  ;;  %v11958_v18 = vpop.f32.mrf.mxu1 }
 0x37b   :  { %13377 = vst [vmem:[#allocation47_spill] sm:$0xff] %v11958_v18  ;;  %v11966_v46 = vmax.f32 %v13378_v15, %v3567_v17 }
 0x37c   :  { %v8437_v54 = vpop.f32.mrf.mxu0  ;;  %v8543_v30 = vpop.f32.mrf.mxu1 }
 0x37d   :  { %13379 = vst [vmem:[#allocation46_spill] sm:$0xff] %v11966_v46  ;;  %v13386_v30 = vld [vmem:[#allocation54_spill] sm:$0xff] }
 0x37e   :  { %v3572_v14 = vpop.f32.mrf.mxu0  ;;  %8647 = vmatmul.mubr.msk.bf16.gmra.mxu0 %vm220_vm1, %v9122_v39  ;;  %v11971_v33 = vpop.f32.mrf.mxu1  ;;  %v9123_v39 = vld [vmem:[%s12786_s0 + $0x698] sm:$0xff]   ;;  %v13388_v3 = vmax.f32 %v13386_v30, %v13387_v5 }
 0x37f   :  { %13380 = vst [vmem:[#allocation49_spill] sm:$0xff] %v11971_v33  ;;  %v11976_v7 = vmax.f32 %v13383_v28, %v3572_v14  ;;  %8650 = vmatprep.mubr.msk.bf16.mxu0 %vm9193_vm0, %v13007_v27  ;;  %v13391_v33 = vld [vmem:[#allocation2_spill] sm:$0xff] }
 0x380   :  { %v8440_v23 = vpop.f32.mrf.mxu0  ;;  %v8546_v62 = vpop.f32.mrf.mxu1 }
 0x381   :  { %13384 = vst [vmem:[#allocation48_spill] sm:$0xff] %v11976_v7  ;;  %v13392_v7 = vld [vmem:[#allocation53_spill] sm:$0xff]  ;;  %v13397_v23 = vld [vmem:[#allocation55_spill] sm:$0xff] }
 0x382   :  { %v3575_v15 = vpop.f32.mrf.mxu0  ;;  %v11982_v54 = vpop.f32.mrf.mxu1  ;;  %v13393_v18 = vmax.f32 %v13391_v33, %v13392_v7 }
 0x383   :  { %13385 = vst [vmem:[#allocation51_spill] sm:$0xff] %v11982_v54  ;;  %v11990_v28 = vmax.f32 %v13388_v3, %v3575_v15 }
 0x384   :  { %v8441_v52 = vpop.f32.mrf.mxu0  ;;  %v8547_v14 = vpop.f32.mrf.mxu1 }
 0x385   :  { %13389 = vst [vmem:[#allocation50_spill] sm:$0xff] %v11990_v28  ;;  %v13396_v14 = vld [vmem:[#allocation3_spill] sm:$0xff] }
 0x386   :  { %v3580_v62 = vpop.f32.mrf.mxu0  ;;  %8651 = vmatmul.mubr.msk.bf16.gmra.mxu0 %vm220_vm1, %v9123_v39  ;;  %v11995_v17 = vpop.f32.mrf.mxu1  ;;  %v9124_v39 = vld [vmem:[%s12786_s0 + $0x6a0] sm:$0xff]   ;;  %v13398_v7 = vmax.f32 %v13396_v14, %v13397_v23 }
 0x387   :  { %13390 = vst [vmem:[#allocation54_spill] sm:$0xff] %v11995_v17  ;;  %v12000_v46 = vmax.f32 %v13393_v18, %v3580_v62  ;;  %8654 = vmatprep.mubr.msk.bf16.mxu0 %vm9193_vm0, %v13007_v27  ;;  %v13401_v17 = vld [vmem:[#allocation5_spill] sm:$0xff] }
 0x388   :  { %v8444_v5 = vpop.f32.mrf.mxu0  ;;  %v8550_v15 = vpop.f32.mrf.mxu1 }
 0x389   :  { %13394 = vst [vmem:[#allocation52_spill] sm:$0xff] %v12000_v46  ;;  %v13402_v46 = vld [vmem:[#allocation56_spill] sm:$0xff] }
 0x38a   :  { %v3583_v3 = vpop.f32.mrf.mxu0  ;;  %v12006_v52 = vpop.f32.mrf.mxu1  ;;  %v13403_v54 = vmax.f32 %v13401_v17, %v13402_v46  ;;  %v13407_v5 = vld [vmem:[#allocation4_spill] sm:$0xff] }
 0x38b   :  { %13395 = vst [vmem:[#allocation2_spill] sm:$0xff] %v12006_v52  ;;  %v12014_v18 = vmax.f32 %v13398_v7, %v3583_v3 }
 0x38c   :  { %v8445_v33 = vpop.f32.mrf.mxu0  ;;  %v8551_v62 = vpop.f32.mrf.mxu1 }
 0x38d   :  { %13399 = vst [vmem:[#allocation53_spill] sm:$0xff] %v12014_v18  ;;  %v13406_v62 = vld [vmem:[#allocation7_spill] sm:$0xff] }
 0x38e   :  { %v3588_v15 = vpop.f32.mrf.mxu0  ;;  %8655 = vmatmul.mubr.msk.bf16.gmra.mxu0 %vm220_vm1, %v9124_v39  ;;  %v12019_v30 = vpop.f32.mrf.mxu1  ;;  %v9125_v39 = vld [vmem:[%s12786_s0 + $0x6a8] sm:$0xff]   ;;  %v13408_v46 = vmax.f32 %v13406_v62, %v13407_v5 }
 0x38f   :  { %13400 = vst [vmem:[#allocation3_spill] sm:$0xff] %v12019_v30  ;;  %v12024_v28 = vmax.f32 %v13403_v54, %v3588_v15  ;;  %8658 = vmatprep.mubr.msk.bf16.mxu0 %vm9193_vm0, %v13007_v27  ;;  %v13411_v30 = vld [vmem:[#allocation9_spill] sm:$0xff] }
 0x390   :  { %v8448_v23 = vpop.f32.mrf.mxu0  ;;  %v8554_v3 = vpop.f32.mrf.mxu1 }
 0x391   :  { %13404 = vst [vmem:[#allocation55_spill] sm:$0xff] %v12024_v28  ;;  %v13412_v28 = vld [vmem:[#allocation6_spill] sm:$0xff]  ;;  %v13417_v23 = vld [vmem:[#allocation8_spill] sm:$0xff] }
 0x392   :  { %v3591_v7 = vpop.f32.mrf.mxu0  ;;  %v12030_v33 = vpop.f32.mrf.mxu1  ;;  %v13413_v52 = vmax.f32 %v13411_v30, %v13412_v28 }
 0x393   :  { %13405 = vst [vmem:[#allocation5_spill] sm:$0xff] %v12030_v33  ;;  %v12038_v17 = vmax.f32 %v13408_v46, %v3591_v7 }
 0x394   :  { %v8449_v54 = vpop.f32.mrf.mxu0  ;;  %v8555_v15 = vpop.f32.mrf.mxu1 }
 0x395   :  { %13409 = vst [vmem:[#allocation56_spill] sm:$0xff] %v12038_v17  ;;  %v13416_v15 = vld [vmem:[#allocation11_spill] sm:$0xff] }
 0x396   :  { %v3596_v3 = vpop.f32.mrf.mxu0  ;;  %8659 = vmatmul.mubr.msk.bf16.gmra.mxu0 %vm220_vm1, %v9125_v39  ;;  %v12043_v14 = vpop.f32.mrf.mxu1  ;;  %v9126_v39 = vld [vmem:[%s12786_s0 + $0x6b0] sm:$0xff]   ;;  %v13418_v28 = vmax.f32 %v13416_v15, %v13417_v23 }
 0x397   :  { %13410 = vst [vmem:[#allocation7_spill] sm:$0xff] %v12043_v14  ;;  %v12048_v18 = vmax.f32 %v13413_v52, %v3596_v3  ;;  %8662 = vmatprep.mubr.msk.bf16.mxu0 %vm9193_vm0, %v13007_v27  ;;  %v13421_v14 = vld [vmem:[#allocation13_spill] sm:$0xff] }
 0x398   :  { %v8452_v5 = vpop.f32.mrf.mxu0  ;;  %v8558_v7 = vpop.f32.mrf.mxu1 }
 0x399   :  { %13414 = vst [vmem:[#allocation4_spill] sm:$0xff] %v12048_v18  ;;  %v13422_v18 = vld [vmem:[#allocation10_spill] sm:$0xff]  ;;  %v13427_v5 = vld [vmem:[#allocation12_spill] sm:$0xff] }
 0x39a   :  { %v3599_v46 = vpop.f32.mrf.mxu0  ;;  %v12054_v54 = vpop.f32.mrf.mxu1  ;;  %v13423_v33 = vmax.f32 %v13421_v14, %v13422_v18 }
 0x39b   :  { %13415 = vst [vmem:[#allocation9_spill] sm:$0xff] %v12054_v54  ;;  %v12062_v30 = vmax.f32 %v13418_v28, %v3599_v46 }
 0x39c   :  { %v8453_v52 = vpop.f32.mrf.mxu0  ;;  %v8559_v3 = vpop.f32.mrf.mxu1 }
 0x39d   :  { %13419 = vst [vmem:[#allocation6_spill] sm:$0xff] %v12062_v30  ;;  %v13426_v3 = vld [vmem:[#allocation15_spill] sm:$0xff] }
 0x39e   :  { %v3604_v7 = vpop.f32.mrf.mxu0  ;;  %8663 = vmatmul.mubr.msk.bf16.gmra.mxu0 %vm220_vm1, %v9126_v39  ;;  %v12067_v62 = vpop.f32.mrf.mxu1  ;;  %v9128_v39 = vld [vmem:[%s12786_s0 + $0x6b8] sm:$0xff]   ;;  %v13428_v18 = vmax.f32 %v13426_v3, %v13427_v5 }
 0x39f   :  { %13420 = vst [vmem:[#allocation11_spill] sm:$0xff] %v12067_v62  ;;  %v12072_v17 = vmax.f32 %v13423_v33, %v3604_v7  ;;  %8666 = vmatprep.mubr.msk.bf16.mxu0 %vm9193_vm0, %v13007_v27  ;;  %v13431_v62 = vld [vmem:[#allocation17_spill] sm:$0xff] }
 0x3a0   :  { %v8456_v23 = vpop.f32.mrf.mxu0  ;;  %v8562_v46 = vpop.f32.mrf.mxu1 }
 0x3a1   :  { %13424 = vst [vmem:[#allocation8_spill] sm:$0xff] %v12072_v17  ;;  %v13432_v17 = vld [vmem:[#allocation14_spill] sm:$0xff]  ;;  %v13437_v23 = vld [vmem:[#allocation16_spill] sm:$0xff] }
 0x3a2   :  { %v3607_v28 = vpop.f32.mrf.mxu0  ;;  %v12078_v52 = vpop.f32.mrf.mxu1  ;;  %v13433_v54 = vmax.f32 %v13431_v62, %v13432_v17 }
 0x3a3   :  { %13425 = vst [vmem:[#allocation13_spill] sm:$0xff] %v12078_v52  ;;  %v12086_v14 = vmax.f32 %v13428_v18, %v3607_v28 }
 0x3a4   :  { %v8457_v33 = vpop.f32.mrf.mxu0  ;;  %v8563_v7 = vpop.f32.mrf.mxu1 }
 0x3a5   :  { %13429 = vst [vmem:[#allocation10_spill] sm:$0xff] %v12086_v14  ;;  %v13436_v7 = vld [vmem:[#allocation19_spill] sm:$0xff] }
 0x3a6   :  { %v3612_v46 = vpop.f32.mrf.mxu0  ;;  %8667 = vmatmul.mubr.msk.bf16.gmra.mxu0 %vm220_vm1, %v9128_v39  ;;  %v12091_v15 = vpop.f32.mrf.mxu1  ;;  %v9129_v39 = vld [vmem:[%s12786_s0 + $0x6c0] sm:$0xff]   ;;  %v13438_v17 = vmax.f32 %v13436_v7, %v13437_v23 }
 0x3a7   :  { %13430 = vst [vmem:[#allocation15_spill] sm:$0xff] %v12091_v15  ;;  %v12096_v30 = vmax.f32 %v13433_v54, %v3612_v46  ;;  %8670 = vmatprep.mubr.msk.bf16.mxu0 %vm9193_vm0, %v13007_v27  ;;  %v13441_v15 = vld [vmem:[#allocation21_spill] sm:$0xff] }
 0x3a8   :  { %v8460_v5 = vpop.f32.mrf.mxu0  ;;  %v8566_v28 = vpop.f32.mrf.mxu1 }
 0x3a9   :  { %13434 = vst [vmem:[#allocation12_spill] sm:$0xff] %v12096_v30  ;;  %v13442_v30 = vld [vmem:[#allocation18_spill] sm:$0xff]  ;;  %v13447_v5 = vld [vmem:[#allocation20_spill] sm:$0xff] }
 0x3aa   :  { %v3615_v18 = vpop.f32.mrf.mxu0  ;;  %v12102_v33 = vpop.f32.mrf.mxu1  ;;  %v13443_v52 = vmax.f32 %v13441_v15, %v13442_v30 }
 0x3ab   :  { %13435 = vst [vmem:[#allocation17_spill] sm:$0xff] %v12102_v33  ;;  %v12110_v62 = vmax.f32 %v13438_v17, %v3615_v18 }
 0x3ac   :  { %v8461_v54 = vpop.f32.mrf.mxu0  ;;  %v8567_v46 = vpop.f32.mrf.mxu1 }
 0x3ad   :  { %13439 = vst [vmem:[#allocation14_spill] sm:$0xff] %v12110_v62  ;;  %v13446_v46 = vld [vmem:[#allocation23_spill] sm:$0xff] }
 0x3ae   :  { %v3620_v28 = vpop.f32.mrf.mxu0  ;;  %8671 = vmatmul.mubr.msk.bf16.gmra.mxu0 %vm220_vm1, %v9129_v39  ;;  %v12115_v3 = vpop.f32.mrf.mxu1  ;;  %v9130_v39 = vld [vmem:[%s12786_s0 + $0x6c8] sm:$0xff]   ;;  %v13448_v30 = vmax.f32 %v13446_v46, %v13447_v5 }
 0x3af   :  { %13440 = vst [vmem:[#allocation19_spill] sm:$0xff] %v12115_v3  ;;  %v12120_v14 = vmax.f32 %v13443_v52, %v3620_v28  ;;  %8674 = vmatprep.mubr.msk.bf16.mxu0 %vm9193_vm0, %v13007_v27  ;;  %v13451_v3 = vld [vmem:[#allocation25_spill] sm:$0xff] }
 0x3b0   :  { %v8464_v23 = vpop.f32.mrf.mxu0  ;;  %v8570_v18 = vpop.f32.mrf.mxu1 }
 0x3b1   :  { %13444 = vst [vmem:[#allocation16_spill] sm:$0xff] %v12120_v14  ;;  %v13452_v14 = vld [vmem:[#allocation22_spill] sm:$0xff]  ;;  %v13457_v23 = vld [vmem:[#allocation24_spill] sm:$0xff] }
 0x3b2   :  { %v3623_v17 = vpop.f32.mrf.mxu0  ;;  %v12126_v54 = vpop.f32.mrf.mxu1  ;;  %v13453_v33 = vmax.f32 %v13451_v3, %v13452_v14 }
 0x3b3   :  { %13445 = vst [vmem:[#allocation21_spill] sm:$0xff] %v12126_v54  ;;  %v12134_v15 = vmax.f32 %v13448_v30, %v3623_v17 }
 0x3b4   :  { %v8465_v52 = vpop.f32.mrf.mxu0  ;;  %v8571_v28 = vpop.f32.mrf.mxu1 }
 0x3b5   :  { %13449 = vst [vmem:[#allocation18_spill] sm:$0xff] %v12134_v15  ;;  %v13456_v28 = vld [vmem:[#allocation27_spill] sm:$0xff] }
 0x3b6   :  { %v3628_v18 = vpop.f32.mrf.mxu0  ;;  %8675 = vmatmul.mubr.msk.bf16.gmra.mxu0 %vm220_vm1, %v9130_v39  ;;  %v12139_v7 = vpop.f32.mrf.mxu1  ;;  %v9131_v39 = vld [vmem:[%s12786_s0 + $0x6d0] sm:$0xff]   ;;  %v13458_v14 = vmax.f32 %v13456_v28, %v13457_v23 }
 0x3b7   :  { %13450 = vst [vmem:[#allocation23_spill] sm:$0xff] %v12139_v7  ;;  %v12144_v62 = vmax.f32 %v13453_v33, %v3628_v18  ;;  %8678 = vmatprep.mubr.msk.bf16.mxu0 %vm9193_vm0, %v13007_v27  ;;  %v13461_v7 = vld [vmem:[#allocation29_spill] sm:$0xff] }
 0x3b8   :  { %v8468_v5 = vpop.f32.mrf.mxu0  ;;  %v8574_v17 = vpop.f32.mrf.mxu1 }
 0x3b9   :  { %13454 = vst [vmem:[#allocation20_spill] sm:$0xff] %v12144_v62  ;;  %v13462_v62 = vld [vmem:[#allocation26_spill] sm:$0xff]  ;;  %v13467_v5 = vld [vmem:[#allocation28_spill] sm:$0xff] }
 0x3ba   :  { %v3631_v30 = vpop.f32.mrf.mxu0  ;;  %v12150_v52 = vpop.f32.mrf.mxu1  ;;  %v13463_v54 = vmax.f32 %v13461_v7, %v13462_v62 }
 0x3bb   :  { %13455 = vst [vmem:[#allocation25_spill] sm:$0xff] %v12150_v52  ;;  %v12158_v3 = vmax.f32 %v13458_v14, %v3631_v30 }
 0x3bc   :  { %v8469_v33 = vpop.f32.mrf.mxu0  ;;  %v8575_v18 = vpop.f32.mrf.mxu1 }
 0x3bd   :  { %13459 = vst [vmem:[#allocation22_spill] sm:$0xff] %v12158_v3  ;;  %v13466_v18 = vld [vmem:[#allocation31_spill] sm:$0xff] }
 0x3be   :  { %v3636_v17 = vpop.f32.mrf.mxu0  ;;  %8679 = vmatmul.mubr.msk.bf16.gmra.mxu0 %vm220_vm1, %v9131_v39  ;;  %v12163_v46 = vpop.f32.mrf.mxu1  ;;  %v9132_v39 = vld [vmem:[%s12786_s0 + $0x6d8] sm:$0xff]   ;;  %v13468_v62 = vmax.f32 %v13466_v18, %v13467_v5 }
 0x3bf   :  { %13460 = vst [vmem:[#allocation27_spill] sm:$0xff] %v12163_v46  ;;  %v12168_v15 = vmax.f32 %v13463_v54, %v3636_v17  ;;  %8682 = vmatprep.mubr.msk.bf16.mxu0 %vm9193_vm0, %v13007_v27  ;;  %v13471_v46 = vld [vmem:[#allocation33_spill] sm:$0xff] }
 0x3c0   :  { %v8472_v23 = vpop.f32.mrf.mxu0  ;;  %v8578_v30 = vpop.f32.mrf.mxu1 }
 0x3c1   :  { %13464 = vst [vmem:[#allocation24_spill] sm:$0xff] %v12168_v15  ;;  %v13472_v15 = vld [vmem:[#allocation30_spill] sm:$0xff]  ;;  %v13477_v23 = vld [vmem:[#allocation32_spill] sm:$0xff] }
 0x3c2   :  { %v3639_v14 = vpop.f32.mrf.mxu0  ;;  %v12174_v33 = vpop.f32.mrf.mxu1  ;;  %v13473_v52 = vmax.f32 %v13471_v46, %v13472_v15 }
 0x3c3   :  { %13465 = vst [vmem:[#allocation29_spill] sm:$0xff] %v12174_v33  ;;  %v12182_v7 = vmax.f32 %v13468_v62, %v3639_v14 }
 0x3c4   :  { %v8473_v54 = vpop.f32.mrf.mxu0  ;;  %v8579_v17 = vpop.f32.mrf.mxu1 }
 0x3c5   :  { %13469 = vst [vmem:[#allocation26_spill] sm:$0xff] %v12182_v7  ;;  %v13476_v17 = vld [vmem:[#allocation35_spill] sm:$0xff] }
 0x3c6   :  { %v3644_v30 = vpop.f32.mrf.mxu0  ;;  %8683 = vmatmul.mubr.msk.bf16.gmra.mxu0 %vm220_vm1, %v9132_v39  ;;  %v12187_v28 = vpop.f32.mrf.mxu1  ;;  %v9133_v39 = vld [vmem:[%s12786_s0 + $0x6e0] sm:$0xff]   ;;  %v13478_v15 = vmax.f32 %v13476_v17, %v13477_v23 }
 0x3c7   :  { %13470 = vst [vmem:[#allocation31_spill] sm:$0xff] %v12187_v28  ;;  %v12192_v3 = vmax.f32 %v13473_v52, %v3644_v30  ;;  %8686 = vmatprep.mubr.msk.bf16.mxu0 %vm9193_vm0, %v13007_v27  ;;  %v13481_v28 = vld [vmem:[#allocation37_spill] sm:$0xff] }
 0x3c8   :  { %v8476_v5 = vpop.f32.mrf.mxu0  ;;  %v8582_v14 = vpop.f32.mrf.mxu1 }
 0x3c9   :  { %13474 = vst [vmem:[#allocation28_spill] sm:$0xff] %v12192_v3  ;;  %v13482_v3 = vld [vmem:[#allocation34_spill] sm:$0xff]  ;;  %v13487_v5 = vld [vmem:[#allocation36_spill] sm:$0xff] }
 0x3ca   :  { %v3647_v62 = vpop.f32.mrf.mxu0  ;;  %v12198_v54 = vpop.f32.mrf.mxu1  ;;  %v13483_v33 = vmax.f32 %v13481_v28, %v13482_v3 }
 0x3cb   :  { %13475 = vst [vmem:[#allocation33_spill] sm:$0xff] %v12198_v54  ;;  %v12206_v46 = vmax.f32 %v13478_v15, %v3647_v62 }
 0x3cc   :  { %v8477_v52 = vpop.f32.mrf.mxu0  ;;  %v8583_v30 = vpop.f32.mrf.mxu1 }
 0x3cd   :  { %13479 = vst [vmem:[#allocation30_spill] sm:$0xff] %v12206_v46  ;;  %v13486_v30 = vld [vmem:[#allocation39_spill] sm:$0xff] }
 0x3ce   :  { %v3652_v14 = vpop.f32.mrf.mxu0  ;;  %8687 = vmatmul.mubr.msk.bf16.gmra.mxu0 %vm220_vm1, %v9133_v39  ;;  %v12211_v18 = vpop.f32.mrf.mxu1  ;;  %v9134_v39 = vld [vmem:[%s12786_s0 + $0x6e8] sm:$0xff]   ;;  %v13488_v3 = vmax.f32 %v13486_v30, %v13487_v5 }
 0x3cf   :  { %13480 = vst [vmem:[#allocation35_spill] sm:$0xff] %v12211_v18  ;;  %v12216_v7 = vmax.f32 %v13483_v33, %v3652_v14  ;;  %8690 = vmatprep.mubr.msk.bf16.mxu0 %vm9193_vm0, %v13007_v27  ;;  %v13491_v18 = vld [vmem:[#allocation41_spill] sm:$0xff] }
 0x3d0   :  { %v8480_v23 = vpop.f32.mrf.mxu0  ;;  %v8586_v62 = vpop.f32.mrf.mxu1 }
 0x3d1   :  { %13484 = vst [vmem:[#allocation32_spill] sm:$0xff] %v12216_v7  ;;  %v13492_v7 = vld [vmem:[#allocation38_spill] sm:$0xff]  ;;  %v13496_v23 = vld [vmem:[#allocation40_spill] sm:$0xff] }
 0x3d2   :  { %v3655_v15 = vpop.f32.mrf.mxu0  ;;  %v12222_v52 = vpop.f32.mrf.mxu1  ;;  %v13493_v54 = vmax.f32 %v13491_v18, %v13492_v7 }
 0x3d3   :  { %13485 = vst [vmem:[#allocation37_spill] sm:$0xff] %v12222_v52  ;;  %v12230_v28 = vmax.f32 %v13488_v3, %v3655_v15 }
 0x3d4   :  { %v8481_v33 = vpop.f32.mrf.mxu0  ;;  %v8587_v14 = vpop.f32.mrf.mxu1 }
 0x3d5   :  { %13489 = vst [vmem:[#allocation34_spill] sm:$0xff] %v12230_v28  ;;  %v13495_v14 = vld [vmem:[#allocation43_spill] sm:$0xff] }
 0x3d6   :  { %v3660_v62 = vpop.f32.mrf.mxu0  ;;  %8691 = vmatmul.mubr.msk.bf16.gmra.mxu0 %vm220_vm1, %v9134_v39  ;;  %v12235_v17 = vpop.f32.mrf.mxu1  ;;  %v9135_v39 = vld [vmem:[%s12786_s0 + $0x6f0] sm:$0xff]   ;;  %v13497_v7 = vmax.f32 %v13495_v14, %v13496_v23  ;;  %v13503_v14 = vmax.f32 %v11676_v29, %v11670_v53  ;;  %v13505_v29 = vmax.f32 %v11698_v49, %v11687_v45 }
 0x3d7   :  { %13490 = vst [vmem:[#allocation39_spill] sm:$0xff] %v12235_v17  ;;  %v12240_v46 = vmax.f32 %v13493_v54, %v3660_v62  ;;  %8694 = vmatprep.mubr.msk.bf16.mxu0 %vm9193_vm0, %v13007_v27  ;;  %v13498_v17 = vld [vmem:[#allocation45_spill] sm:$0xff] }
 0x3d8   :  { %v8484_v5 = vpop.f32.mrf.mxu0  ;;  %v8590_v15 = vpop.f32.mrf.mxu1 }
 0x3d9   :  { %13494 = vst [vmem:[#allocation36_spill] sm:$0xff] %v12240_v46  ;;  %v13499_v46 = vld [vmem:[#allocation42_spill] sm:$0xff] }
 0x3da   :  { %v3663_v3 = vpop.f32.mrf.mxu0  ;;  %v12246_v33 = vpop.f32.mrf.mxu1  ;;  %v13500_v52 = vmax.f32 %v13498_v17, %v13499_v46  ;;  %v13501_v46 = vmax.f32 %v11665_v2, %v11654_v57 }
 0x3db   :  { %v12254_v18 = vmax.f32 %v13497_v7, %v3663_v3 }
 0x3dc   :  { %v8485_v54 = vpop.f32.mrf.mxu0  ;;  %v8591_v62 = vpop.f32.mrf.mxu1 }
 0x3de   :  { %v3668_v15 = vpop.f32.mrf.mxu0  ;;  %8695 = vmatmul.mubr.msk.bf16.gmra.mxu0 %vm220_vm1, %v9135_v39  ;;  %v12259_v30 = vpop.f32.mrf.mxu1  ;;  %v9136_v39 = vld [vmem:[%s12786_s0 + $0x6f8] sm:$0xff]  }
 0x3df   :  { %v12264_v28 = vmax.f32 %v13500_v52, %v3668_v15  ;;  %8698 = vmatprep.mubr.msk.bf16.mxu0 %vm9193_vm0, %v13007_v27  ;;  %v12313_v15 = vld [vmem:[%s12788_s2] ss:$0 sm:$0xff] }
 0x3e0   :  { %v8488_v23 = vpop.f32.mrf.mxu0  ;;  %v8594_v3 = vpop.f32.mrf.mxu1 }
 0x3e2   :  { %v3671_v7 = vpop.f32.mrf.mxu0  ;;  %v12270_v54 = vpop.f32.mrf.mxu1 }
 0x3e3   :  { %v12278_v17 = vmax.f32 %v13501_v46, %v3671_v7 }
 0x3e4   :  { %v8489_v52 = vpop.f32.mrf.mxu0  ;;  %v8595_v62 = vpop.f32.mrf.mxu1 }
 0x3e6   :  { %v3676_v23 = vpop.f32.mrf.mxu0  ;;  %8699 = vmatmul.mubr.msk.bf16.gmra.mxu0 %vm220_vm1, %v9136_v39  ;;  %v12283_v3 = vpop.f32.mrf.mxu1  ;;  %v9137_v39 = vld [vmem:[%s12786_s0 + $0x700] sm:$0xff]  }
 0x3e7   :  { %13502 = vst [vmem:[#allocation41_spill] sm:$0xff] %v12283_v3  ;;  %v12288_v5 = vmax.f32 %v13503_v14, %v3676_v23  ;;  %8702 = vmatprep.mubr.msk.bf16.mxu0 %vm9193_vm0, %v13007_v27 }
 0x3e8   :  { %v8492_v57 = vpop.f32.mrf.mxu0  ;;  %v8598_v2 = vpop.f32.mrf.mxu1 }
 0x3e9   :  { %v13507_v2 = vmax.f32 %v11710_v44, %v11704_v4  ;;  %v13509_v44 = vmax.f32 %v11736_v50, %v11731_v47 }
 0x3ea   :  { %v3679_v46 = vpop.f32.mrf.mxu0  ;;  %v12294_v52 = vpop.f32.mrf.mxu1 }
 0x3eb   :  { %13504 = vst [vmem:[#allocation38_spill] sm:$0xff] %v12294_v52  ;;  %v12302_v53 = vmax.f32 %v13505_v29, %v3679_v46  ;;  %v13508_v29 = vmax.f32 %v11726_v8, %v11718_v35 }
 0x3ec   :  { %v8493_v14 = vpop.f32.mrf.mxu0  ;;  %v8599_v62 = vpop.f32.mrf.mxu1 }
 0x3ed   :  { %13506 = vst [vmem:[#allocation43_spill] sm:$0xff] %v12302_v53 }
 0x3ee   :  { %v4552_v57 = vpop.f32.mrf.mxu0  ;;  %8703 = vmatmul.mubr.msk.bf16.gmra.mxu0 %vm220_vm1, %v9137_v39 }
 0x3ef   :  { %v4751_v7 = vmax.f32 %v13507_v2, %v4552_v57 }
 0x3f0   :  { %v8608_v45 = vpop.f32.mrf.mxu0 }
 0x3f1   :  { %v4808_v46 = vadd.f32 %v12313_v15, %v4751_v7  ;;  %v13510_v7 = vmax.f32 %v11750_v41, %v11742_v37  ;;  %v13512_v41 = vmax.f32 %v11774_v55, %v11766_v16  ;;  %v13513_v16 = vmax.f32 %v11784_v20, %v11779_v34  ;;  %v9141_v34 = vld [vmem:[%s12787_s3 + $0x20] sm:$0xff]  }
 0x3f2   :  { %v4555_v49 = vpop.f32.mrf.mxu0 }
 0x3f3   :  { %v4752_v14 = vmax.f32 %v13508_v29, %v4555_v49  ;;  %v4858_v52 = vmax.f32 %v4808_v46, 0.0 }
 0x3f4   :  { %v8609_v62 = vpop.f32.mrf.mxu0 }
 0x3f5   :  { %v4809_v39 = vadd.f32 %v12313_v15, %v4752_v14  ;;  %v13511_v62 = vmax.f32 %v11760_v11, %v11755_v32  ;;  %v9139_v11 = vld [vmem:[%s12787_s3] sm:$0xff]  }
 0x3f6   :  { %v4560_v23 = vpop.f32.mrf.mxu0 }
 0x3f7   :  { %v4859_v4 = vmax.f32 %v4809_v39, 0.0  ;;  %v4753_v57 = vmax.f32 %v13509_v44, %v4560_v23 }
 0x3f8   :  { %v8612_v2 = vpop.f32.mrf.mxu0 }
 0x3f9   :  { %v4908_v53 = vpack.c.bf16 %v4859_v4, %v4858_v52  ;;  %v4810_v3 = vadd.f32 %v12313_v15, %v4753_v57  ;;  %v9138_v52 = vld [vmem:[%s12787_s3 + $0x8] sm:$0xff]  }
 0x3fa   :  { %v4563_v45 = vpop.f32.mrf.mxu0 }
 0x3fb   :  { %v4754_v35 = vmax.f32 %v13510_v7, %v4563_v45  ;;  %v4860_v14 = vmax.f32 %v4810_v3, 0.0  ;;  %v9140_v7 = vld [vmem:[%s12787_s3 + $0x28] sm:$0xff]  }
 0x3fc   :  { %v8613_v8 = vpop.f32.mrf.mxu0 }
 0x3fd   :  { %v4811_v49 = vadd.f32 %v12313_v15, %v4754_v35 }
 0x3fe   :  { %v4568_v29 = vpop.f32.mrf.mxu0 }
 0x3ff   :  { %v4861_v46 = vmax.f32 %v4811_v49, 0.0  ;;  %v4755_v50 = vmax.f32 %v13511_v62, %v4568_v29  ;;  %v13514_v29 = vmax.f32 %v11798_v38, %v11790_v42  ;;  %v13515_v42 = vmax.f32 %v11808_v51, %v11803_v63  ;;  %v9143_v63 = vld [vmem:[%s12787_s3 + $0x30] sm:$0xff]  }
 0x400   :  { %v8616_v47 = vpop.f32.mrf.mxu0 }
 0x401   :  { %v4909_v23 = vpack.c.bf16 %v4861_v46, %v4860_v14  ;;  %v4812_v37 = vadd.f32 %v12313_v15, %v4755_v50 }
 0x402   :  { %v4571_v39 = vpop.f32.mrf.mxu0 }
 0x403   :  { %v4756_v4 = vmax.f32 %v13512_v41, %v4571_v39  ;;  %8711 = vmatmul.mubr.msk.bf16.vlgmr.msra.gmra.mxu1 %vm4953_vm2, %v4909_v23  ;;  %v4862_v57 = vmax.f32 %v4812_v37, 0.0  ;;  %v13516_v41 = vmax.f32 %v11822_v6, %v11814_v26  ;;  %v13517_v26 = vmax.f32 %v11832_v9, %v11827_v19  ;;  %v9145_v19 = vld [vmem:[%s12787_s3 + $0x40] sm:$0xff]  }
 0x404   :  { %v8617_v3 = vpop.f32.mrf.mxu0  ;;  %8715 = vmatpush3.bf16.msra.mxu1 %v9138_v52  ;;  %8718 = vmatprep.mubr.msk.bf16.mxu1 %vm9193_vm0, %v13007_v27  ;;  %v9142_v52 = vld [vmem:[%s12787_s3 + $0x38] sm:$0xff]  }
 0x405   :  { %v4813_v32 = vadd.f32 %v12313_v15, %v4756_v4  ;;  %8716 = vmatprep.subr.bf16.mxu1 %v13007_v27 }
 0x406   :  { %v4576_v44 = vpop.f32.mrf.mxu0 }
 0x407   :  { %v4863_v2 = vmax.f32 %v4813_v32, 0.0  ;;  %v4757_v55 = vmax.f32 %v13513_v16, %v4576_v44 }
 0x408   :  { %v8620_v45 = vpop.f32.mrf.mxu0  ;;  %8717 = vmatpush3.bf16.msra.mxu1 %v9139_v11 }
 0x409   :  { %v4910_v35 = vpack.c.bf16 %v4863_v2, %v4862_v57  ;;  %8722 = vmatprep.subr.bf16.mxu1 %v13007_v27  ;;  %v4814_v49 = vadd.f32 %v12313_v15, %v4757_v55  ;;  %v9144_v2 = vld [vmem:[%s12787_s3 + $0x48] sm:$0xff]  }
 0x40a   :  { %v4579_v8 = vpop.f32.mrf.mxu0 }
 0x40b   :  { %v4758_v14 = vmax.f32 %v13514_v29, %v4579_v8  ;;  %8719 = vmatmul.mubr.msk.bf16.vlgmr.msra.gmra.mxu1 %vm4953_vm2, %v4908_v53  ;;  %v4864_v50 = vmax.f32 %v4814_v49, 0.0 }
 0x40c   :  { %v8621_v20 = vpop.f32.mrf.mxu0  ;;  %8723 = vmatpush3.bf16.msra.mxu1 %v9140_v7  ;;  %8726 = vmatprep.mubr.msk.bf16.mxu1 %vm9193_vm0, %v13007_v27  ;;  %v13518_v7 = vmax.f32 %v11846_v22, %v11838_v56  ;;  %v13519_v56 = vmax.f32 %v11856_v59, %v11851_v60  ;;  %v9147_v60 = vld [vmem:[%s12787_s3 + $0x50] sm:$0xff]  }
 0x40d   :  { %v4815_v46 = vadd.f32 %v12313_v15, %v4758_v14  ;;  %8724 = vmatprep.subr.bf16.mxu1 %v13007_v27 }
 0x40e   :  { %v4584_v62 = vpop.f32.mrf.mxu0 }
 0x40f   :  { %v4865_v47 = vmax.f32 %v4815_v46, 0.0  ;;  %v4759_v38 = vmax.f32 %v13515_v42, %v4584_v62 }
 0x410   :  { %v8624_v53 = vpop.f32.mrf.mxu0  ;;  %8725 = vmatpush3.bf16.msra.mxu1 %v9141_v34  ;;  %v9146_v34 = vld [vmem:[%s12787_s3 + $0x58] sm:$0xff]  }
 0x411   :  { %v4911_v23 = vpack.c.bf16 %v4865_v47, %v4864_v50  ;;  %8730 = vmatprep.subr.bf16.mxu1 %v13007_v27  ;;  %v4816_v37 = vadd.f32 %v12313_v15, %v4759_v38  ;;  %v13520_v47 = vmax.f32 %v11870_v31, %v11862_v0  ;;  %v13521_v0 = vmax.f32 %v11880_v13, %v11875_v24  ;;  %v9149_v24 = vld [vmem:[%s12787_s3 + $0x60] sm:$0xff]  }
 0x412   :  { %v4587_v39 = vpop.f32.mrf.mxu0 }
 0x413   :  { %v4760_v4 = vmax.f32 %v13516_v41, %v4587_v39  ;;  %8727 = vmatmul.mubr.msk.bf16.vlgmr.msra.gmra.mxu1 %vm4953_vm2, %v4910_v35  ;;  %v4866_v32 = vmax.f32 %v4816_v37, 0.0  ;;  %v9148_v37 = vld [vmem:[%s12787_s3 + $0x68] sm:$0xff]  }
 0x414   :  { %v8625_v51 = vpop.f32.mrf.mxu0  ;;  %8731 = vmatpush3.bf16.msra.mxu1 %v9142_v52  ;;  %8734 = vmatprep.mubr.msk.bf16.mxu1 %vm9193_vm0, %v13007_v27 }
 0x415   :  { %v4817_v3 = vadd.f32 %v12313_v15, %v4760_v4  ;;  %8732 = vmatprep.subr.bf16.mxu1 %v13007_v27 }
 0x416   :  { %v4592_v11 = vpop.f32.mrf.mxu0 }
 0x417   :  { %v4867_v44 = vmax.f32 %v4817_v3, 0.0  ;;  %v4761_v6 = vmax.f32 %v13517_v26, %v4592_v11 }
 0x418   :  { %v8628_v57 = vpop.f32.mrf.mxu0  ;;  %8733 = vmatpush3.bf16.msra.mxu1 %v9143_v63  ;;  %v13522_v63 = vmax.f32 %v11894_v43, %v11886_v25  ;;  %v13523_v25 = vmax.f32 %v11904_v1, %v11899_v36  ;;  %v9151_v36 = vld [vmem:[%s12787_s3 + $0x70] sm:$0xff]  }
 0x419   :  { %v4912_v16 = vpack.c.bf16 %v4867_v44, %v4866_v32  ;;  %8738 = vmatprep.subr.bf16.mxu1 %v13007_v27  ;;  %v4818_v45 = vadd.f32 %v12313_v15, %v4761_v6  ;;  %v9150_v57 = vld [vmem:[%s12787_s3 + $0x78] sm:$0xff]  }
 0x41a   :  { %v4595_v55 = vpop.f32.mrf.mxu0 }
 0x41b   :  { %v4762_v35 = vmax.f32 %v13518_v7, %v4595_v55  ;;  %8735 = vmatmul.mubr.msk.bf16.vlgmr.msra.gmra.mxu1 %vm4953_vm2, %v4911_v23  ;;  %v4868_v29 = vmax.f32 %v4818_v45, 0.0  ;;  %v13524_v45 = vmax.f32 %v11918_v58, %v11910_v61  ;;  %v13525_v61 = vmax.f32 %v11928_v40, %v11923_v48  ;;  %v9153_v48 = vld [vmem:[%s12787_s3 + $0x80] sm:$0xff]  }
 0x41c   :  { %v8629_v9 = vpop.f32.mrf.mxu0  ;;  %8739 = vmatpush3.bf16.msra.mxu1 %v9144_v2  ;;  %8742 = vmatprep.mubr.msk.bf16.mxu1 %vm9193_vm0, %v13007_v27 }
 0x41d   :  { %v4819_v8 = vadd.f32 %v12313_v15, %v4762_v35  ;;  %8740 = vmatprep.subr.bf16.mxu1 %v13007_v27 }
 0x41e   :  { %v4600_v49 = vpop.f32.mrf.mxu0 }
 0x41f   :  { %v4869_v14 = vmax.f32 %v4819_v8, 0.0  ;;  %v4763_v22 = vmax.f32 %v13519_v56, %v4600_v49 }
 0x420   :  { %v8632_v20 = vpop.f32.mrf.mxu0  ;;  %8741 = vmatpush3.bf16.msra.mxu1 %v9145_v19 }
 0x421   :  { %v4913_v46 = vpack.c.bf16 %v4869_v14, %v4868_v29  ;;  %8746 = vmatprep.subr.bf16.mxu1 %v13007_v27  ;;  %v4820_v50 = vadd.f32 %v12313_v15, %v4763_v22  ;;  %v9152_v29 = vld [vmem:[%s12787_s3 + $0x88] sm:$0xff]   ;;  %v13526_v20 = vmax.f32 %v11942_v21, %v11934_v12  ;;  %v13527_v12 = vld [vmem:[#allocation44_spill] sm:$0xff] }
 0x422   :  { %v4603_v62 = vpop.f32.mrf.mxu0  ;;  %v13528_v21 = vmax.f32 %v11952_v10, %v13527_v12 }
 0x423   :  { %v4764_v42 = vmax.f32 %v13520_v47, %v4603_v62  ;;  %8743 = vmatmul.mubr.msk.bf16.vlgmr.msra.gmra.mxu1 %vm4953_vm2, %v4912_v16  ;;  %v4870_v52 = vmax.f32 %v4820_v50, 0.0 }
 0x424   :  { %v8633_v59 = vpop.f32.mrf.mxu0  ;;  %8747 = vmatpush3.bf16.msra.mxu1 %v9146_v34  ;;  %8750 = vmatprep.mubr.msk.bf16.mxu1 %vm9193_vm0, %v13007_v27 }
 0x425   :  { %v4821_v38 = vadd.f32 %v12313_v15, %v4764_v42  ;;  %8748 = vmatprep.subr.bf16.mxu1 %v13007_v27 }
 0x426   :  { %v4608_v53 = vpop.f32.mrf.mxu0 }
 0x427   :  { %v4871_v23 = vmax.f32 %v4821_v38, 0.0  ;;  %v4765_v31 = vmax.f32 %v13521_v0, %v4608_v53  ;;  %v13530_v0 = vld [vmem:[#allocation47_spill] sm:$0xff] }
 0x428   :  { %v8636_v39 = vpop.f32.mrf.mxu0  ;;  %8749 = vmatpush3.bf16.msra.mxu1 %v9147_v60  ;;  %v9154_v60 = vld [vmem:[%s12787_s3 + $0x98] sm:$0xff]  }
 0x429   :  { %v4914_v41 = vpack.c.bf16 %v4871_v23, %v4870_v52  ;;  %8754 = vmatprep.subr.bf16.mxu1 %v13007_v27  ;;  %v4822_v51 = vadd.f32 %v12313_v15, %v4765_v31  ;;  %v13529_v23 = vld [vmem:[#allocation46_spill] sm:$0xff] }
 0x42a   :  { %v4611_v4 = vpop.f32.mrf.mxu0  ;;  %v13531_v31 = vmax.f32 %v13529_v23, %v13530_v0 }
 0x42b   :  { %v4766_v3 = vmax.f32 %v13522_v63, %v4611_v4  ;;  %8751 = vmatmul.mubr.msk.bf16.vlgmr.msra.gmra.mxu1 %vm4953_vm2, %v4913_v46  ;;  %v4872_v44 = vmax.f32 %v4822_v51, 0.0 }
 0x42c   :  { %v8637_v13 = vpop.f32.mrf.mxu0  ;;  %8755 = vmatpush3.bf16.msra.mxu1 %v9148_v37  ;;  %8758 = vmatprep.mubr.msk.bf16.mxu1 %vm9193_vm0, %v13007_v27  ;;  %v9155_v37 = vld [vmem:[%s12787_s3 + $0x90] sm:$0xff]  }
 0x42d   :  { %v4823_v11 = vadd.f32 %v12313_v15, %v4766_v3  ;;  %8756 = vmatprep.subr.bf16.mxu1 %v13007_v27  ;;  %v13532_v3 = vld [vmem:[#allocation48_spill] sm:$0xff]  ;;  %v13533_v13 = vld [vmem:[#allocation49_spill] sm:$0xff] }
 0x42e   :  { %v4616_v32 = vpop.f32.mrf.mxu0 }
 0x42f   :  { %v4873_v26 = vmax.f32 %v4823_v11, 0.0  ;;  %v4767_v43 = vmax.f32 %v13523_v25, %v4616_v32 }
 0x430   :  { %v8640_v6 = vpop.f32.mrf.mxu0  ;;  %8757 = vmatpush3.bf16.msra.mxu1 %v9149_v24  ;;  %v13534_v24 = vmax.f32 %v13532_v3, %v13533_v13 }
 0x431   :  { %v4915_v2 = vpack.c.bf16 %v4873_v26, %v4872_v44  ;;  %8762 = vmatprep.subr.bf16.mxu1 %v13007_v27  ;;  %v4824_v55 = vadd.f32 %v12313_v15, %v4767_v43  ;;  %v9156_v44 = vld [vmem:[%s12787_s3 + $0xa8] sm:$0xff]   ;;  %v13535_v6 = vld [vmem:[#allocation50_spill] sm:$0xff] }
 0x432   :  { %v4619_v16 = vpop.f32.mrf.mxu0 }
 0x433   :  { %v4768_v7 = vmax.f32 %v13524_v45, %v4619_v16  ;;  %8759 = vmatmul.mubr.msk.bf16.vlgmr.msra.gmra.mxu1 %vm4953_vm2, %v4914_v41  ;;  %v4874_v19 = vmax.f32 %v4824_v55, 0.0  ;;  %v9157_v45 = vld [vmem:[%s12787_s3 + $0xa0] sm:$0xff]  }
 0x434   :  { %v8641_v1 = vpop.f32.mrf.mxu0  ;;  %8763 = vmatpush3.bf16.msra.mxu1 %v9150_v57  ;;  %8766 = vmatprep.mubr.msk.bf16.mxu1 %vm9193_vm0, %v13007_v27  ;;  %v13536_v57 = vld [vmem:[#allocation51_spill] sm:$0xff] }
 0x435   :  { %v4825_v35 = vadd.f32 %v12313_v15, %v4768_v7  ;;  %8764 = vmatprep.subr.bf16.mxu1 %v13007_v27 }
 0x436   :  { %v4624_v9 = vpop.f32.mrf.mxu0 }
 0x437   :  { %v4875_v8 = vmax.f32 %v4825_v35, 0.0  ;;  %v4769_v58 = vmax.f32 %v13525_v61, %v4624_v9  ;;  %v13538_v9 = vld [vmem:[#allocation52_spill] sm:$0xff] }
 0x438   :  { %v8644_v49 = vpop.f32.mrf.mxu0  ;;  %8765 = vmatpush3.bf16.msra.mxu1 %v9151_v36 }
 0x439   :  { %v4916_v14 = vpack.c.bf16 %v4875_v8, %v4874_v19  ;;  %8770 = vmatprep.subr.bf16.mxu1 %v13007_v27  ;;  %v4826_v22 = vadd.f32 %v12313_v15, %v4769_v58  ;;  %v13539_v19 = vld [vmem:[#allocation54_spill] sm:$0xff]  ;;  %v9158_v49 = vld [vmem:[%s12787_s3 + $0xb8] sm:$0xff]  }
 0x43a   :  { %v4627_v56 = vpop.f32.mrf.mxu0  ;;  %v13540_v8 = vmax.f32 %v13538_v9, %v13539_v19 }
 0x43b   :  { %v4770_v34 = vmax.f32 %v13526_v20, %v4627_v56  ;;  %8767 = vmatmul.mubr.msk.bf16.vlgmr.msra.gmra.mxu1 %vm4953_vm2, %v4915_v2  ;;  %v4876_v50 = vmax.f32 %v4826_v22, 0.0  ;;  %v13537_v2 = vmax.f32 %v13535_v6, %v13536_v57  ;;  %v13541_v22 = vld [vmem:[#allocation53_spill] sm:$0xff]  ;;  %v13542_v20 = vld [vmem:[#allocation2_spill] sm:$0xff] }
 0x43c   :  { %v8645_v40 = vpop.f32.mrf.mxu0  ;;  %8771 = vmatpush3.bf16.msra.mxu1 %v9152_v29  ;;  %8774 = vmatprep.mubr.msk.bf16.mxu1 %vm9193_vm0, %v13007_v27 }
 0x43d   :  { %v4827_v46 = vadd.f32 %v12313_v15, %v4770_v34  ;;  %8772 = vmatprep.subr.bf16.mxu1 %v13007_v27  ;;  %v13543_v34 = vmax.f32 %v13541_v22, %v13542_v20 }
 0x43e   :  { %v4632_v62 = vpop.f32.mrf.mxu0 }
 0x43f   :  { %v4877_v47 = vmax.f32 %v4827_v46, 0.0  ;;  %v4771_v42 = vmax.f32 %v13528_v21, %v4632_v62  ;;  %v9159_v46 = vld [vmem:[%s12787_s3 + $0xb0] sm:$0xff]   ;;  %v13544_v21 = vld [vmem:[#allocation55_spill] sm:$0xff] }
 0x440   :  { %v8648_v59 = vpop.f32.mrf.mxu0  ;;  %8773 = vmatpush3.bf16.msra.mxu1 %v9153_v48 }
 0x441   :  { %v4917_v38 = vpack.c.bf16 %v4877_v47, %v4876_v50  ;;  %8778 = vmatprep.subr.bf16.mxu1 %v13007_v27  ;;  %v4828_v52 = vadd.f32 %v12313_v15, %v4771_v42  ;;  %v13545_v42 = vld [vmem:[#allocation3_spill] sm:$0xff] }
 0x442   :  { %v4635_v53 = vpop.f32.mrf.mxu0  ;;  %v13546_v59 = vmax.f32 %v13544_v21, %v13545_v42 }
 0x443   :  { %v4772_v39 = vmax.f32 %v13531_v31, %v4635_v53  ;;  %8775 = vmatmul.mubr.msk.bf16.vlgmr.msra.gmra.mxu1 %vm4953_vm2, %v4916_v14  ;;  %v4878_v51 = vmax.f32 %v4828_v52, 0.0  ;;  %v9160_v53 = vld [vmem:[%s12787_s3 + $0xc8] sm:$0xff]   ;;  %v13547_v31 = vld [vmem:[#allocation56_spill] sm:$0xff] }
 0x444   :  { %v8649_v10 = vpop.f32.mrf.mxu0  ;;  %8779 = vmatpush3.bf16.msra.mxu1 %v9154_v60  ;;  %8782 = vmatprep.mubr.msk.bf16.mxu1 %vm9193_vm0, %v13007_v27 }
 0x445   :  { %v4829_v41 = vadd.f32 %v12313_v15, %v4772_v39  ;;  %8780 = vmatprep.subr.bf16.mxu1 %v13007_v27  ;;  %v13548_v39 = vld [vmem:[#allocation5_spill] sm:$0xff] }
 0x446   :  { %v4640_v4 = vpop.f32.mrf.mxu0  ;;  %v13549_v10 = vmax.f32 %v13547_v31, %v13548_v39 }
 0x447   :  { %v4879_v63 = vmax.f32 %v4829_v41, 0.0  ;;  %v4773_v11 = vmax.f32 %v13534_v24, %v4640_v4  ;;  %v9161_v4 = vld [vmem:[%s12787_s3 + $0xc0] sm:$0xff]   ;;  %v13550_v24 = vld [vmem:[#allocation4_spill] sm:$0xff] }
 0x448   :  { %v8652_v32 = vpop.f32.mrf.mxu0  ;;  %8781 = vmatpush3.bf16.msra.mxu1 %v9155_v37 }
 0x449   :  { %v4918_v26 = vpack.c.bf16 %v4879_v63, %v4878_v51  ;;  %8786 = vmatprep.subr.bf16.mxu1 %v13007_v27  ;;  %v4830_v43 = vadd.f32 %v12313_v15, %v4773_v11  ;;  %v13551_v11 = vld [vmem:[#allocation7_spill] sm:$0xff] }
 0x44a   :  { %v4643_v25 = vpop.f32.mrf.mxu0  ;;  %v13552_v32 = vmax.f32 %v13550_v24, %v13551_v11 }
 0x44b   :  { %v4774_v16 = vmax.f32 %v13537_v2, %v4643_v25  ;;  %8783 = vmatmul.mubr.msk.bf16.vlgmr.msra.gmra.mxu1 %vm4953_vm2, %v4917_v38  ;;  %v4880_v36 = vmax.f32 %v4830_v43, 0.0  ;;  %v9162_v25 = vld [vmem:[%s12787_s3 + $0xd8] sm:$0xff]   ;;  %v13553_v2 = vld [vmem:[#allocation6_spill] sm:$0xff] }
 0x44c   :  { %v8653_v55 = vpop.f32.mrf.mxu0  ;;  %8787 = vmatpush3.bf16.msra.mxu1 %v9156_v44  ;;  %8790 = vmatprep.mubr.msk.bf16.mxu1 %vm9193_vm0, %v13007_v27 }
 0x44d   :  { %v4831_v7 = vadd.f32 %v12313_v15, %v4774_v16  ;;  %8788 = vmatprep.subr.bf16.mxu1 %v13007_v27  ;;  %v13554_v16 = vld [vmem:[#allocation9_spill] sm:$0xff] }
 0x44e   :  { %v4648_v1 = vpop.f32.mrf.mxu0  ;;  %v13555_v55 = vmax.f32 %v13553_v2, %v13554_v16 }
 0x44f   :  { %v4881_v35 = vmax.f32 %v4831_v7, 0.0  ;;  %v4775_v61 = vmax.f32 %v13540_v8, %v4648_v1  ;;  %v9163_v1 = vld [vmem:[%s12787_s3 + $0xd0] sm:$0xff]  }
 0x450   :  { %v8656_v58 = vpop.f32.mrf.mxu0  ;;  %8789 = vmatpush3.bf16.msra.mxu1 %v9157_v45  ;;  %v13556_v8 = vld [vmem:[#allocation8_spill] sm:$0xff] }
 0x451   :  { %v4919_v29 = vpack.c.bf16 %v4881_v35, %v4880_v36  ;;  %8794 = vmatprep.subr.bf16.mxu1 %v13007_v27  ;;  %v4832_v56 = vadd.f32 %v12313_v15, %v4775_v61  ;;  %v13557_v61 = vld [vmem:[#allocation11_spill] sm:$0xff] }
 0x452   :  { %v4651_v14 = vpop.f32.mrf.mxu0  ;;  %v13558_v58 = vmax.f32 %v13556_v8, %v13557_v61 }
 0x453   :  { %v4776_v40 = vmax.f32 %v13543_v34, %v4651_v14  ;;  %8791 = vmatmul.mubr.msk.bf16.vlgmr.msra.gmra.mxu1 %vm4953_vm2, %v4918_v26  ;;  %v4882_v47 = vmax.f32 %v4832_v56, 0.0  ;;  %v9164_v14 = vld [vmem:[%s12787_s3 + $0xe8] sm:$0xff]   ;;  %v13559_v34 = vld [vmem:[#allocation10_spill] sm:$0xff] }
 0x454   :  { %v8657_v48 = vpop.f32.mrf.mxu0  ;;  %8795 = vmatpush3.bf16.msra.mxu1 %v9158_v49  ;;  %8798 = vmatprep.mubr.msk.bf16.mxu1 %vm9193_vm0, %v13007_v27 }
 0x455   :  { %v4833_v62 = vadd.f32 %v12313_v15, %v4776_v40  ;;  %8796 = vmatprep.subr.bf16.mxu1 %v13007_v27  ;;  %v13560_v40 = vld [vmem:[#allocation13_spill] sm:$0xff] }
 0x456   :  { %v4656_v50 = vpop.f32.mrf.mxu0  ;;  %v13561_v48 = vmax.f32 %v13559_v34, %v13560_v40 }
 0x457   :  { %v4883_v12 = vmax.f32 %v4833_v62, 0.0  ;;  %v4777_v60 = vmax.f32 %v13546_v59, %v4656_v50  ;;  %v9165_v50 = vld [vmem:[%s12787_s3 + $0xe0] sm:$0xff]   ;;  %v13562_v59 = vld [vmem:[#allocation12_spill] sm:$0xff] }
 0x458   :  { %v8660_v38 = vpop.f32.mrf.mxu0  ;;  %8797 = vmatpush3.bf16.msra.mxu1 %v9159_v46 }
 0x459   :  { %v4920_v52 = vpack.c.bf16 %v4883_v12, %v4882_v47  ;;  %8802 = vmatprep.subr.bf16.mxu1 %v13007_v27  ;;  %v4834_v0 = vadd.f32 %v12313_v15, %v4777_v60  ;;  %v13563_v60 = vld [vmem:[#allocation15_spill] sm:$0xff] }
 0x45a   :  { %v4659_v23 = vpop.f32.mrf.mxu0  ;;  %v13564_v38 = vmax.f32 %v13562_v59, %v13563_v60 }
 0x45b   :  { %v4778_v37 = vmax.f32 %v13549_v10, %v4659_v23  ;;  %8799 = vmatmul.mubr.msk.bf16.vlgmr.msra.gmra.mxu1 %vm4953_vm2, %v4919_v29  ;;  %v4884_v3 = vmax.f32 %v4834_v0, 0.0  ;;  %v9166_v23 = vld [vmem:[%s12787_s3 + $0xf8] sm:$0xff]   ;;  %v13565_v10 = vld [vmem:[#allocation14_spill] sm:$0xff] }
 0x45c   :  { %v8661_v41 = vpop.f32.mrf.mxu0  ;;  %8803 = vmatpush3.bf16.msra.mxu1 %v9160_v53  ;;  %8806 = vmatprep.mubr.msk.bf16.mxu1 %vm9193_vm0, %v13007_v27 }
 0x45d   :  { %v4835_v51 = vadd.f32 %v12313_v15, %v4778_v37  ;;  %8804 = vmatprep.subr.bf16.mxu1 %v13007_v27  ;;  %v13566_v37 = vld [vmem:[#allocation17_spill] sm:$0xff] }
 0x45e   :  { %v4664_v63 = vpop.f32.mrf.mxu0  ;;  %v13567_v41 = vmax.f32 %v13565_v10, %v13566_v37 }
 0x45f   :  { %v4885_v13 = vmax.f32 %v4835_v51, 0.0  ;;  %v4779_v44 = vmax.f32 %v13552_v32, %v4664_v63  ;;  %v9167_v63 = vld [vmem:[%s12787_s3 + $0xf0] sm:$0xff]  }
 0x460   :  { %v8664_v26 = vpop.f32.mrf.mxu0  ;;  %8805 = vmatpush3.bf16.msra.mxu1 %v9161_v4  ;;  %v13568_v32 = vld [vmem:[#allocation16_spill] sm:$0xff] }
 0x461   :  { %v4921_v43 = vpack.c.bf16 %v4885_v13, %v4884_v3  ;;  %8810 = vmatprep.subr.bf16.mxu1 %v13007_v27  ;;  %v4836_v57 = vadd.f32 %v12313_v15, %v4779_v44  ;;  %v13569_v44 = vld [vmem:[#allocation19_spill] sm:$0xff] }
 0x462   :  { %v4667_v6 = vpop.f32.mrf.mxu0  ;;  %v13570_v26 = vmax.f32 %v13568_v32, %v13569_v44 }
 0x463   :  { %v4780_v45 = vmax.f32 %v13555_v55, %v4667_v6  ;;  %8807 = vmatmul.mubr.msk.bf16.vlgmr.msra.gmra.mxu1 %vm4953_vm2, %v4920_v52  ;;  %v4886_v9 = vmax.f32 %v4836_v57, 0.0  ;;  %v9168_v6 = vld [vmem:[%s12787_s3 + $0x108] sm:$0xff]   ;;  %v13571_v55 = vld [vmem:[#allocation18_spill] sm:$0xff] }
 0x464   :  { %v8665_v7 = vpop.f32.mrf.mxu0  ;;  %8811 = vmatpush3.bf16.msra.mxu1 %v9162_v25  ;;  %8814 = vmatprep.mubr.msk.bf16.mxu1 %vm9193_vm0, %v13007_v27 }
 0x465   :  { %v4837_v36 = vadd.f32 %v12313_v15, %v4780_v45  ;;  %8812 = vmatprep.subr.bf16.mxu1 %v13007_v27  ;;  %v13572_v45 = vld [vmem:[#allocation21_spill] sm:$0xff] }
 0x466   :  { %v4672_v35 = vpop.f32.mrf.mxu0  ;;  %v13573_v7 = vmax.f32 %v13571_v55, %v13572_v45 }
 0x467   :  { %v4887_v19 = vmax.f32 %v4837_v36, 0.0  ;;  %v4781_v49 = vmax.f32 %v13558_v58, %v4672_v35  ;;  %v9169_v35 = vld [vmem:[%s12787_s3 + $0x100] sm:$0xff]   ;;  %v13574_v58 = vld [vmem:[#allocation20_spill] sm:$0xff] }
 0x468   :  { %v8668_v29 = vpop.f32.mrf.mxu0  ;;  %8813 = vmatpush3.bf16.msra.mxu1 %v9163_v1 }
 0x469   :  { %v4922_v56 = vpack.c.bf16 %v4887_v19, %v4886_v9  ;;  %8818 = vmatprep.subr.bf16.mxu1 %v13007_v27  ;;  %v4838_v20 = vadd.f32 %v12313_v15, %v4781_v49  ;;  %v13575_v49 = vld [vmem:[#allocation23_spill] sm:$0xff] }
 0x46a   :  { %v4675_v22 = vpop.f32.mrf.mxu0  ;;  %v13576_v29 = vmax.f32 %v13574_v58, %v13575_v49 }
 0x46b   :  { %v4782_v46 = vmax.f32 %v13561_v48, %v4675_v22  ;;  %8815 = vmatmul.mubr.msk.bf16.vlgmr.msra.gmra.mxu1 %vm4953_vm2, %v4921_v43  ;;  %v4888_v21 = vmax.f32 %v4838_v20, 0.0  ;;  %v9170_v22 = vld [vmem:[%s12787_s3 + $0x118] sm:$0xff]   ;;  %v13577_v48 = vld [vmem:[#allocation22_spill] sm:$0xff] }
 0x46c   :  { %v8669_v62 = vpop.f32.mrf.mxu0  ;;  %8819 = vmatpush3.bf16.msra.mxu1 %v9164_v14  ;;  %8822 = vmatprep.mubr.msk.bf16.mxu1 %vm9193_vm0, %v13007_v27 }
 0x46d   :  { %v4839_v47 = vadd.f32 %v12313_v15, %v4782_v46  ;;  %8820 = vmatprep.subr.bf16.mxu1 %v13007_v27  ;;  %v13578_v46 = vld [vmem:[#allocation25_spill] sm:$0xff] }
 0x46e   :  { %v4680_v12 = vpop.f32.mrf.mxu0  ;;  %v13579_v62 = vmax.f32 %v13577_v48, %v13578_v46 }
 0x46f   :  { %v4889_v42 = vmax.f32 %v4839_v47, 0.0  ;;  %v4783_v53 = vmax.f32 %v13564_v38, %v4680_v12  ;;  %v9171_v12 = vld [vmem:[%s12787_s3 + $0x110] sm:$0xff]  }
 0x470   :  { %v8672_v52 = vpop.f32.mrf.mxu0  ;;  %8821 = vmatpush3.bf16.msra.mxu1 %v9165_v50  ;;  %v13580_v38 = vld [vmem:[#allocation24_spill] sm:$0xff] }
 0x471   :  { %v4923_v0 = vpack.c.bf16 %v4889_v42, %v4888_v21  ;;  %8826 = vmatprep.subr.bf16.mxu1 %v13007_v27  ;;  %v4840_v39 = vadd.f32 %v12313_v15, %v4783_v53  ;;  %v13581_v53 = vld [vmem:[#allocation27_spill] sm:$0xff] }
 0x472   :  { %v4683_v31 = vpop.f32.mrf.mxu0  ;;  %v13582_v52 = vmax.f32 %v13580_v38, %v13581_v53 }
 0x473   :  { %v4784_v4 = vmax.f32 %v13567_v41, %v4683_v31  ;;  %8823 = vmatmul.mubr.msk.bf16.vlgmr.msra.gmra.mxu1 %vm4953_vm2, %v4922_v56  ;;  %v4890_v24 = vmax.f32 %v4840_v39, 0.0  ;;  %v9172_v31 = vld [vmem:[%s12787_s3 + $0x128] sm:$0xff]   ;;  %v13583_v41 = vld [vmem:[#allocation26_spill] sm:$0xff] }
 0x474   :  { %v8673_v51 = vpop.f32.mrf.mxu0  ;;  %8827 = vmatpush3.bf16.msra.mxu1 %v9166_v23  ;;  %8830 = vmatprep.mubr.msk.bf16.mxu1 %vm9193_vm0, %v13007_v27 }
 0x475   :  { %v4841_v3 = vadd.f32 %v12313_v15, %v4784_v4  ;;  %8828 = vmatprep.subr.bf16.mxu1 %v13007_v27  ;;  %v13584_v4 = vld [vmem:[#allocation29_spill] sm:$0xff] }
 0x476   :  { %v4688_v13 = vpop.f32.mrf.mxu0  ;;  %v13585_v51 = vmax.f32 %v13583_v41, %v13584_v4 }
 0x477   :  { %v4891_v11 = vmax.f32 %v4841_v3, 0.0  ;;  %v4785_v25 = vmax.f32 %v13570_v26, %v4688_v13  ;;  %v9173_v13 = vld [vmem:[%s12787_s3 + $0x120] sm:$0xff]   ;;  %v13586_v26 = vld [vmem:[#allocation28_spill] sm:$0xff] }
 0x478   :  { %v8676_v43 = vpop.f32.mrf.mxu0  ;;  %8829 = vmatpush3.bf16.msra.mxu1 %v9167_v63 }
 0x479   :  { %v4924_v57 = vpack.c.bf16 %v4891_v11, %v4890_v24  ;;  %8834 = vmatprep.subr.bf16.mxu1 %v13007_v27  ;;  %v4842_v16 = vadd.f32 %v12313_v15, %v4785_v25  ;;  %v13587_v25 = vld [vmem:[#allocation31_spill] sm:$0xff] }
 0x47a   :  { %v4691_v2 = vpop.f32.mrf.mxu0  ;;  %v13588_v43 = vmax.f32 %v13586_v26, %v13587_v25  ;;  %v9180_v25 = vld [vmem:[%s12787_s3 + $0x168] sm:$0xff]  }
 0x47b   :  { %v4786_v1 = vmax.f32 %v13573_v7, %v4691_v2  ;;  %8831 = vmatmul.mubr.msk.bf16.vlgmr.msra.gmra.mxu1 %vm4953_vm2, %v4923_v0  ;;  %v4892_v8 = vmax.f32 %v4842_v16, 0.0  ;;  %v9174_v2 = vld [vmem:[%s12787_s3 + $0x138] sm:$0xff]   ;;  %v13589_v7 = vld [vmem:[#allocation30_spill] sm:$0xff] }
 0x47c   :  { %v8677_v36 = vpop.f32.mrf.mxu0  ;;  %8835 = vmatpush3.bf16.msra.mxu1 %v9168_v6  ;;  %8838 = vmatprep.mubr.msk.bf16.mxu1 %vm9193_vm0, %v13007_v27 }
 0x47d   :  { %v4843_v9 = vadd.f32 %v12313_v15, %v4786_v1  ;;  %8836 = vmatprep.subr.bf16.mxu1 %v13007_v27  ;;  %v13590_v1 = vld [vmem:[#allocation33_spill] sm:$0xff] }
 0x47e   :  { %v4696_v19 = vpop.f32.mrf.mxu0  ;;  %v13591_v36 = vmax.f32 %v13589_v7, %v13590_v1 }
 0x47f   :  { %v4893_v61 = vmax.f32 %v4843_v9, 0.0  ;;  %v4787_v14 = vmax.f32 %v13576_v29, %v4696_v19  ;;  %v9175_v19 = vld [vmem:[%s12787_s3 + $0x130] sm:$0xff]  }
 0x480   :  { %v8680_v56 = vpop.f32.mrf.mxu0  ;;  %8837 = vmatpush3.bf16.msra.mxu1 %v9169_v35  ;;  %v13592_v29 = vld [vmem:[#allocation32_spill] sm:$0xff] }
 0x481   :  { %v4925_v20 = vpack.c.bf16 %v4893_v61, %v4892_v8  ;;  %8842 = vmatprep.subr.bf16.mxu1 %v13007_v27  ;;  %v4844_v40 = vadd.f32 %v12313_v15, %v4787_v14  ;;  %v13593_v14 = vld [vmem:[#allocation35_spill] sm:$0xff] }
 0x482   :  { %v4699_v34 = vpop.f32.mrf.mxu0  ;;  %v13594_v56 = vmax.f32 %v13592_v29, %v13593_v14 }
 0x483   :  { %v4788_v50 = vmax.f32 %v13579_v62, %v4699_v34  ;;  %8839 = vmatmul.mubr.msk.bf16.vlgmr.msra.gmra.mxu1 %vm4953_vm2, %v4924_v57  ;;  %v4894_v59 = vmax.f32 %v4844_v40, 0.0  ;;  %v9176_v34 = vld [vmem:[%s12787_s3 + $0x148] sm:$0xff]   ;;  %v13595_v62 = vld [vmem:[#allocation34_spill] sm:$0xff] }
 0x484   :  { %v8681_v47 = vpop.f32.mrf.mxu0  ;;  %8843 = vmatpush3.bf16.msra.mxu1 %v9170_v22  ;;  %8846 = vmatprep.mubr.msk.bf16.mxu1 %vm9193_vm0, %v13007_v27 }
 0x485   :  { %v4845_v21 = vadd.f32 %v12313_v15, %v4788_v50  ;;  %8844 = vmatprep.subr.bf16.mxu1 %v13007_v27  ;;  %v13596_v50 = vld [vmem:[#allocation37_spill] sm:$0xff] }
 0x486   :  { %v4704_v42 = vpop.f32.mrf.mxu0  ;;  %v13597_v47 = vmax.f32 %v13595_v62, %v13596_v50 }
 0x487   :  { %v4895_v60 = vmax.f32 %v4845_v21, 0.0  ;;  %v4789_v23 = vmax.f32 %v13582_v52, %v4704_v42  ;;  %v9177_v42 = vld [vmem:[%s12787_s3 + $0x140] sm:$0xff]   ;;  %v13598_v52 = vld [vmem:[#allocation36_spill] sm:$0xff] }
 0x488   :  { %v8684_v0 = vpop.f32.mrf.mxu0  ;;  %8845 = vmatpush3.bf16.msra.mxu1 %v9171_v12 }
 0x489   :  { %v4926_v39 = vpack.c.bf16 %v4895_v60, %v4894_v59  ;;  %8850 = vmatprep.subr.bf16.mxu1 %v13007_v27  ;;  %v4846_v37 = vadd.f32 %v12313_v15, %v4789_v23  ;;  %v13599_v23 = vld [vmem:[#allocation39_spill] sm:$0xff] }
 0x48a   :  { %v4707_v10 = vpop.f32.mrf.mxu0  ;;  %v13600_v0 = vmax.f32 %v13598_v52, %v13599_v23 }
 0x48b   :  { %v4790_v63 = vmax.f32 %v13585_v51, %v4707_v10  ;;  %8847 = vmatmul.mubr.msk.bf16.vlgmr.msra.gmra.mxu1 %vm4953_vm2, %v4925_v20  ;;  %v4896_v32 = vmax.f32 %v4846_v37, 0.0  ;;  %v9178_v10 = vld [vmem:[%s12787_s3 + $0x158] sm:$0xff]   ;;  %v13601_v51 = vmax.f32 %v12254_v18, %v12246_v33  ;;  %v13602_v33 = vmax.f32 %v12264_v28, %v12259_v30  ;;  %v9181_v30 = vld [vmem:[%s12787_s3 + $0x160] sm:$0xff]  }
 0x48c   :  { %v8685_v3 = vpop.f32.mrf.mxu0  ;;  %8851 = vmatpush3.bf16.msra.mxu1 %v9172_v31  ;;  %8854 = vmatprep.mubr.msk.bf16.mxu1 %vm9193_vm0, %v13007_v27 }
 0x48d   :  { %v4847_v24 = vadd.f32 %v12313_v15, %v4790_v63  ;;  %8852 = vmatprep.subr.bf16.mxu1 %v13007_v27 }
 0x48e   :  { %v4712_v11 = vpop.f32.mrf.mxu0 }
 0x48f   :  { %v4897_v44 = vmax.f32 %v4847_v24, 0.0  ;;  %v4791_v6 = vmax.f32 %v13588_v43, %v4712_v11 }
 0x490   :  { %v8688_v57 = vpop.f32.mrf.mxu0  ;;  %8853 = vmatpush3.bf16.msra.mxu1 %v9173_v13  ;;  %v9179_v13 = vld [vmem:[%s12787_s3 + $0x150] sm:$0xff]  }
 0x491   :  { %v4927_v16 = vpack.c.bf16 %v4897_v44, %v4896_v32  ;;  %8858 = vmatprep.subr.bf16.mxu1 %v13007_v27  ;;  %v4848_v45 = vadd.f32 %v12313_v15, %v4791_v6 }
 0x492   :  { %v4715_v55 = vpop.f32.mrf.mxu0 }
 0x493   :  { %v4792_v35 = vmax.f32 %v13591_v36, %v4715_v55  ;;  %8855 = vmatmul.mubr.msk.bf16.vlgmr.msra.gmra.mxu1 %vm4953_vm2, %v4926_v39  ;;  %v4898_v58 = vmax.f32 %v4848_v45, 0.0 }
 0x494   :  { %v8689_v9 = vpop.f32.mrf.mxu0  ;;  %8859 = vmatpush3.bf16.msra.mxu1 %v9174_v2  ;;  %8862 = vmatprep.mubr.msk.bf16.mxu1 %vm9193_vm0, %v13007_v27  ;;  %v13603_v2 = vmax.f32 %v12278_v17, %v12270_v54  ;;  %v13604_v54 = vld [vmem:[#allocation41_spill] sm:$0xff] }
 0x495   :  { %v4849_v8 = vadd.f32 %v12313_v15, %v4792_v35  ;;  %8860 = vmatprep.subr.bf16.mxu1 %v13007_v27  ;;  %v13605_v17 = vmax.f32 %v12288_v5, %v13604_v54  ;;  %v9182_v9 = vld [vmem:[%s12787_s3 + $0x178] sm:$0xff]  }
 0x496   :  { %v4720_v61 = vpop.f32.mrf.mxu0 }
 0x497   :  { %v4899_v49 = vmax.f32 %v4849_v8, 0.0  ;;  %v4793_v22 = vmax.f32 %v13594_v56, %v4720_v61  ;;  %v9183_v56 = vld [vmem:[%s12787_s3 + $0x170] sm:$0xff]  }
 0x498   :  { %v8692_v20 = vpop.f32.mrf.mxu0  ;;  %8861 = vmatpush3.bf16.msra.mxu1 %v9175_v19 }
 0x499   :  { %v4928_v40 = vpack.c.bf16 %v4899_v49, %v4898_v58  ;;  %8866 = vmatprep.subr.bf16.mxu1 %v13007_v27  ;;  %v4850_v46 = vadd.f32 %v12313_v15, %v4793_v22  ;;  %v13606_v58 = vld [vmem:[#allocation43_spill] sm:$0xff]  ;;  %v13607_v49 = vld [vmem:[#allocation38_spill] sm:$0xff] }
 0x49a   :  { %v4723_v48 = vpop.f32.mrf.mxu0  ;;  %v13608_v29 = vmax.f32 %v13606_v58, %v13607_v49 }
 0x49b   :  { %v4794_v12 = vmax.f32 %v13597_v47, %v4723_v48  ;;  %8863 = vmatmul.mubr.msk.bf16.vlgmr.msra.gmra.mxu1 %vm4953_vm2, %v4927_v16  ;;  %v4900_v38 = vmax.f32 %v4850_v46, 0.0  ;;  %v9185_v46 = vld [vmem:[%s12787_s3 + $0x180] sm:$0xff]  }
 0x49c   :  { %v8693_v21 = vpop.f32.mrf.mxu0  ;;  %8867 = vmatpush3.bf16.msra.mxu1 %v9176_v34  ;;  %8870 = vmatprep.mubr.msk.bf16.mxu1 %vm9193_vm0, %v13007_v27 }
 0x49d   :  { %v4851_v59 = vadd.f32 %v12313_v15, %v4794_v12  ;;  %8868 = vmatprep.subr.bf16.mxu1 %v13007_v27 }
 0x49e   :  { %v4728_v60 = vpop.f32.mrf.mxu0 }
 0x49f   :  { %v4901_v53 = vmax.f32 %v4851_v59, 0.0  ;;  %v4795_v31 = vmax.f32 %v13600_v0, %v4728_v60 }
 0x4a0   :  { %v8696_v39 = vpop.f32.mrf.mxu0  ;;  %8869 = vmatpush3.bf16.msra.mxu1 %v9177_v42 }
 0x4a1   :  { %v4929_v37 = vpack.c.bf16 %v4901_v53, %v4900_v38  ;;  %8874 = vmatprep.subr.bf16.mxu1 %v13007_v27  ;;  %v4852_v4 = vadd.f32 %v12313_v15, %v4795_v31 }
 0x4a2   :  { %v4731_v41 = vpop.f32.mrf.mxu0 }
 0x4a3   :  { %v4796_v63 = vmax.f32 %v13601_v51, %v4731_v41  ;;  %8871 = vmatmul.mubr.msk.bf16.vlgmr.msra.gmra.mxu1 %vm4953_vm2, %v4928_v40  ;;  %v4902_v32 = vmax.f32 %v4852_v4, 0.0  ;;  %v9184_v40 = vld [vmem:[%s12787_s3 + $0x188] sm:$0xff]  }
 0x4a4   :  { %v8697_v3 = vpop.f32.mrf.mxu0  ;;  %8875 = vmatpush3.bf16.msra.mxu1 %v9178_v10  ;;  %8878 = vmatprep.mubr.msk.bf16.mxu1 %vm9193_vm0, %v13007_v27 }
 0x4a5   :  { %v4853_v24 = vadd.f32 %v12313_v15, %v4796_v63  ;;  %8876 = vmatprep.subr.bf16.mxu1 %v13007_v27 }
 0x4a6   :  { %v4736_v11 = vpop.f32.mrf.mxu0 }
 0x4a7   :  { %v4903_v44 = vmax.f32 %v4853_v24, 0.0  ;;  %v4797_v18 = vmax.f32 %v13602_v33, %v4736_v11 }
 0x4a8   :  { %v8700_v26 = vpop.f32.mrf.mxu0  ;;  %8877 = vmatpush3.bf16.msra.mxu1 %v9179_v13 }
 0x4a9   :  { %v4930_v43 = vpack.c.bf16 %v4903_v44, %v4902_v32  ;;  %8882 = vmatprep.subr.bf16.mxu1 %v13007_v27  ;;  %v4854_v57 = vadd.f32 %v12313_v15, %v4797_v18 }
 0x4aa   :  { %v4739_v6 = vpop.f32.mrf.mxu0 }
 0x4ab   :  { %v4798_v16 = vmax.f32 %v13603_v2, %v4739_v6  ;;  %8879 = vmatmul.mubr.msk.bf16.vlgmr.msra.gmra.mxu1 %vm4953_vm2, %v4929_v37  ;;  %v4904_v7 = vmax.f32 %v4854_v57, 0.0 }
 0x4ac   :  { %v8701_v28 = vpop.f32.mrf.mxu0  ;;  %8883 = vmatpush3.bf16.msra.mxu1 %v9180_v25  ;;  %8886 = vmatprep.mubr.msk.bf16.mxu1 %vm9193_vm0, %v13007_v27 }
 0x4ad   :  { %v4855_v55 = vadd.f32 %v12313_v15, %v4798_v16  ;;  %8884 = vmatprep.subr.bf16.mxu1 %v13007_v27 }
 0x4ae   :  { %v4744_v45 = vpop.f32.mrf.mxu0 }
 0x4af   :  { %v4905_v1 = vmax.f32 %v4855_v55, 0.0  ;;  %v4799_v36 = vmax.f32 %v13605_v17, %v4744_v45 }
 0x4b0   :  { %v8704_v35 = vpop.f32.mrf.mxu0  ;;  %8885 = vmatpush3.bf16.msra.mxu1 %v9181_v30 }
 0x4b1   :  { %v4931_v19 = vpack.c.bf16 %v4905_v1, %v4904_v7  ;;  %8890 = vmatprep.subr.bf16.mxu1 %v13007_v27  ;;  %v4856_v61 = vadd.f32 %v12313_v15, %v4799_v36 }
 0x4b2   :  { %v4747_v8 = vpop.f32.mrf.mxu0 }
 0x4b3   :  { %v4800_v14 = vmax.f32 %v13608_v29, %v4747_v8  ;;  %8887 = vmatmul.mubr.msk.bf16.vlgmr.msra.gmra.mxu1 %vm4953_vm2, %v4930_v43  ;;  %v4906_v20 = vmax.f32 %v4856_v61, 0.0 }
 0x4b4   :  { %8891 = vmatpush3.bf16.msra.mxu1 %v9182_v9  ;;  %v8705_v5 = vpop.f32.mrf.mxu0  ;;  %8894 = vmatprep.mubr.msk.bf16.mxu1 %vm9193_vm0, %v13007_v27 }
 0x4b5   :  { %v4857_v22 = vadd.f32 %v12313_v15, %v4800_v14  ;;  %8892 = vmatprep.subr.bf16.mxu1 %v13007_v27 }
 0x4b7   :  { %v4907_v34 = vmax.f32 %v4857_v22, 0.0 }
 0x4b8   :  { %8893 = vmatpush3.bf16.msra.mxu1 %v9183_v56 }
 0x4b9   :  { %v4932_v48 = vpack.c.bf16 %v4907_v34, %v4906_v20  ;;  %8898 = vmatprep.subr.bf16.mxu1 %v13007_v27 }
 0x4bb   :  { %8895 = vmatmul.mubr.msk.bf16.vlgmr.msra.gmra.mxu1 %vm4953_vm2, %v4931_v19 }
 0x4bc   :  { %8899 = vmatpush3.bf16.msra.mxu1 %v9184_v40  ;;  %8902 = vmatprep.mubr.msk.bf16.mxu1 %vm9193_vm0, %v13007_v27 }
 0x4bd   :  { %8900 = vmatprep.subr.bf16.mxu1 %v13007_v27 }
 0x4c0   :  { %8901 = vmatpush3.bf16.msra.mxu1 %v9185_v46 }
 0x4c3   :  { %v4991_v15 = vpop.f32.mrf.mxu1  ;;  %8903 = vmatmul.mubr.msk.bf16.vlgmr.msra.gmra.mxu1 %vm4953_vm2, %v4932_v48 }
 0x4c5   :  { %v8712_v62 = vpop.f32.mrf.mxu1 }
 0x4c7   :  { %v4994_v50 = vpop.f32.mrf.mxu1 }
 0x4c9   :  { %v8713_v47 = vpop.f32.mrf.mxu1 }
 0x4cb   :  { %v5047_v12 = vpop.f32.mrf.mxu1 }
 0x4cc   :  { %v5048_v21 = vadd.f32 %v5047_v12, %v4991_v15 }
 0x4cd   :  { %v8720_v42 = vpop.f32.mrf.mxu1 }
 0x4cf   :  { %v5050_v59 = vpop.f32.mrf.mxu1 }
 0x4d0   :  { %v5051_v60 = vadd.f32 %v5050_v59, %v4994_v50 }
 0x4d1   :  { %v8721_v38 = vpop.f32.mrf.mxu1 }
 0x4d3   :  { %v5107_v53 = vpop.f32.mrf.mxu1 }
 0x4d4   :  { %v5114_v52 = vadd.f32 %v5107_v53, %v5048_v21 }
 0x4d5   :  { %v8728_v23 = vpop.f32.mrf.mxu1 }
 0x4d7   :  { %v5110_v0 = vpop.f32.mrf.mxu1 }
 0x4d8   :  { %v5115_v31 = vadd.f32 %v5110_v0, %v5051_v60 }
 0x4d9   :  { %v8729_v39 = vpop.f32.mrf.mxu1 }
 0x4db   :  { %v5169_v27 = vpop.f32.mrf.mxu1 }
 0x4dc   :  { %v5176_v10 = vadd.f32 %v5169_v27, %v5114_v52 }
 0x4dd   :  { %v8736_v37 = vpop.f32.mrf.mxu1 }
 0x4df   :  { %v5172_v41 = vpop.f32.mrf.mxu1 }
 0x4e0   :  { %v5177_v4 = vadd.f32 %v5172_v41, %v5115_v31 }
 0x4e1   :  { %v8737_v51 = vpop.f32.mrf.mxu1 }
 0x4e3   :  { %v5231_v63 = vpop.f32.mrf.mxu1 }
 0x4e4   :  { %v5238_v3 = vadd.f32 %v5231_v63, %v5176_v10 }
 0x4e5   :  { %v8744_v13 = vpop.f32.mrf.mxu1 }
 0x4e7   :  { %v5234_v24 = vpop.f32.mrf.mxu1 }
 0x4e8   :  { %v5239_v11 = vadd.f32 %v5234_v24, %v5177_v4 }
 0x4e9   :  { %v8745_v32 = vpop.f32.mrf.mxu1 }
 0x4eb   :  { %v5293_v44 = vpop.f32.mrf.mxu1 }
 0x4ec   :  { %v5300_v33 = vadd.f32 %v5293_v44, %v5238_v3 }
 0x4ed   :  { %v8752_v18 = vpop.f32.mrf.mxu1 }
 0x4ef   :  { %v5296_v26 = vpop.f32.mrf.mxu1 }
 0x4f0   :  { %v5301_v25 = vadd.f32 %v5296_v26, %v5239_v11 }
 0x4f1   :  { %v8753_v43 = vpop.f32.mrf.mxu1 }
 0x4f3   :  { %v5355_v6 = vpop.f32.mrf.mxu1 }
 0x4f4   :  { %v5362_v57 = vadd.f32 %v5355_v6, %v5300_v33 }
 0x4f5   :  { %v8760_v2 = vpop.f32.mrf.mxu1 }
 0x4f7   :  { %v5358_v16 = vpop.f32.mrf.mxu1 }
 0x4f8   :  { %v5363_v28 = vadd.f32 %v5358_v16, %v5301_v25 }
 0x4f9   :  { %v8761_v30 = vpop.f32.mrf.mxu1 }
 0x4fb   :  { %v5417_v55 = vpop.f32.mrf.mxu1 }
 0x4fc   :  { %v5424_v45 = vadd.f32 %v5417_v55, %v5362_v57 }
 0x4fd   :  { %v8768_v7 = vpop.f32.mrf.mxu1 }
 0x4ff   :  { %v5420_v1 = vpop.f32.mrf.mxu1 }
 0x500   :  { %v5425_v54 = vadd.f32 %v5420_v1, %v5363_v28 }
 0x501   :  { %v8769_v17 = vpop.f32.mrf.mxu1 }
 0x503   :  { %v5479_v36 = vpop.f32.mrf.mxu1 }
 0x504   :  { %v5486_v35 = vadd.f32 %v5479_v36, %v5424_v45 }
 0x505   :  { %v8776_v9 = vpop.f32.mrf.mxu1 }
 0x507   :  { %v5482_v19 = vpop.f32.mrf.mxu1 }
 0x508   :  { %v5487_v8 = vadd.f32 %v5482_v19, %v5425_v54 }
 0x509   :  { %v8777_v61 = vpop.f32.mrf.mxu1 }
 0x50b   :  { %v5541_v58 = vpop.f32.mrf.mxu1 }
 0x50c   :  { %v5548_v49 = vadd.f32 %v5541_v58, %v5486_v35 }
 0x50d   :  { %v8784_v29 = vpop.f32.mrf.mxu1 }
 0x50f   :  { %v5544_v14 = vpop.f32.mrf.mxu1 }
 0x510   :  { %v5549_v5 = vadd.f32 %v5544_v14, %v5487_v8 }
 0x511   :  { %v8785_v56 = vpop.f32.mrf.mxu1 }
 0x513   :  { %v5603_v22 = vpop.f32.mrf.mxu1 }
 0x514   :  { %v5610_v20 = vadd.f32 %v5603_v22, %v5548_v49 }
 0x515   :  { %v8792_v34 = vpop.f32.mrf.mxu1 }
 0x517   :  { %v5606_v40 = vpop.f32.mrf.mxu1 }
 0x518   :  { %v5611_v48 = vadd.f32 %v5606_v40, %v5549_v5 }
 0x519   :  { %v8793_v46 = vpop.f32.mrf.mxu1 }
 0x51b   :  { %v5665_v15 = vpop.f32.mrf.mxu1 }
 0x51c   :  { %v5672_v62 = vadd.f32 %v5665_v15, %v5610_v20 }
 0x51d   :  { %v8800_v50 = vpop.f32.mrf.mxu1 }
 0x51f   :  { %v5668_v47 = vpop.f32.mrf.mxu1 }
 0x520   :  { %v5673_v12 = vadd.f32 %v5668_v47, %v5611_v48 }
 0x521   :  { %v8801_v21 = vpop.f32.mrf.mxu1 }
 0x523   :  { %v5727_v42 = vpop.f32.mrf.mxu1 }
 0x524   :  { %v5734_v59 = vadd.f32 %v5727_v42, %v5672_v62 }
 0x525   :  { %v8808_v60 = vpop.f32.mrf.mxu1 }
 0x527   :  { %v5730_v38 = vpop.f32.mrf.mxu1 }
 0x528   :  { %v5735_v53 = vadd.f32 %v5730_v38, %v5673_v12 }
 0x529   :  { %v8809_v52 = vpop.f32.mrf.mxu1 }
 0x52b   :  { %v5789_v23 = vpop.f32.mrf.mxu1 }
 0x52c   :  { %v5796_v0 = vadd.f32 %v5789_v23, %v5734_v59 }
 0x52d   :  { %v8816_v31 = vpop.f32.mrf.mxu1 }
 0x52f   :  { %v5792_v39 = vpop.f32.mrf.mxu1 }
 0x530   :  { %v5797_v27 = vadd.f32 %v5792_v39, %v5735_v53 }
 0x531   :  { %v8817_v10 = vpop.f32.mrf.mxu1 }
 0x533   :  { %v5851_v37 = vpop.f32.mrf.mxu1 }
 0x534   :  { %v5858_v19 = vadd.f32 %v5851_v37, %v5796_v0  ;;  %v7424_v0 = vld [vmem:[%s12789_s4] ss:$0 sm:$0xff] }
 0x535   :  { %v8824_v41 = vpop.f32.mrf.mxu1 }
 0x537   :  { %v5854_v4 = vpop.f32.mrf.mxu1 }
 0x538   :  { %v5859_v49 = vadd.f32 %v5854_v4, %v5797_v27 }
 0x539   :  { %v8825_v51 = vpop.f32.mrf.mxu1 }
 0x53b   :  { %v5913_v63 = vpop.f32.mrf.mxu1 }
 0x53c   :  { %v5920_v61 = vadd.f32 %v5913_v63, %v5858_v19 }
 0x53d   :  { %v8832_v3 = vpop.f32.mrf.mxu1 }
 0x53f   :  { %v5916_v13 = vpop.f32.mrf.mxu1 }
 0x540   :  { %v5921_v5 = vadd.f32 %v5916_v13, %v5859_v49 }
 0x541   :  { %v8833_v24 = vpop.f32.mrf.mxu1 }
 0x543   :  { %v5975_v11 = vpop.f32.mrf.mxu1 }
 0x544   :  { %v5982_v29 = vadd.f32 %v5975_v11, %v5920_v61 }
 0x545   :  { %v8840_v32 = vpop.f32.mrf.mxu1 }
 0x547   :  { %v5978_v44 = vpop.f32.mrf.mxu1 }
 0x548   :  { %v5983_v20 = vadd.f32 %v5978_v44, %v5921_v5 }
 0x549   :  { %v8841_v33 = vpop.f32.mrf.mxu1 }
 0x54b   :  { %v6037_v18 = vpop.f32.mrf.mxu1 }
 0x54c   :  { %v6044_v56 = vadd.f32 %v6037_v18, %v5982_v29 }
 0x54d   :  { %v8848_v26 = vpop.f32.mrf.mxu1 }
 0x54f   :  { %v6040_v25 = vpop.f32.mrf.mxu1 }
 0x550   :  { %v6045_v48 = vadd.f32 %v6040_v25, %v5983_v20 }
 0x551   :  { %v8849_v43 = vpop.f32.mrf.mxu1 }
 0x553   :  { %v6099_v6 = vpop.f32.mrf.mxu1 }
 0x554   :  { %v6106_v34 = vadd.f32 %v6099_v6, %v6044_v56 }
 0x555   :  { %v8856_v57 = vpop.f32.mrf.mxu1 }
 0x557   :  { %v6102_v2 = vpop.f32.mrf.mxu1 }
 0x558   :  { %v6107_v62 = vadd.f32 %v6102_v2, %v6045_v48 }
 0x559   :  { %v8857_v16 = vpop.f32.mrf.mxu1 }
 0x55b   :  { %v6161_v28 = vpop.f32.mrf.mxu1 }
 0x55c   :  { %v6168_v46 = vadd.f32 %v6161_v28, %v6106_v34 }
 0x55d   :  { %v8864_v30 = vpop.f32.mrf.mxu1 }
 0x55f   :  { %v6164_v55 = vpop.f32.mrf.mxu1 }
 0x560   :  { %v6169_v12 = vadd.f32 %v6164_v55, %v6107_v62 }
 0x561   :  { %v8865_v45 = vpop.f32.mrf.mxu1 }
 0x563   :  { %v6223_v7 = vpop.f32.mrf.mxu1 }
 0x564   :  { %v6230_v50 = vadd.f32 %v6223_v7, %v6168_v46 }
 0x565   :  { %v8872_v1 = vpop.f32.mrf.mxu1 }
 0x567   :  { %v6226_v54 = vpop.f32.mrf.mxu1 }
 0x568   :  { %v6231_v59 = vadd.f32 %v6226_v54, %v6169_v12 }
 0x569   :  { %v8873_v17 = vpop.f32.mrf.mxu1 }
 0x56b   :  { %v6285_v36 = vpop.f32.mrf.mxu1 }
 0x56c   :  { %v6292_v21 = vadd.f32 %v6285_v36, %v6230_v50 }
 0x56d   :  { %v8880_v35 = vpop.f32.mrf.mxu1 }
 0x56f   :  { %v6288_v9 = vpop.f32.mrf.mxu1 }
 0x570   :  { %v6293_v53 = vadd.f32 %v6288_v9, %v6231_v59 }
 0x571   :  { %v8881_v8 = vpop.f32.mrf.mxu1 }
 0x573   :  { %v6347_v58 = vpop.f32.mrf.mxu1 }
 0x574   :  { %v6354_v60 = vadd.f32 %v6347_v58, %v6292_v21 }
 0x575   :  { %v8888_v14 = vpop.f32.mrf.mxu1 }
 0x577   :  { %v6350_v22 = vpop.f32.mrf.mxu1 }
 0x578   :  { %v6355_v31 = vadd.f32 %v6350_v22, %v6293_v53 }
 0x579   :  { %v8889_v40 = vpop.f32.mrf.mxu1 }
 0x57b   :  { %v6409_v15 = vpop.f32.mrf.mxu1 }
 0x57c   :  { %v6416_v52 = vadd.f32 %v6409_v15, %v6354_v60 }
 0x57d   :  { %v8896_v47 = vpop.f32.mrf.mxu1 }
 0x57f   :  { %v6412_v42 = vpop.f32.mrf.mxu1 }
 0x580   :  { %v6417_v10 = vadd.f32 %v6412_v42, %v6355_v31 }
 0x581   :  { %v8897_v38 = vpop.f32.mrf.mxu1 }
 0x583   :  { %v6471_v23 = vpop.f32.mrf.mxu1 }
 0x584   :  { %v6478_v39 = vadd.f32 %v6471_v23, %v6416_v52 }
 0x585   :  { %v8904_v27 = vpop.f32.mrf.mxu1 }
 0x586   :  { %v6487_v37 = vadd.f32 %v7424_v0, %v6478_v39 }
 0x587   :  { %v6474_v41 = vpop.f32.mrf.mxu1 }
 0x588   :  { %6489 = vst [vmem:[%s12790_s5] sm:$0xff] %v6487_v37  ;;  %v6479_v4 = vadd.f32 %v6474_v41, %v6417_v10 }
 0x589   :  { %v8905_v51 = vpop.f32.mrf.mxu1 }
 0x58a   :  { %v6488_v63 = vadd.f32 %v7424_v0, %v6479_v4 }
 0x58c   :  { %6490 = vst [vmem:[%s12790_s5 + $0x8] sm:$0xff] %v6488_v63 }

</bundles_post_ra>
